<compile_context>
chip_gen: v7x
topology: tpu7x:2x2x1
jax: 0.10.0
libtpu: 0.0.40
codegen_flags: <defaults>
</compile_context>

<pallas_src>
import functools

import numpy as np
import jax
import jax.numpy as jnp
from jax.experimental import pallas as pl
from jax.experimental.pallas import tpu as pltpu

BN_EPS = 1e-5


def _cdiv(a, b):
    return (a + b - 1) // b


def _round_up(x, m):
    return _cdiv(x, m) * m


def _pick_halo_block(tm, need):
    """Smallest divisor of tm (multiple of 8) that covers the row halo."""
    assert need <= tm, "row halo (2*(W+2)+2) exceeds the M tile; raise tm"
    for d in (8, 16, 32, 64, 128, 256, 512, 1024):
        if tm % d == 0 and d >= need:
            return d
    return tm


# ---------------------------------------------------------------------------
# Pallas kernel: one TM-row output tile of a 3x3 conv as 9 shifted matmuls
# ---------------------------------------------------------------------------
def _conv3x3_kernel(*refs, tap_offsets, tm, fuse_input_bn_relu, output_relu,
                    compute_stats):
    """refs (in order):
      a_lo   (tm, cin)        activation rows [i*tm, (i+1)*tm)           bf16
      a_hi   (halo, cin)      activation rows [(i+1)*tm, (i+1)*tm+halo)  bf16
      w      (9, cin, coutp)  per-tap weights                            bf16
      b      (1, coutp)       bias                                       f32
      [scale, shift] (1, cin) BN affine folded into the A read           f32
      [mask] (tm, 1)          valid-row mask for the BN statistics       f32
      o      (tm, coutp)      conv output tile
      [stats](8, coutp)       rows 0/1 = per-tile sum / sum-of-squares   f32
    """
    it = iter(refs)
    a_lo_ref, a_hi_ref, w_ref, b_ref = next(it), next(it), next(it), next(it)
    scale_ref = shift_ref = mask_ref = None
    if fuse_input_bn_relu:
        scale_ref, shift_ref = next(it), next(it)
    if compute_stats:
        mask_ref = next(it)
    o_ref = next(it)
    stats_ref = next(it) if compute_stats else None

    # (tm + halo, cin) row window in f32 (clean sublane slicing + f32 epilogue).
    a_all = jnp.concatenate(
        [a_lo_ref[...].astype(jnp.float32), a_hi_ref[...].astype(jnp.float32)],
        axis=0)
    if fuse_input_bn_relu:
        # Fused BatchNorm + ReLU of the previous layer, applied on load.
        a_all = jnp.maximum(a_all * scale_ref[...] + shift_ref[...], 0.0)

    coutp = o_ref.shape[-1]
    acc = None
    for t, off in enumerate(tap_offsets):       # 9 static taps (dh, dw)
        a_t = a_all[off:off + tm, :].astype(jnp.bfloat16)
        d = jnp.dot(a_t, w_ref[t], preferred_element_type=jnp.float32)
        acc = d if acc is None else acc + d

    y = acc + b_ref[...]
    if output_relu:
        y = jnp.maximum(y, 0.0)
    if compute_stats:
        y = y * mask_ref[...]                   # zero padded / out-of-image rows
        s = jnp.sum(y, axis=0, keepdims=True)
        ss = jnp.sum(y * y, axis=0, keepdims=True)
        stats_ref[...] = jnp.concatenate(
            [s, ss, jnp.zeros((6, coutp), jnp.float32)], axis=0)
    o_ref[...] = y.astype(o_ref.dtype)


# ---------------------------------------------------------------------------
# pallas_call wrapper for one 3x3 conv over a flat padded-grid slab
# ---------------------------------------------------------------------------
def _conv3x3(a_flat, w_taps, bias, *, wp, tm, halo_blk, n_blocks, out_dtype,
             scale=None, shift=None, mask=None, output_relu, compute_stats):
    _, cin = a_flat.shape
    coutp = w_taps.shape[-1]
    tap_offsets = tuple(dh * wp + dw for dh in range(3) for dw in range(3))
    hr = tm // halo_blk

    kernel = functools.partial(
        _conv3x3_kernel, tap_offsets=tap_offsets, tm=tm,
        fuse_input_bn_relu=scale is not None, output_relu=output_relu,
        compute_stats=compute_stats)

    in_specs = [
        pl.BlockSpec((tm, cin), lambda i: (i, 0)),                 # a_lo
        pl.BlockSpec((halo_blk, cin), lambda i: ((i + 1) * hr, 0)),  # a_hi (halo)
        pl.BlockSpec((9, cin, coutp), lambda i: (0, 0, 0)),        # weights
        pl.BlockSpec((1, coutp), lambda i: (0, 0)),                # bias
    ]
    args = [a_flat, a_flat, w_taps, bias]
    if scale is not None:
        in_specs += [pl.BlockSpec((1, cin), lambda i: (0, 0)),
                     pl.BlockSpec((1, cin), lambda i: (0, 0))]
        args += [scale, shift]
    if compute_stats:
        in_specs.append(pl.BlockSpec((tm, 1), lambda i: (i, 0)))
        args.append(mask)

    out_shape = [jax.ShapeDtypeStruct((n_blocks * tm, coutp), out_dtype)]
    out_specs = [pl.BlockSpec((tm, coutp), lambda i: (i, 0))]
    if compute_stats:
        out_shape.append(jax.ShapeDtypeStruct((n_blocks * 8, coutp), jnp.float32))
        out_specs.append(pl.BlockSpec((8, coutp), lambda i: (i, 0)))

    if len(out_shape) == 1:
        out_shape, out_specs = out_shape[0], out_specs[0]
    else:
        out_shape, out_specs = tuple(out_shape), tuple(out_specs)

    return pl.pallas_call(
        kernel,
        grid=(n_blocks,),
        in_specs=in_specs,
        out_specs=out_specs,
        out_shape=out_shape,
        compiler_params=pltpu.CompilerParams(
            dimension_semantics=("parallel",)),
    )(*args)


# ---------------------------------------------------------------------------
# Convblock forward: conv(3x3,p=1) -> BN -> ReLU -> conv(3x3) -> ReLU
# ---------------------------------------------------------------------------
def convblock_forward(x, params, *, tm=256):
    """x: (N, H, W, Cin) NHWC.  Returns (N, H-2, W-2, Cout)."""
    w1, b1, gamma, beta, w2, b2 = params
    n, h, w, cin = x.shape
    cout = w1.shape[-1]
    coutp = _round_up(cout, 128)                # lane-dense, kept end-to-end
    hp, wp = h + 2, w + 2                       # conv1's spatially padded grid
    m_grid = n * hp * wp                        # shared flat row grid
    halo_blk = _pick_halo_block(tm, 2 * wp + 2)

    # Grid sizing (conv2 first so conv1's output already carries conv2's halo).
    mb2 = _cdiv(m_grid, tm)
    mb1 = mb2 + 1                               # rows(y1) = (mb2+1)*tm
    rows_x = (mb1 + 1) * tm                     # rows(x)  covers conv1's halo

    # Activation slab for conv1 (the only spatial pad is the conv's own pad=1).
    xp = jnp.pad(x, ((0, 0), (1, 1), (1, 1), (0, 0))).reshape(m_grid, cin)
    xf = jnp.pad(xp, ((0, rows_x - m_grid), (0, 0))).astype(jnp.bfloat16)

    # Valid-pixel mask for the fused BatchNorm statistics.
    rid = jnp.arange(mb1 * tm, dtype=jnp.int32)
    pos = rid % (hp * wp)
    valid = (rid < m_grid) & ((pos // wp) < h) & ((pos % wp) < w)
    mask = valid.astype(jnp.float32)[:, None]

    # Weights / bias, padded once to lane-dense output channels, bf16 operands.
    w1t = jnp.pad(w1.reshape(9, cin, cout),
                  ((0, 0), (0, 0), (0, coutp - cout))).astype(jnp.bfloat16)
    b1p = jnp.pad(b1, (0, coutp - cout)).reshape(1, coutp).astype(jnp.float32)
    w2t = jnp.pad(w2.reshape(9, cout, cout),
                  ((0, 0), (0, coutp - cout),
                   (0, coutp - cout))).astype(jnp.bfloat16)
    b2p = jnp.pad(b2, (0, coutp - cout)).reshape(1, coutp).astype(jnp.float32)
    gp = jnp.pad(gamma, (0, coutp - cout)).astype(jnp.float32)
    bp = jnp.pad(beta, (0, coutp - cout)).astype(jnp.float32)

    # Conv1 + fused batch-statistic partials (output kept bf16 / channel-padded).
    y1, stats = _conv3x3(xf, w1t, b1p, wp=wp, tm=tm, halo_blk=halo_blk,
                         n_blocks=mb1, out_dtype=jnp.bfloat16, mask=mask,
                         output_relu=False, compute_stats=True)

    # Tiny BN finalize in plain JAX (training-mode, biased variance).
    cnt = float(n * h * w)
    st = stats.reshape(mb1, 8, coutp)
    mean = st[:, 0, :].sum(axis=0) / cnt
    var = jnp.maximum(st[:, 1, :].sum(axis=0) / cnt - mean * mean, 0.0)
    inv = gp * jax.lax.rsqrt(var + BN_EPS)
    scale = inv.reshape(1, coutp)
    shift = (bp - mean * inv).reshape(1, coutp)

    # Conv2: BN + ReLU folded into the A-operand read, ReLU on the output.
    y2 = _conv3x3(y1, w2t, b2p, wp=wp, tm=tm, halo_blk=halo_blk,
                  n_blocks=mb2, out_dtype=jnp.float32,
                  scale=scale, shift=shift,
                  output_relu=True, compute_stats=False)

    # Single gather at the end: valid spatial region + true channel count.
    out = y2[:m_grid].reshape(n, hp, wp, coutp)[:, :h - 2, :w - 2, :cout]
    return out


# ---------------------------------------------------------------------------
# Pure-JAX reference (f32) for validation
# ---------------------------------------------------------------------------
def convblock_reference(x, params, eps=BN_EPS):
    w1, b1, gamma, beta, w2, b2 = params
    dn = ("NHWC", "HWIO", "NHWC")
    y = jax.lax.conv_general_dilated(x, w1, (1, 1), ((1, 1), (1, 1)),
                                     dimension_numbers=dn) + b1
    mean = y.mean(axis=(0, 1, 2))
    var = ((y - mean) ** 2).mean(axis=(0, 1, 2))
    y = (y - mean) * jax.lax.rsqrt(var + eps) * gamma + beta
    y = jnp.maximum(y, 0.0)
    y = jax.lax.conv_general_dilated(y, w2, (1, 1), "VALID",
                                     dimension_numbers=dn) + b2
    return jnp.maximum(y, 0.0)


if __name__ == "__main__":
    key = jax.random.PRNGKey(0)
    kx, kw1, kb1, kw2, kb2 = jax.random.split(key, 5)
    N, H, W, CIN, COUT = 2, 16, 16, 4, 32

    x = jax.random.normal(kx, (N, H, W, CIN), jnp.float32)
    bnd1 = 1.0 / np.sqrt(3 * 3 * CIN)
    w1 = jax.random.uniform(kw1, (3, 3, CIN, COUT), jnp.float32, -bnd1, bnd1)
    b1 = jax.random.uniform(kb1, (COUT,), jnp.float32, -bnd1, bnd1)
    bnd2 = 1.0 / np.sqrt(3 * 3 * COUT)
    w2 = jax.random.uniform(kw2, (3, 3, COUT, COUT), jnp.float32, -bnd2, bnd2)
    b2 = jax.random.uniform(kb2, (COUT,), jnp.float32, -bnd2, bnd2)
    gamma = jnp.ones((COUT,), jnp.float32)   # fresh nn.BatchNorm2d defaults
    beta = jnp.zeros((COUT,), jnp.float32)
    params = (w1, b1, gamma, beta, w2, b2)

    # TODO(synk): BatchNorm2d running_mean/running_var buffer updates are not
    # modeled (they do not affect the training-mode forward output).
    fwd = jax.jit(functools.partial(convblock_forward, tm=256))
    out = jax.block_until_ready(fwd(x, params))
    assert out.shape == (N, H - 2, W - 2, COUT), out.shape

    ref = convblock_reference(x, params)
    err = float(jnp.max(jnp.abs(out - ref)))
    scl = float(jnp.max(jnp.abs(ref)))
    assert np.isfinite(err) and err <= 0.07 * scl + 5e-3, (err, scl)
    print("KERNEL_OK")
</pallas_src>

<mosaic_0001>
module attributes {stable_mosaic.version = 11 : i64} {
  func.func @_conv3x3_kernel(%arg0: i32, %arg1: memref<256x4xbf16, #tpu.memory_space<vmem>>, %arg2: memref<64x4xbf16, #tpu.memory_space<vmem>>, %arg3: memref<9x4x128xbf16, #tpu.memory_space<vmem>>, %arg4: memref<1x128xf32, #tpu.memory_space<vmem>>, %arg5: memref<256x1xf32, #tpu.memory_space<vmem>>, %arg6: memref<256x128xbf16, #tpu.memory_space<vmem>>, %arg7: memref<8x128xf32, #tpu.memory_space<vmem>>) attributes {dimension_semantics = [#tpu.dimension_semantics<parallel>], iteration_bounds = array<i64: 4>, scalar_prefetch = 0 : i64, scratch_operands = 0 : i64, tpu.core_type = #tpu.core_type<tc>, window_params = [{transform_indices = @transform_0, window_bounds = array<i64: 256, 4>}, {transform_indices = @transform_1, window_bounds = array<i64: 64, 4>}, {pipeline_mode = #tpu.pipeline_mode<synchronous>, transform_indices = @transform_2, window_bounds = array<i64: 9, 4, 128>}, {pipeline_mode = #tpu.pipeline_mode<synchronous>, transform_indices = @transform_3, window_bounds = array<i64: 1, 128>}, {transform_indices = @transform_4, window_bounds = array<i64: 256, 1>}, {transform_indices = @transform_5, window_bounds = array<i64: 256, 128>}, {transform_indices = @transform_6, window_bounds = array<i64: 8, 128>}]} {
    %c0 = arith.constant 0 : index
    %c0_0 = arith.constant 0 : index
    %0 = vector.load %arg1[%c0, %c0_0] : memref<256x4xbf16, #tpu.memory_space<vmem>>, vector<256x4xbf16>
    %1 = arith.extf %0 : vector<256x4xbf16> to vector<256x4xf32>
    %c0_1 = arith.constant 0 : index
    %c0_2 = arith.constant 0 : index
    %2 = vector.load %arg2[%c0_1, %c0_2] : memref<64x4xbf16, #tpu.memory_space<vmem>>, vector<64x4xbf16>
    %3 = arith.extf %2 : vector<64x4xbf16> to vector<64x4xf32>
    %4 = tpu.concatenate %1, %3 in 0 : vector<256x4xf32>, vector<64x4xf32> -> vector<320x4xf32>
    %5 = vector.extract_strided_slice %4 {offsets = [0, 0], sizes = [256, 4], strides = [1, 1]} : vector<320x4xf32> to vector<256x4xf32>
    %6 = arith.truncf %5 : vector<256x4xf32> to vector<256x4xbf16>
    %c0_3 = arith.constant 0 : index
    %c0_4 = arith.constant 0 : index
    %c0_5 = arith.constant 0 : index
    %7 = vector.load %arg3[%c0_3, %c0_4, %c0_5] : memref<9x4x128xbf16, #tpu.memory_space<vmem>>, vector<1x4x128xbf16>
    %8 = vector.shape_cast %7 : vector<1x4x128xbf16> to vector<4x128xbf16>
    %cst = arith.constant dense<0.000000e+00> : vector<256x128xf32>
    %9 = tpu.matmul %6, %8, %cst {dimension_numbers = #tpu.dot_dimension_numbers<[1], [0], [0], [1], [0, 0, 1, 1], [], []>} : vector<256x4xbf16>, vector<4x128xbf16>, vector<256x128xf32> -> vector<256x128xf32>
    %10 = vector.extract_strided_slice %4 {offsets = [1, 0], sizes = [256, 4], strides = [1, 1]} : vector<320x4xf32> to vector<256x4xf32>
    %11 = arith.truncf %10 : vector<256x4xf32> to vector<256x4xbf16>
    %c1 = arith.constant 1 : index
    %c0_6 = arith.constant 0 : index
    %c0_7 = arith.constant 0 : index
    %12 = vector.load %arg3[%c1, %c0_6, %c0_7] : memref<9x4x128xbf16, #tpu.memory_space<vmem>>, vector<1x4x128xbf16>
    %13 = vector.shape_cast %12 : vector<1x4x128xbf16> to vector<4x128xbf16>
    %cst_8 = arith.constant dense<0.000000e+00> : vector<256x128xf32>
    %14 = tpu.matmul %11, %13, %cst_8 {dimension_numbers = #tpu.dot_dimension_numbers<[1], [0], [0], [1], [0, 0, 1, 1], [], []>} : vector<256x4xbf16>, vector<4x128xbf16>, vector<256x128xf32> -> vector<256x128xf32>
    %15 = arith.addf %9, %14 : vector<256x128xf32>
    %16 = vector.extract_strided_slice %4 {offsets = [2, 0], sizes = [256, 4], strides = [1, 1]} : vector<320x4xf32> to vector<256x4xf32>
    %17 = arith.truncf %16 : vector<256x4xf32> to vector<256x4xbf16>
    %c2 = arith.constant 2 : index
    %c0_9 = arith.constant 0 : index
    %c0_10 = arith.constant 0 : index
    %18 = vector.load %arg3[%c2, %c0_9, %c0_10] : memref<9x4x128xbf16, #tpu.memory_space<vmem>>, vector<1x4x128xbf16>
    %19 = vector.shape_cast %18 : vector<1x4x128xbf16> to vector<4x128xbf16>
    %cst_11 = arith.constant dense<0.000000e+00> : vector<256x128xf32>
    %20 = tpu.matmul %17, %19, %cst_11 {dimension_numbers = #tpu.dot_dimension_numbers<[1], [0], [0], [1], [0, 0, 1, 1], [], []>} : vector<256x4xbf16>, vector<4x128xbf16>, vector<256x128xf32> -> vector<256x128xf32>
    %21 = arith.addf %15, %20 : vector<256x128xf32>
    %22 = vector.extract_strided_slice %4 {offsets = [18, 0], sizes = [256, 4], strides = [1, 1]} : vector<320x4xf32> to vector<256x4xf32>
    %23 = arith.truncf %22 : vector<256x4xf32> to vector<256x4xbf16>
    %c3 = arith.constant 3 : index
    %c0_12 = arith.constant 0 : index
    %c0_13 = arith.constant 0 : index
    %24 = vector.load %arg3[%c3, %c0_12, %c0_13] : memref<9x4x128xbf16, #tpu.memory_space<vmem>>, vector<1x4x128xbf16>
    %25 = vector.shape_cast %24 : vector<1x4x128xbf16> to vector<4x128xbf16>
    %cst_14 = arith.constant dense<0.000000e+00> : vector<256x128xf32>
    %26 = tpu.matmul %23, %25, %cst_14 {dimension_numbers = #tpu.dot_dimension_numbers<[1], [0], [0], [1], [0, 0, 1, 1], [], []>} : vector<256x4xbf16>, vector<4x128xbf16>, vector<256x128xf32> -> vector<256x128xf32>
    %27 = arith.addf %21, %26 : vector<256x128xf32>
    %28 = vector.extract_strided_slice %4 {offsets = [19, 0], sizes = [256, 4], strides = [1, 1]} : vector<320x4xf32> to vector<256x4xf32>
    %29 = arith.truncf %28 : vector<256x4xf32> to vector<256x4xbf16>
    %c4 = arith.constant 4 : index
    %c0_15 = arith.constant 0 : index
    %c0_16 = arith.constant 0 : index
    %30 = vector.load %arg3[%c4, %c0_15, %c0_16] : memref<9x4x128xbf16, #tpu.memory_space<vmem>>, vector<1x4x128xbf16>
    %31 = vector.shape_cast %30 : vector<1x4x128xbf16> to vector<4x128xbf16>
    %cst_17 = arith.constant dense<0.000000e+00> : vector<256x128xf32>
    %32 = tpu.matmul %29, %31, %cst_17 {dimension_numbers = #tpu.dot_dimension_numbers<[1], [0], [0], [1], [0, 0, 1, 1], [], []>} : vector<256x4xbf16>, vector<4x128xbf16>, vector<256x128xf32> -> vector<256x128xf32>
    %33 = arith.addf %27, %32 : vector<256x128xf32>
    %34 = vector.extract_strided_slice %4 {offsets = [20, 0], sizes = [256, 4], strides = [1, 1]} : vector<320x4xf32> to vector<256x4xf32>
    %35 = arith.truncf %34 : vector<256x4xf32> to vector<256x4xbf16>
    %c5 = arith.constant 5 : index
    %c0_18 = arith.constant 0 : index
    %c0_19 = arith.constant 0 : index
    %36 = vector.load %arg3[%c5, %c0_18, %c0_19] : memref<9x4x128xbf16, #tpu.memory_space<vmem>>, vector<1x4x128xbf16>
    %37 = vector.shape_cast %36 : vector<1x4x128xbf16> to vector<4x128xbf16>
    %cst_20 = arith.constant dense<0.000000e+00> : vector<256x128xf32>
    %38 = tpu.matmul %35, %37, %cst_20 {dimension_numbers = #tpu.dot_dimension_numbers<[1], [0], [0], [1], [0, 0, 1, 1], [], []>} : vector<256x4xbf16>, vector<4x128xbf16>, vector<256x128xf32> -> vector<256x128xf32>
    %39 = arith.addf %33, %38 : vector<256x128xf32>
    %40 = vector.extract_strided_slice %4 {offsets = [36, 0], sizes = [256, 4], strides = [1, 1]} : vector<320x4xf32> to vector<256x4xf32>
    %41 = arith.truncf %40 : vector<256x4xf32> to vector<256x4xbf16>
    %c6 = arith.constant 6 : index
    %c0_21 = arith.constant 0 : index
    %c0_22 = arith.constant 0 : index
    %42 = vector.load %arg3[%c6, %c0_21, %c0_22] : memref<9x4x128xbf16, #tpu.memory_space<vmem>>, vector<1x4x128xbf16>
    %43 = vector.shape_cast %42 : vector<1x4x128xbf16> to vector<4x128xbf16>
    %cst_23 = arith.constant dense<0.000000e+00> : vector<256x128xf32>
    %44 = tpu.matmul %41, %43, %cst_23 {dimension_numbers = #tpu.dot_dimension_numbers<[1], [0], [0], [1], [0, 0, 1, 1], [], []>} : vector<256x4xbf16>, vector<4x128xbf16>, vector<256x128xf32> -> vector<256x128xf32>
    %45 = arith.addf %39, %44 : vector<256x128xf32>
    %46 = vector.extract_strided_slice %4 {offsets = [37, 0], sizes = [256, 4], strides = [1, 1]} : vector<320x4xf32> to vector<256x4xf32>
    %47 = arith.truncf %46 : vector<256x4xf32> to vector<256x4xbf16>
    %c7 = arith.constant 7 : index
    %c0_24 = arith.constant 0 : index
    %c0_25 = arith.constant 0 : index
    %48 = vector.load %arg3[%c7, %c0_24, %c0_25] : memref<9x4x128xbf16, #tpu.memory_space<vmem>>, vector<1x4x128xbf16>
    %49 = vector.shape_cast %48 : vector<1x4x128xbf16> to vector<4x128xbf16>
    %cst_26 = arith.constant dense<0.000000e+00> : vector<256x128xf32>
    %50 = tpu.matmul %47, %49, %cst_26 {dimension_numbers = #tpu.dot_dimension_numbers<[1], [0], [0], [1], [0, 0, 1, 1], [], []>} : vector<256x4xbf16>, vector<4x128xbf16>, vector<256x128xf32> -> vector<256x128xf32>
    %51 = arith.addf %45, %50 : vector<256x128xf32>
    %52 = vector.extract_strided_slice %4 {offsets = [38, 0], sizes = [256, 4], strides = [1, 1]} : vector<320x4xf32> to vector<256x4xf32>
    %53 = arith.truncf %52 : vector<256x4xf32> to vector<256x4xbf16>
    %c8 = arith.constant 8 : index
    %c0_27 = arith.constant 0 : index
    %c0_28 = arith.constant 0 : index
    %54 = vector.load %arg3[%c8, %c0_27, %c0_28] : memref<9x4x128xbf16, #tpu.memory_space<vmem>>, vector<1x4x128xbf16>
    %55 = vector.shape_cast %54 : vector<1x4x128xbf16> to vector<4x128xbf16>
    %cst_29 = arith.constant dense<0.000000e+00> : vector<256x128xf32>
    %56 = tpu.matmul %53, %55, %cst_29 {dimension_numbers = #tpu.dot_dimension_numbers<[1], [0], [0], [1], [0, 0, 1, 1], [], []>} : vector<256x4xbf16>, vector<4x128xbf16>, vector<256x128xf32> -> vector<256x128xf32>
    %57 = arith.addf %51, %56 : vector<256x128xf32>
    %c0_30 = arith.constant 0 : index
    %c0_31 = arith.constant 0 : index
    %58 = vector.load %arg4[%c0_30, %c0_31] : memref<1x128xf32, #tpu.memory_space<vmem>>, vector<1x128xf32>
    %59 = vector.broadcast %58 : vector<1x128xf32> to vector<256x128xf32>
    %60 = arith.addf %57, %59 : vector<256x128xf32>
    %c0_32 = arith.constant 0 : index
    %c0_33 = arith.constant 0 : index
    %61 = vector.load %arg5[%c0_32, %c0_33] : memref<256x1xf32, #tpu.memory_space<vmem>>, vector<256x1xf32>
    %62 = vector.broadcast %61 : vector<256x1xf32> to vector<256x128xf32>
    %63 = arith.mulf %60, %62 : vector<256x128xf32>
    %cst_34 = arith.constant dense<0.000000e+00> : vector<128xf32>
    %64 = vector.multi_reduction <add>, %63, %cst_34 [0] : vector<256x128xf32> to vector<128xf32>
    %65 = vector.shape_cast %64 : vector<128xf32> to vector<1x128xf32>
    %66 = arith.mulf %63, %63 : vector<256x128xf32>
    %cst_35 = arith.constant dense<0.000000e+00> : vector<128xf32>
    %67 = vector.multi_reduction <add>, %66, %cst_35 [0] : vector<256x128xf32> to vector<128xf32>
    %68 = vector.shape_cast %67 : vector<128xf32> to vector<1x128xf32>
    %cst_36 = arith.constant 0.000000e+00 : f32
    %69 = vector.broadcast %cst_36 : f32 to vector<6x128xf32>
    %70 = tpu.concatenate %65, %68, %69 in 0 : vector<1x128xf32>, vector<1x128xf32>, vector<6x128xf32> -> vector<8x128xf32>
    %c0_37 = arith.constant 0 : index
    %c0_38 = arith.constant 0 : index
    %71 = vector.load %arg7[%c0_37, %c0_38] : memref<8x128xf32, #tpu.memory_space<vmem>>, vector<8x128xf32>
    tpu.vector_store %arg7[%c0_37, %c0_38], %70 {strides = array<i32>} : memref<8x128xf32, #tpu.memory_space<vmem>>, vector<8x128xf32>,
    %72 = arith.truncf %63 : vector<256x128xf32> to vector<256x128xbf16>
    %c0_39 = arith.constant 0 : index
    %c0_40 = arith.constant 0 : index
    %73 = vector.load %arg6[%c0_39, %c0_40] : memref<256x128xbf16, #tpu.memory_space<vmem>>, vector<256x128xbf16>
    tpu.vector_store %arg6[%c0_39, %c0_40], %72 {strides = array<i32>} : memref<256x128xbf16, #tpu.memory_space<vmem>>, vector<256x128xbf16>,
    return
  }
  func.func @transform_0(%arg0: i32) -> (i32, i32) {
    %c0_i32 = arith.constant 0 : i32
    %c0_i32_0 = arith.constant 0 : i32
    return %arg0, %c0_i32 : i32, i32
  }
  func.func @transform_1(%arg0: i32) -> (i32, i32) {
    %c1_i32 = arith.constant 1 : i32
    %0 = arith.addi %arg0, %c1_i32 : i32
    %c4_i32 = arith.constant 4 : i32
    %1 = arith.muli %0, %c4_i32 : i32
    %c0_i32 = arith.constant 0 : i32
    %c0_i32_0 = arith.constant 0 : i32
    return %1, %c0_i32 : i32, i32
  }
  func.func @transform_2(%arg0: i32) -> (i32, i32, i32) {
    %c0_i32 = arith.constant 0 : i32
    %c0_i32_0 = arith.constant 0 : i32
    %c0_i32_1 = arith.constant 0 : i32
    %c0_i32_2 = arith.constant 0 : i32
    return %c0_i32, %c0_i32_0, %c0_i32_1 : i32, i32, i32
  }
  func.func @transform_3(%arg0: i32) -> (i32, i32) {
    %c0_i32 = arith.constant 0 : i32
    %c0_i32_0 = arith.constant 0 : i32
    %c0_i32_1 = arith.constant 0 : i32
    return %c0_i32, %c0_i32_0 : i32, i32
  }
  func.func @transform_4(%arg0: i32) -> (i32, i32) {
    %c0_i32 = arith.constant 0 : i32
    %c0_i32_0 = arith.constant 0 : i32
    return %arg0, %c0_i32 : i32, i32
  }
  func.func @transform_5(%arg0: i32) -> (i32, i32) {
    %c0_i32 = arith.constant 0 : i32
    %c0_i32_0 = arith.constant 0 : i32
    return %arg0, %c0_i32 : i32, i32
  }
  func.func @transform_6(%arg0: i32) -> (i32, i32) {
    %c0_i32 = arith.constant 0 : i32
    %c0_i32_0 = arith.constant 0 : i32
    return %arg0, %c0_i32 : i32, i32
  }
}

module attributes {stable_mosaic.version = 11 : i64} {
  func.func @_conv3x3_kernel(%arg0: i32, %arg1: memref<256x128xbf16, #tpu.memory_space<vmem>>, %arg2: memref<64x128xbf16, #tpu.memory_space<vmem>>, %arg3: memref<9x128x128xbf16, #tpu.memory_space<vmem>>, %arg4: memref<1x128xf32, #tpu.memory_space<vmem>>, %arg5: memref<1x128xf32, #tpu.memory_space<vmem>>, %arg6: memref<1x128xf32, #tpu.memory_space<vmem>>, %arg7: memref<256x128xf32, #tpu.memory_space<vmem>>) attributes {dimension_semantics = [#tpu.dimension_semantics<parallel>], iteration_bounds = array<i64: 3>, scalar_prefetch = 0 : i64, scratch_operands = 0 : i64, tpu.core_type = #tpu.core_type<tc>, window_params = [{transform_indices = @transform_0, window_bounds = array<i64: 256, 128>}, {transform_indices = @transform_1, window_bounds = array<i64: 64, 128>}, {pipeline_mode = #tpu.pipeline_mode<synchronous>, transform_indices = @transform_2, window_bounds = array<i64: 9, 128, 128>}, {pipeline_mode = #tpu.pipeline_mode<synchronous>, transform_indices = @transform_3, window_bounds = array<i64: 1, 128>}, {pipeline_mode = #tpu.pipeline_mode<synchronous>, transform_indices = @transform_4, window_bounds = array<i64: 1, 128>}, {pipeline_mode = #tpu.pipeline_mode<synchronous>, transform_indices = @transform_5, window_bounds = array<i64: 1, 128>}, {transform_indices = @transform_6, window_bounds = array<i64: 256, 128>}]} {
    %c0 = arith.constant 0 : index
    %c0_0 = arith.constant 0 : index
    %0 = vector.load %arg1[%c0, %c0_0] : memref<256x128xbf16, #tpu.memory_space<vmem>>, vector<256x128xbf16>
    %1 = arith.extf %0 : vector<256x128xbf16> to vector<256x128xf32>
    %c0_1 = arith.constant 0 : index
    %c0_2 = arith.constant 0 : index
    %2 = vector.load %arg2[%c0_1, %c0_2] : memref<64x128xbf16, #tpu.memory_space<vmem>>, vector<64x128xbf16>
    %3 = arith.extf %2 : vector<64x128xbf16> to vector<64x128xf32>
    %4 = tpu.concatenate %1, %3 in 0 : vector<256x128xf32>, vector<64x128xf32> -> vector<320x128xf32>
    %c0_3 = arith.constant 0 : index
    %c0_4 = arith.constant 0 : index
    %5 = vector.load %arg5[%c0_3, %c0_4] : memref<1x128xf32, #tpu.memory_space<vmem>>, vector<1x128xf32>
    %6 = vector.broadcast %5 : vector<1x128xf32> to vector<320x128xf32>
    %7 = arith.mulf %4, %6 : vector<320x128xf32>
    %c0_5 = arith.constant 0 : index
    %c0_6 = arith.constant 0 : index
    %8 = vector.load %arg6[%c0_5, %c0_6] : memref<1x128xf32, #tpu.memory_space<vmem>>, vector<1x128xf32>
    %9 = vector.broadcast %8 : vector<1x128xf32> to vector<320x128xf32>
    %10 = arith.addf %7, %9 : vector<320x128xf32>
    %cst = arith.constant 0.000000e+00 : f32
    %11 = vector.broadcast %cst : f32 to vector<320x128xf32>
    %12 = arith.maximumf %10, %11 : vector<320x128xf32>
    %13 = vector.extract_strided_slice %12 {offsets = [0, 0], sizes = [256, 128], strides = [1, 1]} : vector<320x128xf32> to vector<256x128xf32>
    %14 = arith.truncf %13 : vector<256x128xf32> to vector<256x128xbf16>
    %c0_7 = arith.constant 0 : index
    %c0_8 = arith.constant 0 : index
    %c0_9 = arith.constant 0 : index
    %15 = vector.load %arg3[%c0_7, %c0_8, %c0_9] : memref<9x128x128xbf16, #tpu.memory_space<vmem>>, vector<1x128x128xbf16>
    %16 = vector.shape_cast %15 : vector<1x128x128xbf16> to vector<128x128xbf16>
    %cst_10 = arith.constant dense<0.000000e+00> : vector<256x128xf32>
    %17 = tpu.matmul %14, %16, %cst_10 {dimension_numbers = #tpu.dot_dimension_numbers<[1], [0], [0], [1], [0, 0, 1, 1], [], []>} : vector<256x128xbf16>, vector<128x128xbf16>, vector<256x128xf32> -> vector<256x128xf32>
    %18 = vector.extract_strided_slice %12 {offsets = [1, 0], sizes = [256, 128], strides = [1, 1]} : vector<320x128xf32> to vector<256x128xf32>
    %19 = arith.truncf %18 : vector<256x128xf32> to vector<256x128xbf16>
    %c1 = arith.constant 1 : index
    %c0_11 = arith.constant 0 : index
    %c0_12 = arith.constant 0 : index
    %20 = vector.load %arg3[%c1, %c0_11, %c0_12] : memref<9x128x128xbf16, #tpu.memory_space<vmem>>, vector<1x128x128xbf16>
    %21 = vector.shape_cast %20 : vector<1x128x128xbf16> to vector<128x128xbf16>
    %cst_13 = arith.constant dense<0.000000e+00> : vector<256x128xf32>
    %22 = tpu.matmul %19, %21, %cst_13 {dimension_numbers = #tpu.dot_dimension_numbers<[1], [0], [0], [1], [0, 0, 1, 1], [], []>} : vector<256x128xbf16>, vector<128x128xbf16>, vector<256x128xf32> -> vector<256x128xf32>
    %23 = arith.addf %17, %22 : vector<256x128xf32>
    %24 = vector.extract_strided_slice %12 {offsets = [2, 0], sizes = [256, 128], strides = [1, 1]} : vector<320x128xf32> to vector<256x128xf32>
    %25 = arith.truncf %24 : vector<256x128xf32> to vector<256x128xbf16>
    %c2 = arith.constant 2 : index
    %c0_14 = arith.constant 0 : index
    %c0_15 = arith.constant 0 : index
    %26 = vector.load %arg3[%c2, %c0_14, %c0_15] : memref<9x128x128xbf16, #tpu.memory_space<vmem>>, vector<1x128x128xbf16>
    %27 = vector.shape_cast %26 : vector<1x128x128xbf16> to vector<128x128xbf16>
    %cst_16 = arith.constant dense<0.000000e+00> : vector<256x128xf32>
    %28 = tpu.matmul %25, %27, %cst_16 {dimension_numbers = #tpu.dot_dimension_numbers<[1], [0], [0], [1], [0, 0, 1, 1], [], []>} : vector<256x128xbf16>, vector<128x128xbf16>, vector<256x128xf32> -> vector<256x128xf32>
    %29 = arith.addf %23, %28 : vector<256x128xf32>
    %30 = vector.extract_strided_slice %12 {offsets = [18, 0], sizes = [256, 128], strides = [1, 1]} : vector<320x128xf32> to vector<256x128xf32>
    %31 = arith.truncf %30 : vector<256x128xf32> to vector<256x128xbf16>
    %c3 = arith.constant 3 : index
    %c0_17 = arith.constant 0 : index
    %c0_18 = arith.constant 0 : index
    %32 = vector.load %arg3[%c3, %c0_17, %c0_18] : memref<9x128x128xbf16, #tpu.memory_space<vmem>>, vector<1x128x128xbf16>
    %33 = vector.shape_cast %32 : vector<1x128x128xbf16> to vector<128x128xbf16>
    %cst_19 = arith.constant dense<0.000000e+00> : vector<256x128xf32>
    %34 = tpu.matmul %31, %33, %cst_19 {dimension_numbers = #tpu.dot_dimension_numbers<[1], [0], [0], [1], [0, 0, 1, 1], [], []>} : vector<256x128xbf16>, vector<128x128xbf16>, vector<256x128xf32> -> vector<256x128xf32>
    %35 = arith.addf %29, %34 : vector<256x128xf32>
    %36 = vector.extract_strided_slice %12 {offsets = [19, 0], sizes = [256, 128], strides = [1, 1]} : vector<320x128xf32> to vector<256x128xf32>
    %37 = arith.truncf %36 : vector<256x128xf32> to vector<256x128xbf16>
    %c4 = arith.constant 4 : index
    %c0_20 = arith.constant 0 : index
    %c0_21 = arith.constant 0 : index
    %38 = vector.load %arg3[%c4, %c0_20, %c0_21] : memref<9x128x128xbf16, #tpu.memory_space<vmem>>, vector<1x128x128xbf16>
    %39 = vector.shape_cast %38 : vector<1x128x128xbf16> to vector<128x128xbf16>
    %cst_22 = arith.constant dense<0.000000e+00> : vector<256x128xf32>
    %40 = tpu.matmul %37, %39, %cst_22 {dimension_numbers = #tpu.dot_dimension_numbers<[1], [0], [0], [1], [0, 0, 1, 1], [], []>} : vector<256x128xbf16>, vector<128x128xbf16>, vector<256x128xf32> -> vector<256x128xf32>
    %41 = arith.addf %35, %40 : vector<256x128xf32>
    %42 = vector.extract_strided_slice %12 {offsets = [20, 0], sizes = [256, 128], strides = [1, 1]} : vector<320x128xf32> to vector<256x128xf32>
    %43 = arith.truncf %42 : vector<256x128xf32> to vector<256x128xbf16>
    %c5 = arith.constant 5 : index
    %c0_23 = arith.constant 0 : index
    %c0_24 = arith.constant 0 : index
    %44 = vector.load %arg3[%c5, %c0_23, %c0_24] : memref<9x128x128xbf16, #tpu.memory_space<vmem>>, vector<1x128x128xbf16>
    %45 = vector.shape_cast %44 : vector<1x128x128xbf16> to vector<128x128xbf16>
    %cst_25 = arith.constant dense<0.000000e+00> : vector<256x128xf32>
    %46 = tpu.matmul %43, %45, %cst_25 {dimension_numbers = #tpu.dot_dimension_numbers<[1], [0], [0], [1], [0, 0, 1, 1], [], []>} : vector<256x128xbf16>, vector<128x128xbf16>, vector<256x128xf32> -> vector<256x128xf32>
    %47 = arith.addf %41, %46 : vector<256x128xf32>
    %48 = vector.extract_strided_slice %12 {offsets = [36, 0], sizes = [256, 128], strides = [1, 1]} : vector<320x128xf32> to vector<256x128xf32>
    %49 = arith.truncf %48 : vector<256x128xf32> to vector<256x128xbf16>
    %c6 = arith.constant 6 : index
    %c0_26 = arith.constant 0 : index
    %c0_27 = arith.constant 0 : index
    %50 = vector.load %arg3[%c6, %c0_26, %c0_27] : memref<9x128x128xbf16, #tpu.memory_space<vmem>>, vector<1x128x128xbf16>
    %51 = vector.shape_cast %50 : vector<1x128x128xbf16> to vector<128x128xbf16>
    %cst_28 = arith.constant dense<0.000000e+00> : vector<256x128xf32>
    %52 = tpu.matmul %49, %51, %cst_28 {dimension_numbers = #tpu.dot_dimension_numbers<[1], [0], [0], [1], [0, 0, 1, 1], [], []>} : vector<256x128xbf16>, vector<128x128xbf16>, vector<256x128xf32> -> vector<256x128xf32>
    %53 = arith.addf %47, %52 : vector<256x128xf32>
    %54 = vector.extract_strided_slice %12 {offsets = [37, 0], sizes = [256, 128], strides = [1, 1]} : vector<320x128xf32> to vector<256x128xf32>
    %55 = arith.truncf %54 : vector<256x128xf32> to vector<256x128xbf16>
    %c7 = arith.constant 7 : index
    %c0_29 = arith.constant 0 : index
    %c0_30 = arith.constant 0 : index
    %56 = vector.load %arg3[%c7, %c0_29, %c0_30] : memref<9x128x128xbf16, #tpu.memory_space<vmem>>, vector<1x128x128xbf16>
    %57 = vector.shape_cast %56 : vector<1x128x128xbf16> to vector<128x128xbf16>
    %cst_31 = arith.constant dense<0.000000e+00> : vector<256x128xf32>
    %58 = tpu.matmul %55, %57, %cst_31 {dimension_numbers = #tpu.dot_dimension_numbers<[1], [0], [0], [1], [0, 0, 1, 1], [], []>} : vector<256x128xbf16>, vector<128x128xbf16>, vector<256x128xf32> -> vector<256x128xf32>
    %59 = arith.addf %53, %58 : vector<256x128xf32>
    %60 = vector.extract_strided_slice %12 {offsets = [38, 0], sizes = [256, 128], strides = [1, 1]} : vector<320x128xf32> to vector<256x128xf32>
    %61 = arith.truncf %60 : vector<256x128xf32> to vector<256x128xbf16>
    %c8 = arith.constant 8 : index
    %c0_32 = arith.constant 0 : index
    %c0_33 = arith.constant 0 : index
    %62 = vector.load %arg3[%c8, %c0_32, %c0_33] : memref<9x128x128xbf16, #tpu.memory_space<vmem>>, vector<1x128x128xbf16>
    %63 = vector.shape_cast %62 : vector<1x128x128xbf16> to vector<128x128xbf16>
    %cst_34 = arith.constant dense<0.000000e+00> : vector<256x128xf32>
    %64 = tpu.matmul %61, %63, %cst_34 {dimension_numbers = #tpu.dot_dimension_numbers<[1], [0], [0], [1], [0, 0, 1, 1], [], []>} : vector<256x128xbf16>, vector<128x128xbf16>, vector<256x128xf32> -> vector<256x128xf32>
    %65 = arith.addf %59, %64 : vector<256x128xf32>
    %c0_35 = arith.constant 0 : index
    %c0_36 = arith.constant 0 : index
    %66 = vector.load %arg4[%c0_35, %c0_36] : memref<1x128xf32, #tpu.memory_space<vmem>>, vector<1x128xf32>
    %67 = vector.broadcast %66 : vector<1x128xf32> to vector<256x128xf32>
    %68 = arith.addf %65, %67 : vector<256x128xf32>
    %cst_37 = arith.constant 0.000000e+00 : f32
    %69 = vector.broadcast %cst_37 : f32 to vector<256x128xf32>
    %70 = arith.maximumf %68, %69 : vector<256x128xf32>
    %c0_38 = arith.constant 0 : index
    %c0_39 = arith.constant 0 : index
    %71 = vector.load %arg7[%c0_38, %c0_39] : memref<256x128xf32, #tpu.memory_space<vmem>>, vector<256x128xf32>
    tpu.vector_store %arg7[%c0_38, %c0_39], %70 {strides = array<i32>} : memref<256x128xf32, #tpu.memory_space<vmem>>, vector<256x128xf32>,
    return
  }
  func.func @transform_0(%arg0: i32) -> (i32, i32) {
    %c0_i32 = arith.constant 0 : i32
    %c0_i32_0 = arith.constant 0 : i32
    return %arg0, %c0_i32 : i32, i32
  }
  func.func @transform_1(%arg0: i32) -> (i32, i32) {
    %c1_i32 = arith.constant 1 : i32
    %0 = arith.addi %arg0, %c1_i32 : i32
    %c4_i32 = arith.constant 4 : i32
    %1 = arith.muli %0, %c4_i32 : i32
    %c0_i32 = arith.constant 0 : i32
    %c0_i32_0 = arith.constant 0 : i32
    return %1, %c0_i32 : i32, i32
  }
  func.func @transform_2(%arg0: i32) -> (i32, i32, i32) {
    %c0_i32 = arith.constant 0 : i32
    %c0_i32_0 = arith.constant 0 : i32
    %c0_i32_1 = arith.constant 0 : i32
    %c0_i32_2 = arith.constant 0 : i32
    return %c0_i32, %c0_i32_0, %c0_i32_1 : i32, i32, i32
  }
  func.func @transform_3(%arg0: i32) -> (i32, i32) {
    %c0_i32 = arith.constant 0 : i32
    %c0_i32_0 = arith.constant 0 : i32
    %c0_i32_1 = arith.constant 0 : i32
    return %c0_i32, %c0_i32_0 : i32, i32
  }
  func.func @transform_4(%arg0: i32) -> (i32, i32) {
    %c0_i32 = arith.constant 0 : i32
    %c0_i32_0 = arith.constant 0 : i32
    %c0_i32_1 = arith.constant 0 : i32
    return %c0_i32, %c0_i32_0 : i32, i32
  }
  func.func @transform_5(%arg0: i32) -> (i32, i32) {
    %c0_i32 = arith.constant 0 : i32
    %c0_i32_0 = arith.constant 0 : i32
    %c0_i32_1 = arith.constant 0 : i32
    return %c0_i32, %c0_i32_0 : i32, i32
  }
  func.func @transform_6(%arg0: i32) -> (i32, i32) {
    %c0_i32 = arith.constant 0 : i32
    %c0_i32_0 = arith.constant 0 : i32
    return %arg0, %c0_i32 : i32, i32
  }
}

</mosaic_0001>

<bundles_post_ra>
// kernel: convblock_forward.2
= control target key start
LH: loop header
LB: loop body
LE: loop exit
PB: predicated region body
PF: predicated region fallthrough
CT: control target
= control target key end

     0   :  { %s4702_s21 = smov 0   ;;  %s5720_s0 = inlined_call_operand.vmem [shape: bf16[1280,4], index: 0, kind: input, shape index: {}, may-alias: {0,1}]   ;;  %s5721_s1 = inlined_call_operand.vmem [shape: bf16[1280,4], index: 1, kind: input, shape index: {}, may-alias: {0,1}]   ;;  %s5722_s2 = inlined_call_operand.vmem [shape: bf16[9,4,128], index: 2, kind: input, shape index: {}]   ;;  %s5723_s3 = inlined_call_operand.vmem [shape: f32[1,128], index: 3, kind: input, shape index: {}]   ;;  %s5724_s4 = inlined_call_operand.vmem [shape: f32[1024,1], index: 4, kind: input, shape index: {}]   ;;  %s5725_s5 = inlined_call_operand.vmem [shape: bf16[1024,128], index: 5, kind: output, shape index: {0}]   ;;  %s5726_s6 = inlined_call_operand.vmem [shape: f32[32,128], index: 6, kind: output, shape index: {1}]  }
   0x1 LB: > { %s4708_s22 = sadd.s32 4294967295, %s4664_s21   ;;  %p3541_p0 = scmp.ge.s32.totalorder %s4664_s21, 1  ;;  %s4664_s21 = sphi %s4702_s21, %s17_s21  }
   0x2   : > { %p246_p1 = scmp.lt.s32.totalorder %s4664_s21, 5 }
   0x4   : > { %p247_p2 = pnand %p3541_p0, %p246_p1 }
   0x6   : > { %250 = sbr.rel (%p247_p2) target bundleno = 556 (0x22c), region = 40 }
   0xd   : > { %v3569_v0 = vld [vmem:[%s5722_s2 + $0x2] sm:$0x3]  ;;  %vm601_vm0 = vcmask 1041408   ;;  %v4718_v1 = vld [vmem:[%s5722_s2 + $0x8] sm:$0x3]  ;;  %s4721_s27 = sshll.u32 %s4708_s22, 5 }
   0xe   : > { %4613 = vmatprep.subr.msk.bf16.mxu1 %vm601_vm0, %v3569_v0  ;;  %4617 = vmatprep.subr.msk.bf16.mxu0 %vm601_vm0, %v4718_v1  ;;  %v603_v2 = vsel %vm601_vm0, %v3569_v0, 0  ;;  %v4729_v3 = vsel %vm601_vm0, %v4718_v1, 0  ;;  %p293_p3 = scmp.lt.s32.totalorder %s4721_s27, 159  ;;  %v415_v4 = vld [vmem:[%s5722_s2] sm:$0x3]  ;;  %vm552_vm3 = vcmask 31744  }
   0xf   : > { %5740 = vst [vmem:[#allocation2_spill] sm:$0xff] %v4729_v3  ;;  %4050 = vmatpush3.bf16.msra.mxu1 %v603_v2  ;;  %4186 = vmatpush3.bf16.msra.mxu0 %v4729_v3  ;;  %v3655_v5 = vld [vmem:[%s5722_s2 + $0xa] sm:$0x3]  ;;  %vm419_vm1 = vsmask.f32 7424  ;;  %v799_v8 = vsel %vm601_vm0, %v415_v4, 0 }
  0x10   : > { %s294_s8 = scalar_select %p293_p3, %s4721_s27, 159  ;;  %4614 = vmatprep.subr.msk.bf16.mxu1 %vm601_vm0, %v415_v4  ;;  %4619 = vmatprep.subr.msk.bf16.mxu0 %vm601_vm0, %v3655_v5  ;;  %vm1473_vm2 = vsmask.f32 6400  ;;  %v1880_v10 = vsel %vm601_vm0, %v3655_v5, 0  ;;  %v4792_v36 = vld [vmem:[%s5722_s2 + $0x4] sm:$0x3] }
  0x11   : > { %s3880_s15 = sadd.s32 32, %s4721_s27  ;;  %v4824_v51 = vld [vmem:[%s5722_s2 + $0xc] sm:$0x3]  ;;  %vm1797_vm4 = vcmask 1045504   ;;  %vm2289_vm5 = vsmask.f32 5376 }
  0x12   : > { %s3543_s9 = sshll.u32 %s294_s8, 2  ;;  %p4842_p4 = scmp.lt.s32.totalorder %s3880_s15, 159  ;;  %vm981_vm6 = vcmask 1046528   ;;  %vm2613_vm7 = vcmask 1044480   ;;  %vm3260_vm8 = vcmask 1040384  }
  0x13   : > { %s4745_s12 = scalar_lea.vmem %s5720_s0, %s3543_s9  ;;  %p309_p5 = scmp.lt.s32.totalorder %s4721_s27, 127 }
  0x14   : > { %v4748_v6 = vld [vmem:[%s4745_s12] sm:$0xff]   ;;  %v4751_v7 = vld [vmem:[%s4745_s12 + $0x8] sm:$0xff]   ;;  %v4755_v9 = vld [vmem:[%s4745_s12 + $0x10] sm:$0xff]   ;;  %s5757_s15 = smov (!%p4842_p4, %s3880_s15), 159  ;;  %p320_p6 = scmp.lt.s32.totalorder %s4708_s22, 3 }
  0x15   : > { %v421_v11 = vshrl.u32 %v4748_v6, 16  ;;  %v423_v12 = vshll.u32 %v4748_v6, 16  ;;  %v428_v13 = vshll.u32 %v4751_v7, 16  ;;  %v432_v14 = vshrl.u32 %v4751_v7, 16  ;;  %v4769_v17 = vld [vmem:[%s4745_s12 + $0x18] sm:$0xff]   ;;  %v4772_v18 = vld [vmem:[%s4745_s12 + $0x20] sm:$0xff]  }
  0x16   : > { %v4763_v15 = vshll.u32 %v4755_v9, 16  ;;  %v4766_v16 = vshrl.u32 %v4755_v9, 16  ;;  %v4778_v26 = vshll.u32 %v4769_v17, 16  ;;  %v4781_v30 = vshrl.u32 %v4769_v17, 16  ;;  %v4784_v31 = vld [vmem:[%s4745_s12 + $0x28] sm:$0xff]   ;;  %v4801_v41 = vld [vmem:[%s4745_s12 + $0x30] sm:$0xff]  }
  0x17   : > { %v425_v19 = vrot.slane %v423_v12, 1  ;;  %v430_v20 = vrot.slane %v428_v13, 1  ;;  %v1474_v21 = vrot.slane %v432_v14, 1  ;;  %v1475_v22 = vrot.slane %v428_v13, 2  ;;  %v4819_v50 = vld [vmem:[%s4745_s12 + $0x38] sm:$0xff]   ;;  %v4853_v63 = vld [vmem:[%s4745_s12 + $0x40] sm:$0xff]  }
  0x18   : > { %v1477_v23 = vrot.slane %v4766_v16, 1  ;;  %v1478_v24 = vrot.slane %v4763_v15, 2  ;;  %v438_v25 = vrot.slane %v4763_v15, 1  ;;  %v1482_v33 = vrot.slane %v4778_v26, 2  ;;  %s3546_s19 = sshll.u32 %s5757_s15, 2  ;;  %s5759_s27 = smov (!%p309_p5, %s4721_s27), 127 }
  0x19   : > { %v426_v27 = vor.u32 %v425_v19, %v421_v11  ;;  %v434_v28 = vor.u32 %v432_v14, %v430_v20  ;;  %v1476_v29 = vor.u32 %v1475_v22, %v1474_v21  ;;  %v446_v35 = vrot.slane %v4778_v26, 1  ;;  %s4905_s24 = scalar_lea.vmem %s5721_s1, %s3546_s19  ;;  %s3548_s8 = sshll.u32 %s5759_s27, 3 }
  0x1a   : > { %v1479_v32 = vor.u32 %v1478_v24, %v1477_v23  ;;  %v442_v34 = vor.u32 %v4766_v16, %v438_v25  ;;  %v1481_v39 = vrot.slane %v4781_v30, 1  ;;  %v4798_v40 = vshll.u32 %v4772_v18, 16  ;;  %v4884_v23 = vld [vmem:[%s4745_s12 + $0x48] sm:$0xff]   ;;  %s5253_s11 = scalar_lea.vmem %s5724_s4, %s3548_s8  ;;  %s3550_s14 = sshll.u32 %s5759_s27, 2 }
  0x1b   : > { %v431_v37 = vsel %vm419_vm1, %v426_v27, %v430_v20  ;;  %v439_v38 = vsel %vm419_vm1, %v434_v28, %v438_v25  ;;  %v4807_v44 = vshrl.u32 %v4772_v18, 16  ;;  %v450_v45 = vor.u32 %v4781_v30, %v446_v35  ;;  %s5620_s17 = scalar_lea.vmem %s5725_s5, %s3550_s14  ;;  %s5761_s22 = smov (!%p320_p6, %s4708_s22), 3 }
  0x1c   : > { %4051 = vmatprep.mubr.msk.bf16.mxu1 %vm552_vm3, %v431_v37  ;;  %v1480_v42 = vsel %vm1473_vm2, %v1476_v29, %v1479_v32  ;;  %v447_v43 = vsel %vm419_vm1, %v442_v34, %v446_v35  ;;  %v1483_v46 = vor.u32 %v1482_v33, %v1481_v39  ;;  %v1486_v47 = vrot.slane %v4798_v40, 2  ;;  %s3551_s27 = sshll.u32 %s5761_s22, 3 }
  0x1d   : > { %4187 = vmatprep.mubr.msk.bf16.mxu0 %vm552_vm3, %v1480_v42  ;;  %4052 = vmatmul.mubr.msk.bf16.vlgmr.msra.gmra.mrb[0].mxu1 %vm552_vm3, %v439_v38  ;;  %v454_v48 = vrot.slane %v4798_v40, 1  ;;  %v4816_v49 = vshll.u32 %v4784_v31, 16  ;;  %v1485_v52 = vrot.slane %v4807_v44, 1  ;;  %v4829_v53 = vshrl.u32 %v4784_v31, 16  ;;  %s323_s20 = scalar_lea.vmem %s5726_s6, %s3551_s27 }
  0x1e   : > { %4084 = vmatpush3.bf16.msra.mxu1 %v799_v8  ;;  %4055 = vmatprep.mubr.msk.bf16.mxu1 %vm552_vm3, %v447_v43  ;;  %v4832_v54 = vshll.u32 %v4801_v41, 16  ;;  %v4835_v55 = vshrl.u32 %v4801_v41, 16  ;;  %v1484_v56 = vsel %vm1473_vm2, %v1479_v32, %v1483_v46  ;;  %v4857_v2 = vshll.u32 %v4819_v50, 16 }
  0x1f   : > { %v1490_v57 = vrot.slane %v4816_v49, 2  ;;  %v458_v58 = vor.u32 %v4807_v44, %v454_v48  ;;  %4615 = vmatprep.subr.msk.bf16.mxu1 %vm601_vm0, %v4792_v36  ;;  %4188 = vmatmul.mubr.msk.bf16.vlgmr.msra.gmra.mrb[0].mxu0 %vm552_vm3, %v1484_v56  ;;  %v1487_v59 = vor.u32 %v1486_v47, %v1485_v52  ;;  %v1489_v60 = vrot.slane %v4829_v53, 1  ;;  %v4914_v47 = vld [vmem:[%s4745_s12 + $0x50] sm:$0xff]  }
  0x20   : > { %v462_v61 = vrot.slane %v4816_v49, 1  ;;  %v1493_v62 = vrot.slane %v4835_v55, 1  ;;  %4220 = vmatpush3.bf16.msra.mxu0 %v1880_v10  ;;  %v1494_v0 = vrot.slane %v4832_v54, 2  ;;  %v4860_v4 = vshrl.u32 %v4819_v50, 16 }
  0x21   : > { %v1488_v5 = vsel %vm1473_vm2, %v1483_v46, %v1487_v59  ;;  %v455_v8 = vsel %vm419_vm1, %v450_v45, %v454_v48  ;;  %v1491_v11 = vor.u32 %v1490_v57, %v1489_v60  ;;  %4620 = vmatprep.subr.msk.bf16.mxu0 %vm601_vm0, %v4824_v51  ;;  %v470_v13 = vrot.slane %v4832_v54, 1 }
  0x22   : > { %4191 = vmatprep.mubr.msk.bf16.mxu0 %vm552_vm3, %v1488_v5  ;;  %v463_v10 = vsel %vm419_vm1, %v458_v58, %v462_v61  ;;  %v1495_v12 = vor.u32 %v1494_v0, %v1493_v62  ;;  %v4874_v14 = vshll.u32 %v4853_v63, 16  ;;  %v1497_v20 = vrot.slane %v4860_v4, 1  ;;  %v4922_v58 = vld [vmem:[%s4745_s12 + $0x58] sm:$0xff]  }
  0x23   : > { %v1492_v19 = vsel %vm1473_vm2, %v1487_v59, %v1491_v11  ;;  %v1498_v21 = vrot.slane %v4857_v2, 2  ;;  %v4881_v22 = vshrl.u32 %v4853_v63, 16  ;;  %v466_v25 = vor.u32 %v4829_v53, %v462_v61 }
  0x24   : > { %v1496_v24 = vsel %vm1473_vm2, %v1491_v11, %v1495_v12  ;;  %v1502_v27 = vrot.slane %v4874_v14, 2  ;;  %v474_v28 = vor.u32 %v4835_v55, %v470_v13  ;;  %v478_v29 = vrot.slane %v4857_v2, 1 }
  0x25   : > { %4056 = vmatmul.mubr.msk.bf16.gmra.mrb[4].mxu1 %vm552_vm3, %v455_v8  ;;  %v1501_v32 = vrot.slane %v4881_v22, 1  ;;  %v1499_v33 = vor.u32 %v1498_v21, %v1497_v20  ;;  %v4896_v34 = vshll.u32 %v4884_v23, 16  ;;  %v4899_v35 = vshrl.u32 %v4884_v23, 16 }
  0x26   : > { %4059 = vmatprep.mubr.msk.bf16.mxu1 %vm552_vm3, %v463_v10  ;;  %v471_v37 = vsel %vm419_vm1, %v466_v25, %v470_v13  ;;  %v479_v39 = vsel %vm419_vm1, %v474_v28, %v478_v29  ;;  %v486_v43 = vrot.slane %v4874_v14, 1  ;;  %v482_v52 = vor.u32 %v4860_v4, %v478_v29  ;;  %v4942_v10 = vld [vmem:[%s4745_s12 + $0x60] sm:$0xff]   ;;  %v4954_v25 = vld [vmem:[%s4745_s12 + $0x68] sm:$0xff]  }
  0x27   : > { %4192 = vmatmul.mubr.msk.bf16.gmra.mrb[4].mxu0 %vm552_vm3, %v1492_v19  ;;  %v1503_v38 = vor.u32 %v1502_v27, %v1501_v32  ;;  %v1500_v42 = vsel %vm1473_vm2, %v1495_v12, %v1499_v33  ;;  %v1505_v45 = vrot.slane %v4899_v35, 1  ;;  %v1506_v46 = vrot.slane %v4896_v34, 2 }
  0x28   : > { %4195 = vmatprep.mubr.msk.bf16.mxu0 %vm552_vm3, %v1496_v24  ;;  %v490_v56 = vor.u32 %v4881_v22, %v486_v43  ;;  %v494_v57 = vrot.slane %v4896_v34, 1  ;;  %v4929_v60 = vshll.u32 %v4914_v47, 16  ;;  %v487_v61 = vsel %vm419_vm1, %v482_v52, %v486_v43  ;;  %v4976_v43 = vld [vmem:[%s4745_s12 + $0x70] sm:$0xff]   ;;  %v389_v52 = vld [vmem:[%s4905_s24] sm:$0xf] }
  0x29   : > { %v1504_v48 = vsel %vm1473_vm2, %v1499_v33, %v1503_v38  ;;  %v4926_v59 = vor.u32 %v1506_v46, %v1505_v45  ;;  %v1798_v62 = vrot.slane %v4751_v7, 2  ;;  %v1799_v0 = vrot.slane %v4755_v9, 2 }
  0x2a   : > { %v495_v5 = vsel %vm419_vm1, %v490_v56, %v494_v57  ;;  %v4936_v8 = vshrl.u32 %v4914_v47, 16  ;;  %v4939_v11 = vshll.u32 %v4922_v58, 16  ;;  %v502_v13 = vrot.slane %v4929_v60, 1  ;;  %v392_v56 = vld [vmem:[%s4905_s24 + $0xc] sm:$0xf] }
  0x2b   : > { %5742 = vst [vmem:[#allocation3_spill] sm:$0xff] %v4926_v59  ;;  %v1508_v12 = vsel %vm1473_vm2, %v1503_v38, %v4926_v59  ;;  %v1800_v19 = vsel %vm1797_vm4, %v1798_v62, %v1799_v0  ;;  %v498_v20 = vor.u32 %v4899_v35, %v494_v57  ;;  %v4958_v27 = vshrl.u32 %v4922_v58, 16 }
  0x2c   : > { %5743 = vst [vmem:[#allocation4_spill] sm:$0xff] %v4939_v11  ;;  %v506_v21 = vor.u32 %v4936_v8, %v502_v13  ;;  %v510_v24 = vrot.slane %v4939_v11, 1  ;;  %v4961_v28 = vshll.u32 %v4942_v10, 16  ;;  %v1801_v29 = vrot.slane %v4769_v17, 2 }
  0x2d   : > { %4060 = vmatmul.mubr.msk.bf16.gmra.mrb[8].mxu1 %vm552_vm3, %v471_v37  ;;  %v503_v32 = vsel %vm419_vm1, %v498_v20, %v502_v13  ;;  %v1803_v33 = vrot.slane %v4772_v18, 2  ;;  %v390_v37 = vld [vmem:[%s4905_s24 + $0x4] sm:$0xf]  ;;  %v2092_v62 = vsel %vm601_vm0, %v4824_v51, 0  ;;  %v4999_v13 = vld [vmem:[%s4905_s24 + $0x8] sm:$0xf] }
  0x2e   : > { %4063 = vmatprep.mubr.msk.bf16.mxu1 %vm552_vm3, %v479_v39  ;;  %5744 = vst [vmem:[#allocation5_spill] sm:$0xff] %v4961_v28  ;;  %v511_v38 = vsel %vm419_vm1, %v506_v21, %v510_v24  ;;  %v4970_v39 = vshrl.u32 %v4942_v10, 16  ;;  %v514_v45 = vor.u32 %v4958_v27, %v510_v24  ;;  %v518_v46 = vrot.slane %v4961_v28, 1  ;;  %v5007_v21 = vld [vmem:[%s5722_s2 + $0xe] sm:$0x3] }
  0x2f   : > { %4196 = vmatmul.mubr.msk.bf16.gmra.mrb[8].mxu0 %vm552_vm3, %v1500_v42  ;;  %v4973_v42 = vshll.u32 %v4954_v25, 16  ;;  %v4985_v57 = vsel %vm1797_vm4, %v1799_v0, %v1801_v29  ;;  %v1807_v0 = vrot.slane %v4801_v41, 2  ;;  %v5010_v51 = vcombine.low %v4999_v13, %v392_v56 }
  0x30   : > { %4199 = vmatprep.mubr.msk.bf16.mxu0 %vm552_vm3, %v1504_v48  ;;  %5745 = vst [vmem:[#allocation6_spill] sm:$0xff] %v4970_v39  ;;  %v1805_v48 = vrot.slane %v4784_v31, 2  ;;  %v519_v24 = vsel %vm419_vm1, %v514_v45, %v518_v46  ;;  %v2290_v45 = vrot.slane %v4766_v16, 2  ;;  %v2301_v11 = vrot.slane %v4829_v53, 2 }
  0x31   : > { %5746 = vst [vmem:[#allocation7_spill] sm:$0xff] %v4973_v42  ;;  %v526_v20 = vrot.slane %v4973_v42, 1  ;;  %v5739_v56 = vrot.slane %v5010_v51, 2  ;;  %v1809_v53 = vrot.slane %v4819_v50, 2 }
  0x32   : > { %v5050_v42 = vsel %vm1797_vm4, %v1805_v48, %v1807_v0 }
  0x35   : > { %4064 = vmatmul.mubr.msk.bf16.gmra.mrb[12].mxu1 %vm552_vm3, %v487_v61  ;;  %v4987_v61 = vcombine.low %v389_v52, %v390_v37  ;;  %v5022_v37 = vshll.u32 %v4976_v43, 16 }
  0x36   : > { %4067 = vmatprep.mubr.msk.bf16.mxu1 %vm552_vm3, %v495_v5  ;;  %v4993_v5 = vsel %vm1797_vm4, %v1801_v29, %v1803_v33  ;;  %v5016_v29 = vsel %vm1797_vm4, %v1803_v33, %v1805_v48  ;;  %v2291_v33 = vrot.slane %v4763_v15, 3 }
  0x37   : > { %4200 = vmatmul.mubr.msk.bf16.gmra.mrb[12].mxu0 %vm552_vm3, %v1508_v12  ;;  %5747 = vst [vmem:[#allocation8_spill] sm:$0xff] %v4987_v61  ;;  %v4996_v12 = vld [vmem:[%s4745_s12 + $0x78] sm:$0xff]  }
  0x38   : > { %4221 = vmatprep.mubr.msk.bf16.mxu0 %vm552_vm3, %v1800_v19  ;;  %v522_v19 = vor.u32 %v4970_v39, %v518_v46  ;;  %v5033_v46 = vshrl.u32 %v4976_v43, 16  ;;  %v5036_v59 = vshll.u32 %v4996_v12, 16  ;;  %v2292_v16 = vor.u32 %v2291_v33, %v2290_v45 }
  0x39   : > { %v2297_v39 = vrot.slane %v4807_v44, 2  ;;  %v5060_v45 = vcombine.low %v389_v52, %v389_v52  ;;  %v2306_v33 = vrot.slane %v4832_v54, 3  ;;  %v1811_v52 = vrot.slane %v4853_v63, 2 }
  0x3a   : > { %v527_v3 = vsel %vm419_vm1, %v522_v19, %v526_v20  ;;  %v534_v19 = vrot.slane %v5022_v37, 1 }
  0x3d   : > { %4068 = vmatmul.mubr.msk.bf16.gmra.mrb[16].mxu1 %vm552_vm3, %v503_v32  ;;  %v5019_v32 = vshrl.u32 %v4954_v25, 16 }
  0x3e   : > { %4071 = vmatprep.mubr.msk.bf16.mxu1 %vm552_vm3, %v511_v38  ;;  %v5027_v38 = vrot.slane %v4987_v61, 2  ;;  %v2294_v61 = vrot.slane %v4778_v26, 3 }
  0x3f   : > { %4222 = vmatmul.mubr.msk.bf16.vlgmr.msra.gmra.mrb[0].mxu0 %vm552_vm3, %v4985_v57  ;;  %v530_v26 = vor.u32 %v5019_v32, %v526_v20  ;;  %v542_v20 = vrot.slane %v5036_v59, 1 }
  0x40   : > { %4254 = vmatpush3.bf16.msra.mxu0 %v2092_v62  ;;  %4225 = vmatprep.mubr.msk.bf16.mxu0 %vm552_vm3, %v4993_v5  ;;  %v2293_v62 = vrot.slane %v4781_v30, 2  ;;  %v5047_v15 = vsel %vm1797_vm4, %v5027_v38, %v5739_v56  ;;  %v2298_v30 = vrot.slane %v4798_v40, 3  ;;  %v2302_v56 = vrot.slane %v4816_v49, 3 }
  0x41   : > { %4621 = vmatprep.subr.msk.bf16.mxu0 %vm601_vm0, %v5007_v21  ;;  %v2305_v40 = vrot.slane %v4835_v55, 2  ;;  %v2309_v49 = vrot.slane %v4860_v4, 2  ;;  %v535_v54 = vsel %vm419_vm1, %v530_v26, %v534_v19  ;;  %v548_v4 = vshll.u32 %v5060_v45, 16 }
  0x42   : > { %v2295_v28 = vor.u32 %v2294_v61, %v2293_v62  ;;  %v2299_v44 = vor.u32 %v2298_v30, %v2297_v39  ;;  %v538_v61 = vor.u32 %v5033_v46, %v534_v19  ;;  %v2313_v30 = vrot.slane %v4881_v22, 2 }
  0x43   : > { %v2307_v39 = vor.u32 %v2306_v33, %v2305_v40  ;;  %v5103_v19 = vsel %vm1797_vm4, %v1809_v53, %v1811_v52  ;;  %v2317_v22 = vrot.slane %v4899_v35, 2  ;;  %v1813_v33 = vrot.slane %v4884_v23, 2 }
  0x44   : > { %v5063_v48 = vsel %vm2289_vm5, %v2292_v16, %v2295_v28 }
  0x45   : > { %4072 = vmatmul.mubr.msk.bf16.gmra.mrb[20].mxu1 %vm552_vm3, %v519_v24  ;;  %v2303_v24 = vor.u32 %v2302_v56, %v2301_v11  ;;  %v2310_v11 = vrot.slane %v4857_v2, 3  ;;  %v543_v56 = vsel %vm419_vm1, %v538_v61, %v542_v20  ;;  %v5096_v2 = vsel %vm1797_vm4, %v1807_v0, %v1809_v53 }
  0x46   : > { %4075 = vmatprep.mubr.msk.bf16.mxu1 %vm552_vm3, %v527_v3  ;;  %v5072_v3 = vsel %vm2289_vm5, %v2295_v28, %v2299_v44  ;;  %v5085_v28 = vshrl.u32 %v4996_v12, 16  ;;  %v550_v61 = vrot.slane %v548_v4, 1  ;;  %v2318_v0 = vrot.slane %v4896_v34, 3 }
  0x47   : > { %4226 = vmatmul.mubr.msk.bf16.gmra.mrb[4].mxu0 %vm552_vm3, %v5016_v29  ;;  %v5079_v55 = vsel %vm2289_vm5, %v2299_v44, %v2303_v24  ;;  %v5090_v62 = vsel %vm2289_vm5, %v2303_v24, %v2307_v39  ;;  %v2311_v16 = vor.u32 %v2310_v11, %v2309_v49  ;;  %v2314_v44 = vrot.slane %v4874_v14, 3 }
  0x48   : > { %4229 = vmatprep.mubr.msk.bf16.mxu0 %vm552_vm3, %v5050_v42  ;;  %v546_v40 = vor.u32 %v5085_v28, %v542_v20  ;;  %v1815_v20 = vrot.slane %v4914_v47, 2  ;;  %v5118_v53 = vor.u32 %v2318_v0, %v2317_v22  ;;  %v1814_v35 = vsel %vm1797_vm4, %v1811_v52, %v1813_v33  ;;  %v5141_v52 = vld [vmem:[%s5722_s2 + $0x6] sm:$0x3] }
  0x49   : > { %v5099_v26 = vsel %vm2289_vm5, %v2307_v39, %v2311_v16  ;;  %v2315_v24 = vor.u32 %v2314_v44, %v2313_v30  ;;  %v1817_v11 = vrot.slane %v4922_v58, 2  ;;  %v1064_v4 = vsel %vm601_vm0, %v4792_v36, 0 }
  0x4a   : > { %v551_v49 = vsel %vm419_vm1, %v546_v40, %v550_v61  ;;  %v5129_v34 = vsel %vm1797_vm4, %v1813_v33, %v1815_v20  ;;  %v1821_v36 = vrot.slane %v4954_v25, 2  ;;  %v1823_v30 = vrot.slane %v4976_v43, 2 }
  0x4b   : > { %v5109_v14 = vsel %vm2289_vm5, %v2311_v16, %v2315_v24  ;;  %v5122_v39 = vsel %vm2289_vm5, %v2315_v24, %v5118_v53  ;;  %v1825_v61 = vrot.slane %v4996_v12, 2  ;;  %v5180_v22 = vcombine.low %v4999_v13, %v4999_v13 }
  0x4c   : > { %v5166_v40 = vsel %vm1797_vm4, %v1821_v36, %v1823_v30 }
  0x4d   : > { %4076 = vmatmul.mubr.msk.bf16.gmra.mrb[24].mxu1 %vm552_vm3, %v535_v54  ;;  %v1819_v54 = vrot.slane %v4942_v10, 2  ;;  %v5176_v24 = vsel %vm1797_vm4, %v1823_v30, %v1825_v61  ;;  %v5186_v0 = vsel %vm1797_vm4, %v1825_v61, %v5027_v38  ;;  %v1829_v33 = vrot.slane %v5180_v22, 2  ;;  %v2938_v30 = vld [vmem:[%s5253_s11 + $0x40] sm:$0xff]  ;;  %v2939_v61 = vld [vmem:[%s5253_s11 + $0x48] sm:$0xff] }
  0x4e   : > { %4079 = vmatprep.mubr.msk.bf16.mxu1 %vm552_vm3, %v543_v56  ;;  %v1818_v56 = vsel %vm1797_vm4, %v1815_v20, %v1817_v11  ;;  %v2931_v20 = vld [vmem:[%s5253_s11 + $0x8] sm:$0xff] }
  0x4f   : > { %4230 = vmatmul.mubr.msk.bf16.gmra.mrb[8].mxu0 %vm552_vm3, %v5096_v2  ;;  %v5149_v16 = vsel %vm1797_vm4, %v1817_v11, %v1819_v54  ;;  %v5161_v44 = vsel %vm1797_vm4, %v1819_v54, %v1821_v36  ;;  %v1830_v13 = vsel %vm1797_vm4, %v5027_v38, %v1829_v33  ;;  %v5211_v38 = vld [vmem:[%s5722_s2 + $0x10] sm:$0x3]  ;;  %v2933_v11 = vld [vmem:[%s5253_s11 + $0x18] sm:$0xff]  ;;  %v2934_v54 = vld [vmem:[%s5253_s11 + $0x20] sm:$0xff] }
  0x50   : > { %4233 = vmatprep.mubr.msk.bf16.mxu0 %vm552_vm3, %v5103_v19  ;;  %v2937_v36 = vld [vmem:[%s5253_s11 + $0x38] sm:$0xff] }
  0x55   : > { %4080 = vmatmul.mubr.msk.bf16.gmra.mrb[28].mxu1 %vm552_vm3, %v551_v49  ;;  %v2416_v49 = vsel %vm601_vm0, %v5007_v21, 0  ;;  %v985_v21 = vrot.slane %v4755_v9, 1 }
  0x56   : > { %4085 = vmatprep.mubr.msk.bf16.mxu1 %vm552_vm3, %v4748_v6 }
  0x57   : > { %4234 = vmatmul.mubr.msk.bf16.gmra.mrb[12].mxu0 %vm552_vm3, %v1814_v35 }
  0x58   : > { %4237 = vmatprep.mubr.msk.bf16.mxu0 %vm552_vm3, %v5129_v34 }
  0x5d   : > { %4086 = vmatmul.mubr.msk.bf16.vlgmr.msra.gmra.mrb[0].mxu1 %vm552_vm3, %v4751_v7 }
  0x5e   : > { %4118 = vmatpush3.bf16.msra.mxu1 %v1064_v4  ;;  %4089 = vmatprep.mubr.msk.bf16.mxu1 %vm552_vm3, %v4755_v9 }
  0x5f   : > { %4616 = vmatprep.subr.msk.bf16.mxu1 %vm601_vm0, %v5141_v52  ;;  %4238 = vmatmul.mubr.msk.bf16.gmra.mrb[16].mxu0 %vm552_vm3, %v1818_v56 }
  0x60   : > { %4241 = vmatprep.mubr.msk.bf16.mxu0 %vm552_vm3, %v5149_v16 }
  0x65   : > { %4090 = vmatmul.mubr.msk.bf16.gmra.mrb[4].mxu1 %vm552_vm3, %v4769_v17 }
  0x66   : > { %4093 = vmatprep.mubr.msk.bf16.mxu1 %vm552_vm3, %v4772_v18 }
  0x67   : > { %4242 = vmatmul.mubr.msk.bf16.gmra.mrb[20].mxu0 %vm552_vm3, %v5161_v44 }
  0x68   : > { %4245 = vmatprep.mubr.msk.bf16.mxu0 %vm552_vm3, %v5166_v40 }
  0x6d   : > { %4094 = vmatmul.mubr.msk.bf16.gmra.mrb[8].mxu1 %vm552_vm3, %v4784_v31 }
  0x6e   : > { %4097 = vmatprep.mubr.msk.bf16.mxu1 %vm552_vm3, %v4801_v41 }
  0x6f   : > { %4246 = vmatmul.mubr.msk.bf16.gmra.mrb[24].mxu0 %vm552_vm3, %v5176_v24 }
  0x70   : > { %4249 = vmatprep.mubr.msk.bf16.mxu0 %vm552_vm3, %v5186_v0 }
  0x75   : > { %4098 = vmatmul.mubr.msk.bf16.gmra.mrb[12].mxu1 %vm552_vm3, %v4819_v50 }
  0x76   : > { %4101 = vmatprep.mubr.msk.bf16.mxu1 %vm552_vm3, %v4853_v63 }
  0x77   : > { %4250 = vmatmul.mubr.msk.bf16.gmra.mrb[28].mxu0 %vm552_vm3, %v1830_v13  ;;  %v2940_v13 = vld [vmem:[%s5253_s11 + $0x50] sm:$0xff] }
  0x78   : > { %4255 = vmatprep.mubr.msk.bf16.mxu0 %vm552_vm3, %v4985_v57  ;;  %v982_v57 = vrot.slane %v4748_v6, 1  ;;  %v987_v6 = vrot.slane %v4769_v17, 1  ;;  %v2930_v17 = vld [vmem:[%s5253_s11] sm:$0xff] }
  0x7d   : > { %4102 = vmatmul.mubr.msk.bf16.gmra.mrb[16].mxu1 %vm552_vm3, %v4884_v23 }
  0x7e   : > { %4105 = vmatprep.mubr.msk.bf16.mxu1 %vm552_vm3, %v4914_v47 }
  0x7f   : > { %4256 = vmatmul.mubr.msk.bf16.vlgmr.msra.gmra.mrb[0].mxu0 %vm552_vm3, %v4993_v5  ;;  %v983_v5 = vrot.slane %v4751_v7, 1  ;;  %v4666_v7 = vmov 0  }
  0x80   : > { %4288 = vmatpush3.bf16.msra.mxu0 %v2416_v49  ;;  %4259 = vmatprep.mubr.msk.bf16.mxu0 %vm552_vm3, %v5016_v29  ;;  %v2932_v29 = vld [vmem:[%s5253_s11 + $0x10] sm:$0xff]  ;;  %v999_v49 = vrot.slane %v4884_v23, 1 }
  0x81   : > { %4622 = vmatprep.subr.msk.bf16.mxu0 %vm601_vm0, %v5211_v38  ;;  %4632 = vset.pattern.permute.xlu0 %v4666_v7  ;;  %v5256_v9 = vsel %vm981_vm6, %v983_v5, %v985_v21 }
  0x82   : > { %4633 = vset.pattern.permute.xlu1 %v4666_v7  ;;  %2964 = vperm.xlu0 %4632, %v2930_v17  }
  0x83   : > { %2974 = vperm.xlu1 %4633, %v2932_v29   ;;  %v1001_v29 = vrot.slane %v4914_v47, 1 }
  0x85   : > { %4106 = vmatmul.mubr.msk.bf16.gmra.mrb[20].mxu1 %vm552_vm3, %v4922_v58 }
  0x86   : > { %4109 = vmatprep.mubr.msk.bf16.mxu1 %vm552_vm3, %v4942_v10  ;;  %2969 = vperm.xlu0 %4632, %v2931_v20   ;;  %v2945_v20 = vld [vmem:[%s5253_s11 + $0x78] sm:$0xff] }
  0x87   : > { %4260 = vmatmul.mubr.msk.bf16.gmra.mrb[4].mxu0 %vm552_vm3, %v5050_v42  ;;  %v984_v42 = vsel %vm981_vm6, %v982_v57, %v983_v5  ;;  %2979 = vperm.xlu1 %4633, %v2933_v11   ;;  %v2941_v57 = vld [vmem:[%s5253_s11 + $0x58] sm:$0xff]  ;;  %v2942_v5 = vld [vmem:[%s5253_s11 + $0x60] sm:$0xff]  ;;  %v2947_v11 = vld [vmem:[%s5253_s11 + $0x88] sm:$0xff] }
  0x88   : > { %4263 = vmatprep.mubr.msk.bf16.mxu0 %vm552_vm3, %v5096_v2  ;;  %v1276_v2 = vsel %vm601_vm0, %v5141_v52, 0 }
  0x8a   : > { %2984 = vperm.xlu0 %4632, %v2934_v54  }
  0x8d   : > { %4110 = vmatmul.mubr.msk.bf16.gmra.mrb[24].mxu1 %vm552_vm3, %v4954_v25 }
  0x8e   : > { %4113 = vmatprep.mubr.msk.bf16.mxu1 %vm552_vm3, %v4976_v43 }
  0x8f   : > { %4264 = vmatmul.mubr.msk.bf16.gmra.mrb[8].mxu0 %vm552_vm3, %v5103_v19  ;;  %v5263_v19 = vsel %vm981_vm6, %v985_v21, %v987_v6 }
  0x90   : > { %4267 = vmatprep.mubr.msk.bf16.mxu0 %vm552_vm3, %v1814_v35  ;;  %v989_v35 = vrot.slane %v4772_v18, 1  ;;  %v2935_v18 = vld [vmem:[%s5253_s11 + $0x28] sm:$0xff] }
  0x91   : > { %2989 = vperm.xlu1 %4633, %v2935_v18   ;;  %v2948_v18 = vld [vmem:[%s5253_s11 + $0x90] sm:$0xff] }
  0x92   : > { %v5281_v4 = vsel %vm981_vm6, %v987_v6, %v989_v35  ;;  %v2943_v6 = vld [vmem:[%s5253_s11 + $0x68] sm:$0xff] }
  0x95   : > { %4114 = vmatmul.mubr.msk.bf16.gmra.mrb[28].mxu1 %vm552_vm3, %v4996_v12  ;;  %2999 = vperm.xlu1 %4633, %v2937_v36   ;;  %v2950_v36 = vld [vmem:[%s5253_s11 + $0xa0] sm:$0xff] }
  0x96   : > { %4119 = vmatprep.mubr.msk.bf16.mxu1 %vm552_vm3, %v984_v42 }
  0x97   : > { %4268 = vmatmul.mubr.msk.bf16.gmra.mrb[12].mxu0 %vm552_vm3, %v5129_v34  ;;  %v991_v34 = vrot.slane %v4784_v31, 1 }
  0x98   : > { %4271 = vmatprep.mubr.msk.bf16.mxu0 %vm552_vm3, %v1818_v56  ;;  %v993_v56 = vrot.slane %v4801_v41, 1 }
  0x99   : > { %v5285_v52 = vsel %vm981_vm6, %v989_v35, %v991_v34  ;;  %3009 = vperm.xlu1 %4633, %v2939_v61   ;;  %v2946_v35 = vld [vmem:[%s5253_s11 + $0x80] sm:$0xff]  ;;  %v2951_v61 = vld [vmem:[%s5253_s11 + $0xa8] sm:$0xff] }
  0x9d   : > { %4120 = vmatmul.mubr.msk.bf16.vlgmr.msra.gmra.mrb[0].mxu1 %vm552_vm3, %v5256_v9  ;;  %3019 = vperm.xlu1 %4633, %v2941_v57  }
  0x9e   : > { %4152 = vmatpush3.bf16.msra.mxu1 %v1276_v2  ;;  %4123 = vmatprep.mubr.msk.bf16.mxu1 %vm552_vm3, %v5263_v19  ;;  %v1003_v2 = vrot.slane %v4922_v58, 1 }
  0x9f   : > { %4618 = vmatprep.subr.msk.bf16.mxu1 %vm601_vm0, %v4718_v1  ;;  %4272 = vmatmul.mubr.msk.bf16.gmra.mrb[16].mxu0 %vm552_vm3, %v5149_v16  ;;  %v2936_v1 = vld [vmem:[%s5253_s11 + $0x30] sm:$0xff]  ;;  %v995_v16 = vrot.slane %v4819_v50, 1 }
  0xa0   : > { %4275 = vmatprep.mubr.msk.bf16.mxu0 %vm552_vm3, %v5161_v44  ;;  %2994 = vperm.xlu0 %4632, %v2936_v1   ;;  %v5301_v44 = vsel %vm981_vm6, %v991_v34, %v993_v56  ;;  %v5347_v34 = vsel %vm981_vm6, %v999_v49, %v1001_v29  ;;  %v5351_v54 = vsel %vm981_vm6, %v1001_v29, %v1003_v2  ;;  %v1005_v1 = vrot.slane %v4942_v10, 1 }
  0xa1   : > { %v5305_v33 = vsel %vm981_vm6, %v993_v56, %v995_v16  ;;  %3029 = vperm.xlu1 %4633, %v2943_v6   ;;  %v1007_v56 = vrot.slane %v4954_v25, 1  ;;  %v2956_v6 = vld [vmem:[%s5253_s11 + $0xd0] sm:$0xff] }
  0xa4   : > { %3004 = vperm.xlu0 %4632, %v2938_v30   ;;  %v5372_v30 = vsel %vm981_vm6, %v1005_v1, %v1007_v56 }
  0xa5   : > { %4124 = vmatmul.mubr.msk.bf16.gmra.mrb[4].mxu1 %vm552_vm3, %v5281_v4  ;;  %3039 = vperm.xlu1 %4633, %v2945_v20   ;;  %v2958_v20 = vld [vmem:[%s5253_s11 + $0xe0] sm:$0xff] }
  0xa6   : > { %4127 = vmatprep.mubr.msk.bf16.mxu1 %vm552_vm3, %v5285_v52 }
  0xa7   : > { %4276 = vmatmul.mubr.msk.bf16.gmra.mrb[20].mxu0 %vm552_vm3, %v5166_v40  ;;  %v5311_v40 = vld [vmem:[%s4905_s24 + $0x10] ss:$0 sps:$4 sm:$0xff]  }
  0xa8   : > { %4279 = vmatprep.mubr.msk.bf16.mxu0 %vm552_vm3, %v5176_v24  ;;  %v997_v24 = vrot.slane %v4853_v63, 1  ;;  %3014 = vperm.xlu0 %4632, %v2940_v13   ;;  %v2083_v42 = vrot.slane %v5311_v40, 2  ;;  %v2952_v13 = vld [vmem:[%s5253_s11 + $0xb0] sm:$0xff] }
  0xa9   : > { %3049 = vperm.xlu1 %4633, %v2947_v11  }
  0xaa   : > { %v5325_v21 = vsel %vm981_vm6, %v995_v16, %v997_v24  ;;  %v5329_v7 = vsel %vm981_vm6, %v997_v24, %v999_v49  ;;  %v2949_v16 = vld [vmem:[%s5253_s11 + $0x98] sm:$0xff]  ;;  %v2954_v49 = vld [vmem:[%s5253_s11 + $0xc0] sm:$0xff] }
  0xab   : > { %v2953_v24 = vld [vmem:[%s5253_s11 + $0xb8] sm:$0xff] }
  0xac   : > { %3024 = vperm.xlu0 %4632, %v2942_v5  }
  0xad   : > { %4128 = vmatmul.mubr.msk.bf16.gmra.mrb[8].mxu1 %vm552_vm3, %v5301_v44  ;;  %3059 = vperm.xlu1 %4633, %v2949_v16   ;;  %v5751_v16 = vld [vmem:[#allocation5_spill] sm:$0xff] }
  0xae   : > { %4131 = vmatprep.mubr.msk.bf16.mxu1 %vm552_vm3, %v5305_v33 }
  0xaf   : > { %4280 = vmatmul.mubr.msk.bf16.gmra.mrb[24].mxu0 %vm552_vm3, %v5186_v0  ;;  %v2944_v0 = vld [vmem:[%s5253_s11 + $0x70] sm:$0xff] }
  0xb0   : > { %4283 = vmatprep.mubr.msk.bf16.mxu0 %vm552_vm3, %v5047_v15  ;;  %v5748_v15 = vrot.slane %v5010_v51, 2  ;;  %3034 = vperm.xlu0 %4632, %v2944_v0   ;;  %v1013_v0 = vrot.slane %v5060_v45, 1 }
  0xb1   : > { %3069 = vperm.xlu1 %4633, %v2951_v61   ;;  %v2333_v61 = vrot.slane %v5019_v32, 2 }
  0xb2   : > { %v2084_v17 = vsel %vm1797_vm4, %v5748_v15, %v2083_v42  ;;  %v2955_v42 = vld [vmem:[%s5253_s11 + $0xc8] sm:$0xff]  ;;  %v2325_v15 = vrot.slane %v4958_v27, 2 }
  0xb4   : > { %3044 = vperm.xlu0 %4632, %v2946_v35  }
  0xb5   : > { %4132 = vmatmul.mubr.msk.bf16.gmra.mrb[12].mxu1 %vm552_vm3, %v5325_v21  ;;  %3079 = vperm.xlu1 %4633, %v2953_v24   ;;  %v2961_v24 = vld [vmem:[%s5253_s11 + $0xf8] sm:$0xff] }
  0xb6   : > { %4135 = vmatprep.mubr.msk.bf16.mxu1 %vm552_vm3, %v5329_v7 }
  0xb7   : > { %4284 = vmatmul.mubr.msk.bf16.gmra.mrb[28].mxu0 %vm552_vm3, %v2084_v17  ;;  %v5749_v17 = vld [vmem:[#allocation4_spill] sm:$0xff] }
  0xb8   : > { %4289 = vmatprep.mubr.msk.bf16.mxu0 %vm552_vm3, %v5063_v48  ;;  %v2696_v48 = vsel %vm601_vm0, %v5211_v38, 0  ;;  %3054 = vperm.xlu0 %4632, %v2948_v18   ;;  %v5369_v38 = vsel %vm981_vm6, %v1003_v2, %v1005_v1  ;;  %v2326_v29 = vrot.slane %v5749_v17, 3  ;;  %v2957_v2 = vld [vmem:[%s5253_s11 + $0xd8] sm:$0xff]  ;;  %v2959_v18 = vld [vmem:[%s5253_s11 + $0xe8] sm:$0xff] }
  0xb9   : > { %3089 = vperm.xlu1 %4633, %v2955_v42   ;;  %v2337_v42 = vrot.slane %v5033_v46, 2 }
  0xba   : > { %v2327_v45 = vor.u32 %v2326_v29, %v2325_v15  ;;  %v2342_v15 = vrot.slane %v5036_v59, 3  ;;  %v5754_v29 = vld [vmem:[#allocation8_spill] sm:$0xff] }
  0xbc   : > { %3064 = vperm.xlu0 %4632, %v2950_v36   ;;  %v2330_v36 = vrot.slane %v5751_v16, 3 }
  0xbd   : > { %4136 = vmatmul.mubr.msk.bf16.gmra.mrb[16].mxu1 %vm552_vm3, %v5347_v34  ;;  %3099 = vperm.xlu1 %4633, %v2957_v2   ;;  %v1534_v2 = vshrl.u32 %v5754_v29, 16 }
  0xbe   : > { %4139 = vmatprep.mubr.msk.bf16.mxu1 %vm552_vm3, %v5351_v54 }
  0xbf   : > { %4290 = vmatmul.mubr.msk.bf16.vlgmr.msra.gmra.mrb[0].mxu0 %vm552_vm3, %v5072_v3  ;;  %v1009_v3 = vrot.slane %v4976_v43, 1 }
  0xc0   : > { %4322 = vmatpush3.bf16.msra.mxu0 %v2696_v48  ;;  %4293 = vmatprep.mubr.msk.bf16.mxu0 %vm552_vm3, %v5079_v55  ;;  %v5382_v55 = vrot.slane %v4996_v12, 1  ;;  %v2960_v48 = vld [vmem:[%s5253_s11 + $0xf0] sm:$0xff] }
  0xc1   : > { %3074 = vperm.xlu0 %4632, %v2952_v13   ;;  %v5391_v57 = vsel %vm981_vm6, %v1007_v56, %v1009_v3  ;;  %v5752_v13 = vld [vmem:[#allocation7_spill] sm:$0xff]  ;;  %3109 = vperm.xlu1 %4633, %v2959_v18   ;;  %v2345_v18 = vrot.slane %v1534_v2, 2 }
  0xc2   : > { %v5395_v5 = vsel %vm981_vm6, %v1009_v3, %v5382_v55  ;;  %v1014_v11 = vsel %vm981_vm6, %v5382_v55, %v1013_v0  ;;  %v2334_v3 = vrot.slane %v5752_v13, 3  ;;  %v2341_v0 = vrot.slane %v5085_v28, 2 }
  0xc5   : > { %4140 = vmatmul.mubr.msk.bf16.gmra.mrb[20].mxu1 %vm552_vm3, %v5369_v38  ;;  %3084 = vperm.xlu0 %4632, %v2954_v49   ;;  %v2335_v49 = vor.u32 %v2334_v3, %v2333_v61  ;;  %v2362_v61 = vshll.u32 %v5311_v40, 16 }
  0xc6   : > { %4143 = vmatprep.mubr.msk.bf16.mxu1 %vm552_vm3, %v5372_v30  ;;  %3119 = vperm.xlu1 %4633, %v2961_v24  }
  0xc7   : > { %4294 = vmatmul.mubr.msk.bf16.gmra.mrb[4].mxu0 %vm552_vm3, %v5090_v62  ;;  %v2321_v62 = vrot.slane %v4936_v8, 2 }
  0xc8   : > { %4297 = vmatprep.mubr.msk.bf16.mxu0 %vm552_vm3, %v5099_v26  ;;  %v2322_v26 = vrot.slane %v4929_v60, 3 }
  0xc9   : > { %3094 = vperm.xlu0 %4632, %v2956_v6   ;;  %v2338_v6 = vrot.slane %v5022_v37, 3 }
  0xca   : > { %v2323_v35 = vor.u32 %v2322_v26, %v2321_v62  ;;  %v5753_v62 = vld [vmem:[#allocation2_spill] sm:$0xff] }
  0xcc   : > { %v2324_v1 = vsel %vm2289_vm5, %v5118_v53, %v2323_v35 }
  0xcd   : > { %4144 = vmatmul.mubr.msk.bf16.gmra.mrb[24].mxu1 %vm552_vm3, %v5391_v57  ;;  %3104 = vperm.xlu0 %4632, %v2958_v20   ;;  %v1537_v20 = vshll.u32 %v5754_v29, 16 }
  0xce   : > { %4147 = vmatprep.mubr.msk.bf16.mxu1 %vm552_vm3, %v5395_v5 }
  0xcf   : > { %4298 = vmatmul.mubr.msk.bf16.gmra.mrb[8].mxu0 %vm552_vm3, %v5109_v14  ;;  %v5750_v14 = vld [vmem:[#allocation6_spill] sm:$0xff] }
  0xd0   : > { %4301 = vmatprep.mubr.msk.bf16.mxu0 %vm552_vm3, %v5122_v39  ;;  %v2329_v56 = vrot.slane %v5750_v14, 2  ;;  %v2328_v39 = vsel %vm2289_vm5, %v2323_v35, %v2327_v45  ;;  %v2343_v35 = vor.u32 %v2342_v15, %v2341_v0  ;;  %v4657_v0 = vld [vmem:[%s4745_s12 + $0x20] sm:$0xff]  }
  0xd1   : > { %3114 = vperm.xlu0 %4632, %v2960_v48   ;;  %v2346_v48 = vrot.slane %v1537_v20, 3  ;;  %v2617_v15 = vrot.slane %v4657_v0, 3  ;;  %v2643_v0 = vrot.slane %v5010_v51, 3 }
  0xd2   : > { %v2331_v53 = vor.u32 %v2330_v36, %v2329_v56 }
  0xd4   : > { %v2336_v26 = vsel %vm2289_vm5, %v2331_v53, %v2335_v49 }
  0xd5   : > { %4148 = vmatmul.mubr.msk.bf16.gmra.mrb[28].mxu1 %vm552_vm3, %v1014_v11  ;;  %v2350_v11 = vshrl.u32 %v5010_v51, 16 }
  0xd6   : > { %4153 = vmatprep.mubr.msk.bf16.mxu1 %vm552_vm3, %v5256_v9  ;;  %v2332_v9 = vsel %vm2289_vm5, %v2327_v45, %v2331_v53  ;;  %v2364_v53 = vrot.slane %v2362_v61, 3 }
  0xd7   : > { %4302 = vmatmul.mubr.msk.bf16.gmra.mrb[12].mxu0 %vm552_vm3, %v2324_v1  ;;  %v2352_v56 = vrot.slane %v2350_v11, 2  ;;  %v2623_v11 = vrot.slane %v4819_v50, 3  ;;  %v2627_v50 = vrot.slane %v4884_v23, 3  ;;  %v2629_v23 = vrot.slane %v4914_v47, 3 }
  0xd8   : > { %4305 = vmatprep.mubr.msk.bf16.mxu0 %vm552_vm3, %v2328_v39  ;;  %v2359_v39 = vshrl.u32 %v5311_v40, 16 }
  0xda   : > { %v2361_v24 = vrot.slane %v2359_v39, 2  ;;  %v2630_v39 = vsel %vm2613_vm7, %v2627_v50, %v2629_v23 }
  0xdd   : > { %4154 = vmatmul.mubr.msk.bf16.vlgmr.msra.gmra.mrb[0].mxu1 %vm552_vm3, %v5263_v19  ;;  %v2339_v19 = vor.u32 %v2338_v6, %v2337_v42  ;;  %v4655_v42 = vld [vmem:[%s4745_s12 + $0x10] sm:$0xff]  }
  0xde   : > { %4356 = vmatpush3.bf16.msra.mxu1 %v5753_v62  ;;  %4157 = vmatprep.mubr.msk.bf16.mxu1 %vm552_vm3, %v5281_v4  ;;  %v2353_v4 = vshll.u32 %v5010_v51, 16  ;;  %v2614_v6 = vrot.slane %v4655_v42, 3  ;;  %v4656_v62 = vld [vmem:[%s4745_s12 + $0x18] sm:$0xff]   ;;  %v1530_v42 = vrot.slane %v5036_v59, 2  ;;  %v1546_v59 = vshll.u32 %v5180_v22, 16 }
  0xdf   : > { %4306 = vmatmul.mubr.msk.bf16.gmra.mrb[16].mxu0 %vm552_vm3, %v2332_v9  ;;  %v2340_v45 = vsel %vm2289_vm5, %v2335_v49, %v2339_v19  ;;  %v2344_v1 = vsel %vm2289_vm5, %v2339_v19, %v2343_v35  ;;  %v2365_v9 = vor.u32 %v2364_v53, %v2361_v24  ;;  %v2619_v19 = vrot.slane %v4784_v31, 3 }
  0xe0   : > { %4309 = vmatprep.mubr.msk.bf16.mxu0 %vm552_vm3, %v2336_v26  ;;  %v2355_v36 = vrot.slane %v2353_v4, 3  ;;  %v2615_v26 = vrot.slane %v4656_v62, 3  ;;  %v1509_v4 = vrot.slane %v4936_v8, 1  ;;  %v2631_v8 = vrot.slane %v4922_v58, 3 }
  0xe1   : > { %v1525_v24 = vrot.slane %v5033_v46, 1  ;;  %v1526_v53 = vrot.slane %v5022_v37, 2  ;;  %v2639_v37 = vrot.slane %v4996_v12, 3  ;;  %v1536_v62 = vrot.slane %v1534_v2, 1 }
  0xe2   : > { %v2356_v3 = vor.u32 %v2355_v36, %v2352_v56  ;;  %v1517_v36 = vrot.slane %v5750_v14, 1  ;;  %v2632_v47 = vsel %vm2613_vm7, %v2629_v23, %v2631_v8  ;;  %v2635_v14 = vrot.slane %v4954_v25, 3 }
  0xe3   : > { %v1527_v25 = vor.u32 %v1526_v53, %v1525_v24  ;;  %v2641_v2 = vrot.slane %v5754_v29, 3 }
  0xe5   : > { %4158 = vmatmul.mubr.msk.bf16.gmra.mrb[4].mxu1 %vm552_vm3, %v5285_v52  ;;  %v2347_v52 = vor.u32 %v2346_v48, %v2345_v18 }
  0xe6   : > { %4161 = vmatprep.mubr.msk.bf16.mxu1 %vm552_vm3, %v5301_v44 }
  0xe7   : > { %4310 = vmatmul.mubr.msk.bf16.gmra.mrb[20].mxu0 %vm552_vm3, %v2340_v45  ;;  %v2348_v44 = vsel %vm2289_vm5, %v2343_v35, %v2347_v52  ;;  %v2357_v49 = vsel %vm2289_vm5, %v2347_v52, %v2356_v3  ;;  %v2621_v35 = vrot.slane %v4801_v41, 3  ;;  %v2625_v41 = vrot.slane %v4853_v63, 3 }
  0xe8   : > { %4313 = vmatprep.mubr.msk.bf16.mxu0 %vm552_vm3, %v2344_v1  ;;  %v1510_v45 = vrot.slane %v4929_v60, 2  ;;  %v1267_v63 = vrot.slane %v5180_v22, 1  ;;  %v5755_v1 = vld [vmem:[#allocation3_spill] sm:$0xff]  ;;  %v1518_v52 = vrot.slane %v5751_v16, 2  ;;  %v1521_v16 = vrot.slane %v5019_v32, 1 }
  0xe9   : > { %v2622_v31 = vsel %vm2613_vm7, %v2619_v19, %v2621_v35  ;;  %v2628_v18 = vsel %vm2613_vm7, %v2625_v41, %v2627_v50  ;;  %v2637_v32 = vrot.slane %v4976_v43, 3 }
  0xea   : > { %v1511_v48 = vor.u32 %v1510_v45, %v1509_v4  ;;  %v1519_v61 = vor.u32 %v1518_v52, %v1517_v36 }
  0xeb   : > { %v2638_v43 = vsel %vm2613_vm7, %v2635_v14, %v2637_v32  ;;  %v2640_v12 = vsel %vm2613_vm7, %v2637_v32, %v2639_v37 }
  0xec   : > { %v1512_v56 = vsel %vm1473_vm2, %v5755_v1, %v1511_v48 }
  0xed   : > { %4162 = vmatmul.mubr.msk.bf16.gmra.mrb[8].mxu1 %vm552_vm3, %v5305_v33  ;;  %v2366_v33 = vsel %vm2289_vm5, %v2356_v3, %v2365_v9  ;;  %v1522_v3 = vrot.slane %v5752_v13, 2  ;;  %v1529_v13 = vrot.slane %v5085_v28, 1  ;;  %v1543_v28 = vshrl.u32 %v5180_v22, 16 }
  0xee   : > { %4165 = vmatprep.mubr.msk.bf16.mxu1 %vm552_vm3, %v5325_v21  ;;  %v2616_v21 = vsel %vm2613_vm7, %v2614_v6, %v2615_v26  ;;  %v2644_v22 = vsel %vm2613_vm7, %v2641_v2, %v2643_v0 }
  0xef   : > { %4314 = vmatmul.mubr.msk.bf16.gmra.mrb[24].mxu0 %vm552_vm3, %v2348_v44  ;;  %v1523_v9 = vor.u32 %v1522_v3, %v1521_v16 }
  0xf0   : > { %4317 = vmatprep.mubr.msk.bf16.mxu0 %vm552_vm3, %v2357_v49 }
  0xf1   : > { %v1524_v46 = vsel %vm1473_vm2, %v1519_v61, %v1523_v9  ;;  %v1528_v6 = vsel %vm1473_vm2, %v1523_v9, %v1527_v25 }
  0xf5   : > { %4166 = vmatmul.mubr.msk.bf16.gmra.mrb[12].mxu1 %vm552_vm3, %v5329_v7  ;;  %v2618_v7 = vsel %vm2613_vm7, %v2615_v26, %v2617_v15  ;;  %v1539_v26 = vrot.slane %v1537_v20, 2 }
  0xf6   : > { %4169 = vmatprep.mubr.msk.bf16.mxu1 %vm552_vm3, %v5347_v34  ;;  %v2620_v34 = vsel %vm2613_vm7, %v2617_v15, %v2619_v19  ;;  %v1545_v15 = vrot.slane %v1543_v28, 1  ;;  %v1548_v19 = vrot.slane %v1546_v59, 2 }
  0xf7   : > { %4318 = vmatmul.mubr.msk.bf16.gmra.mrb[28].mxu0 %vm552_vm3, %v2366_v33  ;;  %v1531_v33 = vor.u32 %v1530_v42, %v1529_v13 }
  0xf8   : > { %4323 = vmatprep.mubr.msk.bf16.mxu0 %vm552_vm3, %v2616_v21  ;;  %v1540_v21 = vor.u32 %v1539_v26, %v1536_v62 }
  0xf9   : > { %v1532_v20 = vsel %vm1473_vm2, %v1527_v25, %v1531_v33 }
  0xfd   : > { %4170 = vmatmul.mubr.msk.bf16.gmra.mrb[16].mxu1 %vm552_vm3, %v5351_v54  ;;  %v2624_v54 = vsel %vm2613_vm7, %v2621_v35, %v2623_v11  ;;  %v1549_v35 = vor.u32 %v1548_v19, %v1545_v15 }
  0xfe   : > { %4173 = vmatprep.mubr.msk.bf16.mxu1 %vm552_vm3, %v5369_v38  ;;  %v1265_v38 = vrot.slane %v5754_v29, 1  ;;  %v2645_v29 = vrot.slane %v5311_v40, 3 }
  0xff   : > { %4324 = vmatmul.mubr.msk.bf16.vlgmr.msra.gmra.mrb[0].mxu0 %vm552_vm3, %v2618_v7  ;;  %v1541_v7 = vsel %vm1473_vm2, %v1531_v33, %v1540_v21  ;;  %v1550_v51 = vsel %vm1473_vm2, %v1540_v21, %v1549_v35 }
 0x100   : > { %4327 = vmatprep.mubr.msk.bf16.mxu0 %vm552_vm3, %v2620_v34  ;;  %v1268_v60 = vsel %vm981_vm6, %v1265_v38, %v1267_v63  ;;  %v2642_v34 = vsel %vm2613_vm7, %v2639_v37, %v2641_v2 }
 0x101   : > { %v2965_v50 = vpop.permute.xlu0 %2964 }
 0x105   : > { %4174 = vmatmul.mubr.msk.bf16.gmra.mrb[20].mxu1 %vm552_vm3, %v5372_v30  ;;  %v1266_v30 = vsel %vm981_vm6, %v5382_v55, %v1265_v38  ;;  %v1513_v55 = vrot.slane %v4958_v27, 1  ;;  %v2633_v27 = vrot.slane %v4942_v10, 3 }
 0x106   : > { %4177 = vmatprep.mubr.msk.bf16.mxu1 %vm552_vm3, %v5391_v57  ;;  %v2626_v57 = vsel %vm2613_vm7, %v2623_v11, %v2625_v41  ;;  %v2646_v11 = vsel %vm2613_vm7, %v2643_v0, %v2645_v29 }
 0x107   : > { %4328 = vmatmul.mubr.msk.bf16.gmra.mrb[4].mxu0 %vm552_vm3, %v2622_v31  ;;  %v2634_v49 = vsel %vm2613_vm7, %v2631_v8, %v2633_v27  ;;  %v2636_v10 = vsel %vm2613_vm7, %v2633_v27, %v2635_v14  ;;  %v5604_v14 = vld [vmem:[%s5723_s3] ss:$0 sm:$0xff] }
 0x108   : > { %4331 = vmatprep.mubr.msk.bf16.mxu0 %vm552_vm3, %v2624_v54 }
 0x10d   : > { %4178 = vmatmul.mubr.msk.bf16.gmra.mrb[24].mxu1 %vm552_vm3, %v5395_v5  ;;  %v1514_v5 = vrot.slane %v5749_v17, 2 }
 0x10e   : > { %4181 = vmatprep.mubr.msk.bf16.mxu1 %vm552_vm3, %v1266_v30  ;;  %v2975_v30 = vpop.permute.xlu1 %2974 }
 0x10f   : > { %4332 = vmatmul.mubr.msk.bf16.gmra.mrb[8].mxu0 %vm552_vm3, %v2626_v57  ;;  %v1515_v58 = vor.u32 %v1514_v5, %v1513_v55  ;;  %v2970_v57 = vpop.permute.xlu0 %2969 }
 0x110   : > { %4335 = vmatprep.mubr.msk.bf16.mxu0 %vm552_vm3, %v2628_v18 }
 0x111   : > { %v1516_v17 = vsel %vm1473_vm2, %v1511_v48, %v1515_v58  ;;  %v1520_v44 = vsel %vm1473_vm2, %v1515_v58, %v1519_v61 }
 0x112   : > { %v2980_v40 = vpop.permute.xlu1 %2979 }
 0x113   : > { %v2985_v48 = vpop.permute.xlu0 %2984 }
 0x115   : > { %4182 = vmatmul.mubr.msk.bf16.gmra.mrb[28].mxu1 %vm552_vm3, %v1268_v60 }
 0x116   : > { %4203 = vmatprep.mubr.msk.bf16.mxu1 %vm552_vm3, %v1512_v56  ;;  %v5581_v8 = vpop.permute.xlu1 %2989 }
 0x117   : > { %4336 = vmatmul.mubr.msk.bf16.gmra.mrb[12].mxu0 %vm552_vm3, %v2630_v39 }
 0x118   : > { %4339 = vmatprep.mubr.msk.bf16.mxu0 %vm552_vm3, %v2632_v47 }
 0x11a   : > { %v3000_v56 = vpop.permute.xlu1 %2999 }
 0x11d   : > { %4204 = vmatmul.mubr.msk.bf16.vlgmr.msra.gmra.mrb[16].mxu1 %vm552_vm3, %v1516_v17 }
 0x11e   : > { %4207 = vmatprep.mubr.msk.bf16.mxu1 %vm552_vm3, %v1520_v44  ;;  %v5597_v61 = vpop.permute.xlu1 %3009 }
 0x11f   : > { %4340 = vmatmul.mubr.msk.bf16.gmra.mrb[16].mxu0 %vm552_vm3, %v2634_v49  ;;  %v2995_v1 = vpop.permute.xlu0 %2994 }
 0x120   : > { %4343 = vmatprep.mubr.msk.bf16.mxu0 %vm552_vm3, %v2636_v10 }
 0x122   : > { %v5606_v16 = vpop.permute.xlu1 %3019 }
 0x123   : > { %v5595_v58 = vpop.permute.xlu0 %3004 }
 0x125   : > { %4208 = vmatmul.mubr.msk.bf16.gmra.mrb[20].mxu1 %vm552_vm3, %v1524_v46 }
 0x126   : > { %4211 = vmatprep.mubr.msk.bf16.mxu1 %vm552_vm3, %v1528_v6  ;;  %v5615_v6 = vpop.permute.xlu1 %3029 }
 0x127   : > { %4344 = vmatmul.mubr.msk.bf16.gmra.mrb[20].mxu0 %vm552_vm3, %v2638_v43  ;;  %v5599_v27 = vpop.permute.xlu0 %3014 }
 0x128   : > { %4347 = vmatprep.mubr.msk.bf16.mxu0 %vm552_vm3, %v2640_v12 }
 0x12b   : > { %v5610_v46 = vpop.permute.xlu0 %3024 }
 0x12d   : > { %4212 = vmatmul.mubr.msk.bf16.gmra.mrb[24].mxu1 %vm552_vm3, %v1532_v20 }
 0x12e   : > { %4215 = vmatprep.mubr.msk.bf16.mxu1 %vm552_vm3, %v1541_v7 }
 0x12f   : > { %4348 = vmatmul.mubr.msk.bf16.gmra.mrb[24].mxu0 %vm552_vm3, %v2642_v34  ;;  %v5622_v7 = vpop.permute.xlu0 %3034 }
 0x130   : > { %4351 = vmatprep.mubr.msk.bf16.mxu0 %vm552_vm3, %v2644_v22 }
 0x135   : > { %4216 = vmatmul.mubr.msk.bf16.gmra.mrb[28].mxu1 %vm552_vm3, %v1550_v51 }
 0x137   : > { %4352 = vmatmul.mubr.msk.bf16.gmra.mrb[28].mxu0 %vm552_vm3, %v2646_v11 }
 0x1b0   : > { %v4155_v31 = vpop.f32.mrb[0].mxu1 }
 0x1b1   : > { %v1312_v54 = vpop.f32.mrb[1].mxu1 }
 0x1b2   : > { %v4156_v38 = vpop.f32.mrb[2].mxu1 }
 0x1b3   : > { %v1315_v41 = vpop.f32.mrb[3].mxu1 }
 0x1b8   : > { %v4159_v4 = vpop.f32.mrb[4].mxu1 }
 0x1b9   : > { %v1328_v45 = vpop.f32.mrb[5].mxu1 }
 0x1ba   : > { %v4160_v18 = vpop.f32.mrb[6].mxu1 }
 0x1bb   : > { %v1331_v63 = vpop.f32.mrb[7].mxu1 }
 0x1c0   : > { %v5577_v23 = vpop.f32.mrb[8].mxu1 }
 0x1c1   : > { %v5579_v60 = vpop.f32.mrb[9].mxu1 }
 0x1c2   : > { %v5583_v55 = vpop.f32.mrb[10].mxu1 }
 0x1c3   : > { %v5585_v5 = vpop.f32.mrb[11].mxu1 }
 0x1c8   : > { %v5587_v36 = vpop.f32.mrb[12].mxu1 }
 0x1c9   : > { %v5589_v52 = vpop.f32.mrb[13].mxu1 }
 0x1ca   : > { %v5591_v39 = vpop.f32.mrb[14].mxu1 }
 0x1cb   : > { %v5593_v47 = vpop.f32.mrb[15].mxu1 }
 0x1d2   : > { %v4325_v17 = vpop.f32.mrb[0].mxu0 }
 0x1d3   : > { %v4357_v3 = vadd.f32 %v4325_v17, %v4155_v31  ;;  %v2732_v44 = vpop.f32.mrb[1].mxu0 }
 0x1d4   : > { %v4358_v24 = vadd.f32 %v2732_v44, %v1312_v54  ;;  %v4326_v53 = vpop.f32.mrb[2].mxu0 }
 0x1d5   : > { %v2900_v49 = vadd.f32 %v4357_v3, %v5604_v14  ;;  %v4359_v10 = vadd.f32 %v4326_v53, %v4156_v38  ;;  %v2735_v9 = vpop.f32.mrb[3].mxu0  ;;  %v5628_v38 = vpop.permute.xlu1 %3039 }
 0x1d6   : > { %v2898_v25 = vadd.f32 %v4358_v24, %v5604_v14  ;;  %v4360_v32 = vadd.f32 %v2735_v9, %v1315_v41 }
 0x1d7   : > { %v2901_v37 = vadd.f32 %v4359_v10, %v5604_v14  ;;  %v3124_v62 = vmul.f32 %v2975_v30, %v2900_v49 }
 0x1d8   : > { %v3122_v13 = vmul.f32 %v2965_v50, %v2898_v25  ;;  %v2899_v42 = vadd.f32 %v4360_v32, %v5604_v14 }
 0x1d9   : > { %v3125_v26 = vmul.f32 %v2980_v40, %v2901_v37  ;;  %v3193_v34 = vmul.f32 %v3124_v62, %v3124_v62 }
 0x1da   : > { %v3123_v43 = vmul.f32 %v2970_v57, %v2899_v42  ;;  %v4329_v12 = vpop.f32.mrb[4].mxu0  ;;  %v3191_v33 = vmul.f32 %v3122_v13, %v3122_v13 }
 0x1db   : > { %v3807_v28 = vpack.c.bf16 %v3125_v26, %v3124_v62  ;;  %v4361_v59 = vadd.f32 %v4329_v12, %v4159_v4  ;;  %v2748_v21 = vpop.f32.mrb[5].mxu0  ;;  %v3194_v41 = vmul.f32 %v3125_v26, %v3125_v26 }
 0x1dc   : > { %v3154_v2 = vadd.f32 %v3123_v43, %v3122_v13  ;;  %v3192_v20 = vmul.f32 %v3123_v43, %v3123_v43  ;;  %v3802_v0 = vpack.c.bf16 %v3123_v43, %v3122_v13  ;;  %v4362_v15 = vadd.f32 %v2748_v21, %v1328_v45  ;;  %v4330_v19 = vpop.f32.mrb[6].mxu0 }
 0x1dd   : > { %3881 = vst [vmem:[%s5620_s17 + $0x8] sm:$0xff] %v3807_v28   ;;  %v2904_v22 = vadd.f32 %v4361_v59, %v5604_v14  ;;  %v4363_v35 = vadd.f32 %v4330_v19, %v4160_v18  ;;  %v2751_v29 = vpop.f32.mrb[7].mxu0 }
 0x1de   : > { %v3155_v51 = vadd.f32 %v3154_v2, %v3124_v62  ;;  %v3223_v11 = vadd.f32 %v3192_v20, %v3191_v33  ;;  %3803 = vst [vmem:[%s5620_s17] sm:$0xff] %v3802_v0   ;;  %v2902_v31 = vadd.f32 %v4362_v15, %v5604_v14  ;;  %v4364_v54 = vadd.f32 %v2751_v29, %v1331_v63  ;;  %v5633_v63 = vpop.permute.xlu0 %3044 }
 0x1df   : > { %v2905_v50 = vadd.f32 %v4363_v35, %v5604_v14  ;;  %v3128_v40 = vmul.f32 %v2995_v1, %v2904_v22 }
 0x1e0   : > { %v3224_v30 = vadd.f32 %v3223_v11, %v3193_v34  ;;  %v3126_v4 = vmul.f32 %v2985_v48, %v2902_v31  ;;  %v3156_v45 = vadd.f32 %v3155_v51, %v3125_v26  ;;  %v2903_v57 = vadd.f32 %v4364_v54, %v5604_v14 }
 0x1e1   : > { %v3129_v17 = vmul.f32 %v3000_v56, %v2905_v50  ;;  %v5636_v56 = vpop.permute.xlu1 %3049  ;;  %v3197_v26 = vmul.f32 %v3128_v40, %v3128_v40 }
 0x1e2   : > { %v3157_v18 = vadd.f32 %v3156_v45, %v3126_v4  ;;  %v3195_v3 = vmul.f32 %v3126_v4, %v3126_v4  ;;  %v3225_v44 = vadd.f32 %v3224_v30, %v3194_v41  ;;  %v3127_v24 = vmul.f32 %v5581_v8, %v2903_v57  ;;  %v4333_v53 = vpop.f32.mrb[8].mxu0  ;;  %v5647_v0 = vpop.permute.xlu0 %3054 }
 0x1e3   : > { %v3817_v49 = vpack.c.bf16 %v3129_v17, %v3128_v40  ;;  %v4365_v10 = vadd.f32 %v4333_v53, %v5577_v23  ;;  %v2764_v9 = vpop.f32.mrb[9].mxu0  ;;  %v3198_v59 = vmul.f32 %v3129_v17, %v3129_v17 }
 0x1e4   : > { %v3226_v48 = vadd.f32 %v3225_v44, %v3195_v3  ;;  %v3158_v25 = vadd.f32 %v3157_v18, %v3127_v24  ;;  %v3196_v32 = vmul.f32 %v3127_v24, %v3127_v24  ;;  %v3812_v37 = vpack.c.bf16 %v3127_v24, %v3126_v4  ;;  %v4334_v1 = vpop.f32.mrb[10].mxu0 }
 0x1e5   : > { %3883 = vst [vmem:[%s5620_s17 + $0x18] sm:$0xff] %v3817_v49   ;;  %v2908_v13 = vadd.f32 %v4365_v10, %v5604_v14  ;;  %v4366_v8 = vadd.f32 %v2764_v9, %v5579_v60  ;;  %v4367_v42 = vadd.f32 %v4334_v1, %v5583_v55  ;;  %v2767_v62 = vpop.f32.mrb[11].mxu0  ;;  %v5653_v22 = vpop.permute.xlu1 %3059 }
 0x1e6   : > { %v3159_v43 = vadd.f32 %v3158_v25, %v3128_v40  ;;  %v3227_v23 = vadd.f32 %v3226_v48, %v3196_v32  ;;  %3882 = vst [vmem:[%s5620_s17 + $0x10] sm:$0xff] %v3812_v37   ;;  %v4368_v12 = vadd.f32 %v2767_v62, %v5585_v5  ;;  %v5663_v40 = vpop.permute.xlu0 %3064 }
 0x1e7   : > { %v2906_v33 = vadd.f32 %v4366_v8, %v5604_v14  ;;  %v2909_v28 = vadd.f32 %v4367_v42, %v5604_v14  ;;  %v3132_v60 = vmul.f32 %v5599_v27, %v2908_v13 }
 0x1e8   : > { %v3228_v21 = vadd.f32 %v3227_v23, %v3197_v26  ;;  %v3160_v2 = vadd.f32 %v3159_v43, %v3129_v17  ;;  %v2907_v20 = vadd.f32 %v4368_v12, %v5604_v14 }
 0x1e9   : > { %v3130_v55 = vmul.f32 %v5595_v58, %v2906_v33  ;;  %v3133_v15 = vmul.f32 %v5606_v16, %v2909_v28  ;;  %v3201_v17 = vmul.f32 %v3132_v60, %v3132_v60  ;;  %v5668_v49 = vpop.permute.xlu1 %3069 }
 0x1ea   : > { %v3229_v19 = vadd.f32 %v3228_v21, %v3198_v59  ;;  %v3131_v5 = vmul.f32 %v5597_v61, %v2907_v20  ;;  %v4337_v34 = vpop.f32.mrb[12].mxu0  ;;  %v3075_v33 = vpop.permute.xlu0 %3074 }
 0x1eb   : > { %v3161_v35 = vadd.f32 %v3160_v2, %v3130_v55  ;;  %v3199_v29 = vmul.f32 %v3130_v55, %v3130_v55  ;;  %v3827_v51 = vpack.c.bf16 %v3133_v15, %v3132_v60  ;;  %v2780_v11 = vpop.f32.mrb[13].mxu0  ;;  %v4369_v27 = vadd.f32 %v4337_v34, %v5587_v36 }
 0x1ec   : > { %v3200_v31 = vmul.f32 %v3131_v5, %v3131_v5  ;;  %v3822_v54 = vpack.c.bf16 %v3131_v5, %v3130_v55  ;;  %v4370_v58 = vadd.f32 %v2780_v11, %v5589_v52  ;;  %v4338_v41 = vpop.f32.mrb[14].mxu0  ;;  %v3202_v44 = vmul.f32 %v3133_v15, %v3133_v15 }
 0x1ed   : > { %v3230_v50 = vadd.f32 %v3229_v19, %v3199_v29  ;;  %3885 = vst [vmem:[%s5620_s17 + $0x28] sm:$0xff] %v3827_v51   ;;  %v3162_v16 = vadd.f32 %v3161_v35, %v3131_v5  ;;  %v4371_v61 = vadd.f32 %v4338_v41, %v5591_v39  ;;  %v2783_v30 = vpop.f32.mrb[15].mxu0  ;;  %v2912_v4 = vadd.f32 %v4369_v27, %v5604_v14 }
 0x1ee   : > { %3884 = vst [vmem:[%s5620_s17 + $0x20] sm:$0xff] %v3822_v54   ;;  %v2910_v45 = vadd.f32 %v4370_v58, %v5604_v14  ;;  %v4372_v57 = vadd.f32 %v2783_v30, %v5593_v47 }
 0x1ef   : > { %v3163_v36 = vadd.f32 %v3162_v16, %v3132_v60  ;;  %v3231_v18 = vadd.f32 %v3230_v50, %v3200_v31  ;;  %v2913_v52 = vadd.f32 %v4371_v61, %v5604_v14  ;;  %v3136_v9 = vmul.f32 %v5622_v7, %v2912_v4  ;;  %v3080_v60 = vpop.permute.xlu1 %3079  ;;  %v5683_v4 = vpop.permute.xlu0 %3084 }
 0x1f0   : > { %v4205_v3 = vpop.f32.mrb[16].mxu1  ;;  %v3134_v24 = vmul.f32 %v5610_v46, %v2910_v45  ;;  %v2911_v39 = vadd.f32 %v4372_v57, %v5604_v14 }
 0x1f1   : > { %v1700_v53 = vpop.f32.mrb[17].mxu1  ;;  %v3232_v10 = vadd.f32 %v3231_v18, %v3201_v17  ;;  %v3164_v47 = vadd.f32 %v3163_v36, %v3133_v15  ;;  %v3137_v48 = vmul.f32 %v5628_v38, %v2913_v52  ;;  %v3205_v55 = vmul.f32 %v3136_v9, %v3136_v9 }
 0x1f2   : > { %v4206_v25 = vpop.f32.mrb[18].mxu1  ;;  %v3203_v32 = vmul.f32 %v3134_v24, %v3134_v24  ;;  %v3135_v37 = vmul.f32 %v5615_v6, %v2911_v39  ;;  %v4341_v1 = vpop.f32.mrb[16].mxu0 }
 0x1f3   : > { %v1703_v13 = vpop.f32.mrb[19].mxu1  ;;  %v3165_v46 = vadd.f32 %v3164_v47, %v3134_v24  ;;  %v3233_v8 = vadd.f32 %v3232_v10, %v3202_v44  ;;  %v3837_v42 = vpack.c.bf16 %v3137_v48, %v3136_v9  ;;  %v2796_v62 = vpop.f32.mrb[17].mxu0  ;;  %v4373_v23 = vadd.f32 %v4341_v1, %v4205_v3 }
 0x1f4   : > { %v3204_v26 = vmul.f32 %v3135_v37, %v3135_v37  ;;  %v3832_v43 = vpack.c.bf16 %v3135_v37, %v3134_v24  ;;  %v4374_v12 = vadd.f32 %v2796_v62, %v1700_v53  ;;  %v4342_v7 = vpop.f32.mrb[18].mxu0  ;;  %v3206_v35 = vmul.f32 %v3137_v48, %v3137_v48 }
 0x1f5   : > { %v3234_v28 = vadd.f32 %v3233_v8, %v3203_v32  ;;  %3887 = vst [vmem:[%s5620_s17 + $0x38] sm:$0xff] %v3837_v42   ;;  %v3166_v38 = vadd.f32 %v3165_v46, %v3135_v37  ;;  %v4375_v59 = vadd.f32 %v4342_v7, %v4206_v25  ;;  %v2799_v21 = vpop.f32.mrb[19].mxu0  ;;  %v2916_v6 = vadd.f32 %v4373_v23, %v5604_v14  ;;  %v3095_v42 = vpop.permute.xlu0 %3094 }
 0x1f6   : > { %3886 = vst [vmem:[%s5620_s17 + $0x30] sm:$0xff] %v3832_v43   ;;  %v2914_v2 = vadd.f32 %v4374_v12, %v5604_v14  ;;  %v4376_v20 = vadd.f32 %v2799_v21, %v1703_v13 }
 0x1f7   : > { %v3167_v15 = vadd.f32 %v3166_v38, %v3136_v9  ;;  %v3235_v19 = vadd.f32 %v3234_v28, %v3204_v26  ;;  %v2917_v5 = vadd.f32 %v4375_v59, %v5604_v14  ;;  %v3140_v54 = vmul.f32 %v5647_v0, %v2916_v6 }
 0x1f8   : > { %v4209_v34 = vpop.f32.mrb[20].mxu1  ;;  %v3138_v29 = vmul.f32 %v5633_v63, %v2914_v2  ;;  %v2915_v51 = vadd.f32 %v4376_v20, %v5604_v14 }
 0x1f9   : > { %v1716_v11 = vpop.f32.mrb[21].mxu1  ;;  %v3236_v31 = vadd.f32 %v3235_v19, %v3205_v55  ;;  %v3168_v27 = vadd.f32 %v3167_v15, %v3137_v48  ;;  %v3141_v58 = vmul.f32 %v5653_v22, %v2917_v5  ;;  %v5685_v22 = vpop.permute.xlu1 %3089  ;;  %v3209_v47 = vmul.f32 %v3140_v54, %v3140_v54 }
 0x1fa   : > { %v4210_v41 = vpop.f32.mrb[22].mxu1  ;;  %v3207_v50 = vmul.f32 %v3138_v29, %v3138_v29  ;;  %v3139_v16 = vmul.f32 %v5636_v56, %v2915_v51  ;;  %v4345_v61 = vpop.f32.mrb[20].mxu0 }
 0x1fb   : > { %v1719_v30 = vpop.f32.mrb[23].mxu1  ;;  %v3169_v63 = vadd.f32 %v3168_v27, %v3138_v29  ;;  %v3237_v45 = vadd.f32 %v3236_v31, %v3206_v35  ;;  %v3847_v57 = vpack.c.bf16 %v3141_v58, %v3140_v54  ;;  %v2812_v17 = vpop.f32.mrb[21].mxu0  ;;  %v4377_v0 = vadd.f32 %v4345_v61, %v4209_v34 }
 0x1fc   : > { %v3208_v36 = vmul.f32 %v3139_v16, %v3139_v16  ;;  %v3842_v18 = vpack.c.bf16 %v3139_v16, %v3138_v29  ;;  %v4378_v52 = vadd.f32 %v2812_v17, %v1716_v11  ;;  %v4346_v3 = vpop.f32.mrb[22].mxu0  ;;  %v3210_v1 = vmul.f32 %v3141_v58, %v3141_v58 }
 0x1fd   : > { %v3238_v44 = vadd.f32 %v3237_v45, %v3207_v50  ;;  %3889 = vst [vmem:[%s5620_s17 + $0x48] sm:$0xff] %v3847_v57   ;;  %v3170_v24 = vadd.f32 %v3169_v63, %v3139_v16  ;;  %v4379_v56 = vadd.f32 %v4346_v3, %v4210_v41  ;;  %v2815_v39 = vpop.f32.mrb[23].mxu0  ;;  %v2920_v53 = vadd.f32 %v4377_v0, %v5604_v14  ;;  %v3100_v21 = vpop.permute.xlu1 %3099 }
 0x1fe   : > { %3888 = vst [vmem:[%s5620_s17 + $0x40] sm:$0xff] %v3842_v18   ;;  %v2918_v10 = vadd.f32 %v4378_v52, %v5604_v14  ;;  %v4380_v9 = vadd.f32 %v2815_v39, %v1719_v30  ;;  %v3105_v50 = vpop.permute.xlu0 %3104 }
 0x1ff   : > { %v3171_v48 = vadd.f32 %v3170_v24, %v3140_v54  ;;  %v3239_v25 = vadd.f32 %v3238_v44, %v3208_v36  ;;  %v2921_v32 = vadd.f32 %v4379_v56, %v5604_v14  ;;  %v3144_v26 = vmul.f32 %v3075_v33, %v2920_v53 }
 0x200   : > { %v4213_v37 = vpop.f32.mrb[24].mxu1  ;;  %v3142_v13 = vmul.f32 %v5663_v40, %v2918_v10  ;;  %v2919_v46 = vadd.f32 %v4380_v9, %v5604_v14 }
 0x201   : > { %v1732_v8 = vpop.f32.mrb[25].mxu1  ;;  %v3240_v62 = vadd.f32 %v3239_v25, %v3209_v47  ;;  %v3172_v43 = vadd.f32 %v3171_v48, %v3141_v58  ;;  %v3145_v23 = vmul.f32 %v3080_v60, %v2921_v32  ;;  %v3213_v31 = vmul.f32 %v3144_v26, %v3144_v26  ;;  %v3110_v45 = vpop.permute.xlu1 %3109 }
 0x202   : > { %v4214_v12 = vpop.f32.mrb[26].mxu1  ;;  %v3211_v7 = vmul.f32 %v3142_v13, %v3142_v13  ;;  %v3143_v28 = vmul.f32 %v5668_v49, %v2919_v46  ;;  %v4349_v38 = vpop.f32.mrb[24].mxu0 }
 0x203   : > { %v1735_v59 = vpop.f32.mrb[27].mxu1  ;;  %v3173_v6 = vadd.f32 %v3172_v43, %v3142_v13  ;;  %v3241_v2 = vadd.f32 %v3240_v62, %v3210_v1  ;;  %v3857_v40 = vpack.c.bf16 %v3145_v23, %v3144_v26  ;;  %v2828_v20 = vpop.f32.mrb[25].mxu0  ;;  %v4381_v19 = vadd.f32 %v4349_v38, %v4213_v37 }
 0x204   : > { %v3212_v55 = vmul.f32 %v3143_v28, %v3143_v28  ;;  %v3852_v15 = vpack.c.bf16 %v3143_v28, %v3142_v13  ;;  %v4382_v5 = vadd.f32 %v2828_v20, %v1732_v8  ;;  %v4350_v33 = vpop.f32.mrb[26].mxu0  ;;  %v3214_v16 = vmul.f32 %v3145_v23, %v3145_v23 }
 0x205   : > { %v3242_v34 = vadd.f32 %v3241_v2, %v3211_v7  ;;  %3891 = vst [vmem:[%s5620_s17 + $0x58] sm:$0xff] %v3857_v40   ;;  %v3174_v60 = vadd.f32 %v3173_v6, %v3143_v28  ;;  %v4383_v35 = vadd.f32 %v4350_v33, %v4214_v12  ;;  %v2831_v29 = vpop.f32.mrb[27].mxu0  ;;  %v2924_v49 = vadd.f32 %v4381_v19, %v5604_v14  ;;  %v3120_v12 = vpop.permute.xlu1 %3119 }
 0x206   : > { %3890 = vst [vmem:[%s5620_s17 + $0x50] sm:$0xff] %v3852_v15   ;;  %v2922_v51 = vadd.f32 %v4382_v5, %v5604_v14  ;;  %v4384_v11 = vadd.f32 %v2831_v29, %v1735_v59 }
 0x207   : > { %v3175_v54 = vadd.f32 %v3174_v60, %v3144_v26  ;;  %v3243_v27 = vadd.f32 %v3242_v34, %v3212_v55  ;;  %v2925_v58 = vadd.f32 %v4383_v35, %v5604_v14  ;;  %v3148_v17 = vmul.f32 %v3095_v42, %v2924_v49 }
 0x208   : > { %v4217_v41 = vpop.f32.mrb[28].mxu1  ;;  %v3146_v61 = vmul.f32 %v5683_v4, %v2922_v51  ;;  %v2923_v30 = vadd.f32 %v4384_v11, %v5604_v14 }
 0x209   : > { %v1748_v63 = vpop.f32.mrb[29].mxu1  ;;  %v3244_v57 = vadd.f32 %v3243_v27, %v3213_v31  ;;  %v3176_v36 = vadd.f32 %v3175_v54, %v3145_v23  ;;  %v3149_v18 = vmul.f32 %v3100_v21, %v2925_v58  ;;  %v3217_v42 = vmul.f32 %v3148_v17, %v3148_v17  ;;  %v3115_v23 = vpop.permute.xlu0 %3114 }
 0x20a   : > { %v4218_v0 = vpop.f32.mrb[30].mxu1  ;;  %v3215_v52 = vmul.f32 %v3146_v61, %v3146_v61  ;;  %v3147_v3 = vmul.f32 %v5685_v22, %v2923_v30  ;;  %v4353_v44 = vpop.f32.mrb[28].mxu0 }
 0x20b   : > { %v1751_v24 = vpop.f32.mrb[31].mxu1  ;;  %v3177_v56 = vadd.f32 %v3176_v36, %v3146_v61  ;;  %v3245_v39 = vadd.f32 %v3244_v57, %v3214_v16  ;;  %v3867_v53 = vpack.c.bf16 %v3149_v18, %v3148_v17  ;;  %v2844_v4 = vpop.f32.mrb[29].mxu0  ;;  %v4385_v47 = vadd.f32 %v4353_v44, %v4217_v41 }
 0x20c   : > { %v3216_v10 = vmul.f32 %v3147_v3, %v3147_v3  ;;  %v3862_v9 = vpack.c.bf16 %v3147_v3, %v3146_v61  ;;  %v4386_v48 = vadd.f32 %v2844_v4, %v1748_v63  ;;  %v4354_v25 = vpop.f32.mrb[30].mxu0  ;;  %v3218_v7 = vmul.f32 %v3149_v18, %v3149_v18 }
 0x20d   : > { %v3246_v32 = vadd.f32 %v3245_v39, %v3215_v52  ;;  %3893 = vst [vmem:[%s5620_s17 + $0x68] sm:$0xff] %v3867_v53   ;;  %v3178_v37 = vadd.f32 %v3177_v56, %v3147_v3  ;;  %v4387_v1 = vadd.f32 %v4354_v25, %v4218_v0  ;;  %v2847_v13 = vpop.f32.mrb[31].mxu0  ;;  %v2928_v22 = vadd.f32 %v4385_v47, %v5604_v14 }
 0x20e   : > { %3892 = vst [vmem:[%s5620_s17 + $0x60] sm:$0xff] %v3862_v9   ;;  %v2926_v46 = vadd.f32 %v4386_v48, %v5604_v14  ;;  %v4388_v8 = vadd.f32 %v2847_v13, %v1751_v24 }
 0x20f   : > { %v3179_v62 = vadd.f32 %v3178_v37, %v3148_v17  ;;  %v3247_v26 = vadd.f32 %v3246_v32, %v3216_v10  ;;  %v2929_v43 = vadd.f32 %v4387_v1, %v5604_v14  ;;  %v3152_v21 = vmul.f32 %v3115_v23, %v2928_v22 }
 0x210   : > { %v3150_v28 = vmul.f32 %v3105_v50, %v2926_v46  ;;  %v2927_v38 = vadd.f32 %v4388_v8, %v5604_v14 }
 0x211   : > { %v3248_v59 = vadd.f32 %v3247_v26, %v3217_v42  ;;  %v3180_v6 = vadd.f32 %v3179_v62, %v3149_v18  ;;  %v3153_v2 = vmul.f32 %v3120_v12, %v2929_v43  ;;  %v3221_v35 = vmul.f32 %v3152_v21, %v3152_v21 }
 0x212   : > { %v3219_v40 = vmul.f32 %v3150_v28, %v3150_v28  ;;  %v3151_v20 = vmul.f32 %v3110_v45, %v2927_v38 }
 0x213   : > { %v3181_v55 = vadd.f32 %v3180_v6, %v3150_v28  ;;  %v3249_v15 = vadd.f32 %v3248_v59, %v3218_v7  ;;  %v3877_v19 = vpack.c.bf16 %v3153_v2, %v3152_v21  ;;  %v3222_v49 = vmul.f32 %v3153_v2, %v3153_v2 }
 0x214   : > { %v3220_v5 = vmul.f32 %v3151_v20, %v3151_v20  ;;  %v3872_v33 = vpack.c.bf16 %v3151_v20, %v3150_v28 }
 0x215   : > { %v3250_v34 = vadd.f32 %v3249_v15, %v3219_v40  ;;  %3895 = vst [vmem:[%s5620_s17 + $0x78] sm:$0xff] %v3877_v19   ;;  %v3182_v60 = vadd.f32 %v3181_v55, %v3151_v20 }
 0x216   : > { %3894 = vst [vmem:[%s5620_s17 + $0x70] sm:$0xff] %v3872_v33  }
 0x217   : > { %v3183_v29 = vadd.f32 %v3182_v60, %v3152_v21  ;;  %v3251_v14 = vadd.f32 %v3250_v34, %v3220_v5 }
 0x219   : > { %v3184_v51 = vadd.f32 %v3183_v29, %v3153_v2  ;;  %v3252_v11 = vadd.f32 %v3251_v14, %v3221_v35 }
 0x21b   : > { %v3185_v31 = vrot.slane %v3184_v51, 4  ;;  %v3253_v54 = vadd.f32 %v3252_v11, %v3222_v49 }
 0x21d   : > { %v3186_v27 = vadd.f32 %v3185_v31, %v3184_v51  ;;  %v3254_v58 = vrot.slane %v3253_v54, 4 }
 0x21f   : > { %v3187_v41 = vrot.slane %v3186_v27, 2  ;;  %v3255_v50 = vadd.f32 %v3254_v58, %v3253_v54 }
 0x221   : > { %v3188_v16 = vadd.f32 %v3187_v41, %v3186_v27  ;;  %v3256_v61 = vrot.slane %v3255_v50, 2 }
 0x223   : > { %v3189_v30 = vrot.slane %v3188_v16, 1  ;;  %v3257_v63 = vadd.f32 %v3256_v61, %v3255_v50 }
 0x225   : > { %v3258_v45 = vrot.slane %v3257_v63, 1  ;;  %v3190_v57 = vadd.f32 %v3189_v30, %v3188_v16 }
 0x227   : > { %v3259_v17 = vadd.f32 %v3258_v45, %v3257_v63 }
 0x229   : > { %v3261_v36 = vsel %vm3260_vm8, %v3190_v57, %v3259_v17 }
 0x22a   : > { %v3262_v18 = vsel %vm601_vm0, %v3261_v36, 0.0 }
 0x22b   : > { %3263 = vst [vmem:[%s323_s20] sm:$0xff] %v3262_v18 }
 0x22c PF: > { %s17_s21 = sadd.s32 1, %s4664_s21  }
 0x22d   : > { %p14_p7 = scmp.ge.s32.totalorder %s17_s21, 6  }
 0x22f   :  { %16 = sbr.rel (!%p14_p7) target bundleno = 1 (0x1), region = 96 }

// kernel: convblock_forward.3
= control target key start
LH: loop header
LB: loop body
LE: loop exit
PB: predicated region body
PF: predicated region fallthrough
CT: control target
= control target key end

     0   :  { %s4829_s21 = smov 0   ;;  %s5911_s0 = inlined_call_operand.vmem [shape: bf16[1024,128], index: 0, kind: input, shape index: {}, may-alias: {0,1}]   ;;  %s5912_s1 = inlined_call_operand.vmem [shape: bf16[1024,128], index: 1, kind: input, shape index: {}, may-alias: {0,1}]   ;;  %s5913_s2 = inlined_call_operand.vmem [shape: bf16[9,128,128], index: 2, kind: input, shape index: {}]   ;;  %s5914_s3 = inlined_call_operand.vmem [shape: f32[1,128], index: 3, kind: input, shape index: {}]   ;;  %s5915_s4 = inlined_call_operand.vmem [shape: f32[1,128], index: 4, kind: input, shape index: {}]   ;;  %s5916_s5 = inlined_call_operand.vmem [shape: f32[1,128], index: 5, kind: input, shape index: {}]   ;;  %s5917_s6 = inlined_call_operand.vmem [shape: f32[768,128], index: 6, kind: output, shape index: {}]  }
   0x1 LB: > { %s3460_s22 = sadd.s32 4294967295, %s4792_s21   ;;  %p3466_p0 = scmp.ge.s32.totalorder %s4792_s21, 1  ;;  %s4792_s21 = sphi %s4829_s21, %s16_s21  }
   0x2   : > { %p232_p1 = scmp.lt.s32.totalorder %s4792_s21, 4 }
   0x4   : > { %p233_p2 = pnand %p3466_p0, %p232_p1 }
   0x6   : > { %236 = sbr.rel (%p233_p2) target bundleno = 556 (0x22c), region = 44 }
   0xd   : > { %v4704_v0 = vld [vmem:[%s5913_s2 + $0x40] sm:$0xff]   ;;  %s4840_s25 = sshll.u32 %s3460_s22, 5  ;;  %v4706_v2 = vld [vmem:[%s5913_s2 + $0x48] sm:$0xff]   ;;  %v4708_v4 = vld [vmem:[%s5913_s2 + $0x50] sm:$0xff]   ;;  %vm541_vm0 = vsmask.f32 7424 }
   0xe   : > { %v4705_v1 = vld [vmem:[%s5913_s2 + $0x100] sm:$0xff]   ;;  %3992 = vmatprep.subr.bf16.mxu1 %v4704_v0  ;;  %p270_p3 = scmp.lt.s32.totalorder %s4840_s25, 127  ;;  %v4707_v3 = vld [vmem:[%s5913_s2 + $0x108] sm:$0xff]   ;;  %v4709_v5 = vld [vmem:[%s5913_s2 + $0x110] sm:$0xff]   ;;  %vm1718_vm1 = vsmask.f32 6400 }
   0xf   : > { %4184 = vmatprep.subr.bf16.mxu0 %v4705_v1  ;;  %3993 = vmatpush3.bf16.msra.mxu1 %v4704_v0  ;;  %v4710_v6 = vld [vmem:[%s5913_s2 + $0x58] sm:$0xff]   ;;  %v4712_v8 = vld [vmem:[%s5913_s2 + $0x60] sm:$0xff]   ;;  %v4714_v10 = vld [vmem:[%s5913_s2 + $0x68] sm:$0xff]   ;;  %s3759_s27 = sadd.s32 32, %s4840_s25  ;;  %vm2070_vm2 = vcmask 1045504   ;;  %vm1142_vm4 = vcmask 1046528  }
  0x10   : > { %4185 = vmatpush3.bf16.msra.mxu0 %v4705_v1  ;;  %3994 = vmatprep.subr.bf16.mxu1 %v4706_v2  ;;  %s271_s12 = scalar_select %p270_p3, %s4840_s25, 127  ;;  %v4711_v7 = vld [vmem:[%s5913_s2 + $0x118] sm:$0xff]   ;;  %v4713_v9 = vld [vmem:[%s5913_s2 + $0x120] sm:$0xff]   ;;  %v4715_v14 = vld [vmem:[%s5913_s2 + $0x128] sm:$0xff]   ;;  %vm2646_vm3 = vsmask.f32 5376 }
  0x11   : > { %4186 = vmatprep.subr.bf16.mxu0 %v4707_v3  ;;  %v4884_v13 = vld [vmem:[%s5915_s4] ss:$0 sm:$0xff]  ;;  %v4716_v28 = vld [vmem:[%s5913_s2 + $0x70] sm:$0xff]   ;;  %v4718_v48 = vld [vmem:[%s5913_s2 + $0x78] sm:$0xff]   ;;  %p5114_p4 = scmp.lt.s32.totalorder %s3759_s27, 127  ;;  %vm2998_vm5 = vcmask 1044480  }
  0x12   : > { %s3468_s17 = sshll.u32 %s271_s12, 2  ;;  %v4893_v20 = vld [vmem:[%s5916_s5] ss:$0 sm:$0xff]  ;;  %v4717_v33 = vld [vmem:[%s5913_s2 + $0x130] sm:$0xff]   ;;  %v4719_v53 = vld [vmem:[%s5913_s2 + $0x138] sm:$0xff]   ;;  %p286_p5 = scmp.lt.s32.totalorder %s4840_s25, 95 }
  0x13   : > { %3995 = vmatpush3.bf16.msra.mxu1 %v4706_v2  ;;  %s4874_s26 = scalar_lea.vmem %s5911_s0, %s3468_s17  ;;  %s5961_s27 = smov (!%p5114_p4, %s3759_s27), 127 }
  0x14   : > { %4187 = vmatpush3.bf16.msra.mxu0 %v4707_v3  ;;  %3996 = vmatprep.subr.bf16.mxu1 %v4708_v4  ;;  %v3687_v11 = vld [vmem:[%s4874_s26] sm:$0xff]   ;;  %v3760_v12 = vld [vmem:[%s4874_s26 + $0x8] sm:$0xff]   ;;  %v3761_v19 = vld [vmem:[%s4874_s26 + $0x10] sm:$0xff]   ;;  %s3471_s15 = sshll.u32 %s5961_s27, 2  ;;  %s5963_s25 = smov (!%p286_p5, %s4840_s25), 95 }
  0x15   : > { %4188 = vmatprep.subr.bf16.mxu0 %v4709_v5  ;;  %v3688_v15 = vunpack.c.l.bf16 %v3687_v11  ;;  %v3689_v16 = vunpack.c.h.bf16 %v3687_v11  ;;  %v3692_v17 = vunpack.c.l.bf16 %v3760_v12  ;;  %v3693_v18 = vunpack.c.h.bf16 %v3760_v12  ;;  %v3762_v23 = vld [vmem:[%s4874_s26 + $0x18] sm:$0xff]   ;;  %v4917_v42 = vld [vmem:[%s4874_s26 + $0x20] sm:$0xff]   ;;  %v4920_v43 = vld [vmem:[%s4874_s26 + $0x28] sm:$0xff]   ;;  %s5224_s18 = scalar_lea.vmem %s5912_s1, %s3471_s15  ;;  %s3473_s9 = sshll.u32 %s5963_s25, 3 }
  0x16   : > { %v3696_v21 = vunpack.c.l.bf16 %v3761_v19  ;;  %v3697_v22 = vunpack.c.h.bf16 %v3761_v19  ;;  %v3700_v31 = vunpack.c.l.bf16 %v3762_v23  ;;  %v3701_v32 = vunpack.c.h.bf16 %v3762_v23  ;;  %s5839_s11 = scalar_lea.vmem %s5917_s6, %s3473_s9 }
  0x17   : > { %3997 = vmatpush3.bf16.msra.mxu1 %v4708_v4  ;;  %v373_v24 = vmul.f32 %v3688_v15, %v4884_v13  ;;  %v374_v25 = vmul.f32 %v3689_v16, %v4884_v13  ;;  %v375_v26 = vmul.f32 %v3692_v17, %v4884_v13  ;;  %v376_v27 = vmul.f32 %v3693_v18, %v4884_v13  ;;  %v4720_v4 = vld [vmem:[%s5913_s2] sm:$0xff]  }
  0x18   : > { %4189 = vmatpush3.bf16.msra.mxu0 %v4709_v5  ;;  %3998 = vmatprep.subr.bf16.mxu1 %v4710_v6  ;;  %v377_v29 = vmul.f32 %v3696_v21, %v4884_v13  ;;  %v378_v30 = vmul.f32 %v3697_v22, %v4884_v13  ;;  %v379_v40 = vmul.f32 %v3700_v31, %v4884_v13  ;;  %v3704_v56 = vunpack.c.l.bf16 %v4917_v42 }
  0x19   : > { %4190 = vmatprep.subr.bf16.mxu0 %v4711_v7  ;;  %v417_v34 = vadd.f32 %v4893_v20, %v373_v24  ;;  %v418_v35 = vadd.f32 %v4893_v20, %v374_v25  ;;  %v419_v36 = vadd.f32 %v4893_v20, %v375_v26  ;;  %v420_v37 = vadd.f32 %v4893_v20, %v376_v27  ;;  %v4723_v26 = vld [vmem:[%s5913_s2 + $0x8] sm:$0xff]   ;;  %v3765_v27 = vld [vmem:[%s4874_s26 + $0x30] sm:$0xff]  }
  0x1a   : > { %v421_v38 = vadd.f32 %v4893_v20, %v377_v29  ;;  %v422_v39 = vadd.f32 %v4893_v20, %v378_v30  ;;  %v380_v41 = vmul.f32 %v3701_v32, %v4884_v13  ;;  %v423_v51 = vadd.f32 %v4893_v20, %v379_v40  ;;  %v3766_v32 = vld [vmem:[%s4874_s26 + $0x38] sm:$0xff]  }
  0x1b   : > { %3999 = vmatpush3.bf16.msra.mxu1 %v4710_v6  ;;  %v454_v44 = vmax.f32 %v417_v34, 0.0  ;;  %v455_v45 = vmax.f32 %v418_v35, 0.0  ;;  %v456_v46 = vmax.f32 %v419_v36, 0.0  ;;  %v457_v47 = vmax.f32 %v420_v37, 0.0  ;;  %v4721_v6 = vld [vmem:[%s5913_s2 + $0x140] sm:$0xff]  }
  0x1c   : > { %4191 = vmatpush3.bf16.msra.mxu0 %v4711_v7  ;;  %4000 = vmatprep.subr.bf16.mxu1 %v4712_v8  ;;  %v458_v49 = vmax.f32 %v421_v38, 0.0  ;;  %v459_v50 = vmax.f32 %v422_v39, 0.0  ;;  %v424_v52 = vadd.f32 %v4893_v20, %v380_v41  ;;  %v3705_v57 = vunpack.c.h.bf16 %v4917_v42  ;;  %v4722_v38 = vld [vmem:[%s5913_s2 + $0x148] sm:$0xff]  }
  0x1d   : > { %4192 = vmatprep.subr.bf16.mxu0 %v4713_v9  ;;  %v4930_v54 = vpack.c.bf16 %v455_v45, %v454_v44  ;;  %v4932_v55 = vpack.c.bf16 %v457_v47, %v456_v46  ;;  %v460_v59 = vmax.f32 %v423_v51, 0.0  ;;  %v3708_v61 = vunpack.c.l.bf16 %v4920_v43  ;;  %v3767_v47 = vld [vmem:[%s4874_s26 + $0x40] sm:$0xff]  }
  0x1e   : > { %v4936_v58 = vpack.c.bf16 %v459_v50, %v458_v49  ;;  %v461_v60 = vmax.f32 %v424_v52, 0.0  ;;  %v381_v7 = vmul.f32 %v3704_v56, %v4884_v13  ;;  %v382_v31 = vmul.f32 %v3705_v57, %v4884_v13 }
  0x1f   : > { %4001 = vmatpush3.bf16.msra.mxu1 %v4712_v8  ;;  %v543_v62 = vshrl.u32 %v4930_v54, 16  ;;  %v545_v63 = vshll.u32 %v4930_v54, 16  ;;  %v550_v0 = vshll.u32 %v4932_v55, 16  ;;  %v554_v1 = vshrl.u32 %v4932_v55, 16 }
  0x20   : > { %4193 = vmatpush3.bf16.msra.mxu0 %v4713_v9  ;;  %4002 = vmatprep.subr.bf16.mxu1 %v4714_v10  ;;  %v4944_v2 = vshll.u32 %v4936_v58, 16  ;;  %v4947_v3 = vshrl.u32 %v4936_v58, 16  ;;  %v4952_v5 = vpack.c.bf16 %v461_v60, %v460_v59  ;;  %v425_v35 = vadd.f32 %v4893_v20, %v381_v7 }
  0x21   : > { %4194 = vmatprep.subr.bf16.mxu0 %v4715_v14  ;;  %v547_v8 = vrot.slane %v545_v63, 1  ;;  %v552_v9 = vrot.slane %v550_v0, 1  ;;  %v1720_v11 = vrot.slane %v550_v0, 2  ;;  %v426_v39 = vadd.f32 %v4893_v20, %v382_v31  ;;  %v4724_v63 = vld [vmem:[%s5913_s2 + $0x150] sm:$0xff]  }
  0x22   : > { %v1722_v12 = vrot.slane %v4947_v3, 1  ;;  %v560_v15 = vrot.slane %v4944_v2, 1  ;;  %v4962_v16 = vshll.u32 %v4952_v5, 16  ;;  %v4965_v21 = vshrl.u32 %v4952_v5, 16 }
  0x23   : > { %4003 = vmatpush3.bf16.msra.mxu1 %v4714_v10  ;;  %v1719_v10 = vrot.slane %v554_v1, 1  ;;  %v548_v17 = vor.u32 %v547_v8, %v543_v62  ;;  %v556_v19 = vor.u32 %v554_v1, %v552_v9  ;;  %v3709_v40 = vunpack.c.h.bf16 %v4920_v43  ;;  %v4726_v43 = vld [vmem:[%s5913_s2 + $0x10] sm:$0xff]  }
  0x24   : > { %4195 = vmatpush3.bf16.msra.mxu0 %v4715_v14  ;;  %4004 = vmatprep.subr.bf16.mxu1 %v4716_v28  ;;  %v1723_v14 = vrot.slane %v4944_v2, 2  ;;  %v1727_v23 = vrot.slane %v4962_v16, 2  ;;  %v564_v24 = vor.u32 %v4947_v3, %v560_v15  ;;  %v568_v25 = vrot.slane %v4962_v16, 1 }
  0x25   : > { %4196 = vmatprep.subr.bf16.mxu0 %v4717_v33  ;;  %v1721_v18 = vor.u32 %v1720_v11, %v1719_v10  ;;  %v561_v29 = vsel %vm541_vm0, %v556_v19, %v560_v15  ;;  %v1726_v30 = vrot.slane %v4965_v21, 1  ;;  %v383_v41 = vmul.f32 %v3708_v61, %v4884_v13  ;;  %v4729_v11 = vld [vmem:[%s5913_s2 + $0x18] sm:$0xff]  }
  0x26   : > { %v1724_v22 = vor.u32 %v1723_v14, %v1722_v12  ;;  %v569_v34 = vsel %vm541_vm0, %v564_v24, %v568_v25  ;;  %v572_v36 = vor.u32 %v4965_v21, %v568_v25  ;;  %v462_v42 = vmax.f32 %v425_v35, 0.0  ;;  %v4725_v24 = vld [vmem:[%s5913_s2 + $0x158] sm:$0xff]  }
  0x27   : > { %4005 = vmatpush3.bf16.msra.mxu1 %v4716_v28  ;;  %v553_v28 = vsel %vm541_vm0, %v548_v17, %v552_v9  ;;  %v4983_v37 = vor.u32 %v1727_v23, %v1726_v30  ;;  %v3712_v44 = vunpack.c.l.bf16 %v3765_v27  ;;  %v3713_v45 = vunpack.c.h.bf16 %v3765_v27 }
  0x28   : > { %4197 = vmatpush3.bf16.msra.mxu0 %v4717_v33  ;;  %4006 = vmatprep.subr.bf16.mxu1 %v4718_v48  ;;  %v1725_v33 = vsel %vm1718_vm1, %v1721_v18, %v1724_v22  ;;  %v3716_v46 = vunpack.c.l.bf16 %v3766_v32  ;;  %v463_v49 = vmax.f32 %v426_v39, 0.0  ;;  %v384_v50 = vmul.f32 %v3709_v40, %v4884_v13  ;;  %v4732_v39 = vld [vmem:[%s5913_s2 + $0x20] sm:$0xff]  }
  0x29   : > { %4198 = vmatprep.subr.bf16.mxu0 %v4719_v53  ;;  %4008 = vmatprep.mubr.bf16.mxu1 %v553_v28  ;;  %v427_v51 = vadd.f32 %v4893_v20, %v383_v41  ;;  %v385_v52 = vmul.f32 %v3712_v44, %v4884_v13  ;;  %v3717_v56 = vunpack.c.h.bf16 %v3766_v32  ;;  %v3720_v62 = vunpack.c.l.bf16 %v3767_v47 }
  0x2a   : > { %4200 = vmatprep.mubr.bf16.mxu0 %v1725_v33  ;;  %v387_v57 = vmul.f32 %v3716_v46, %v4884_v13  ;;  %v5002_v59 = vpack.c.bf16 %v463_v49, %v462_v42  ;;  %v428_v60 = vadd.f32 %v4893_v20, %v384_v50  ;;  %v3721_v7 = vunpack.c.h.bf16 %v3767_v47 }
  0x2b   : > { %4007 = vmatpush3.bf16.msra.mxu1 %v4718_v48  ;;  %v1729_v48 = vsel %vm1718_vm1, %v1724_v22, %v4983_v37  ;;  %v464_v61 = vmax.f32 %v427_v51, 0.0  ;;  %v429_v0 = vadd.f32 %v4893_v20, %v385_v52  ;;  %v389_v17 = vmul.f32 %v3720_v62, %v4884_v13  ;;  %v4734_v52 = vld [vmem:[%s5913_s2 + $0x28] sm:$0xff]  }
  0x2c   : > { %4199 = vmatpush3.bf16.msra.mxu0 %v4719_v53  ;;  %4040 = vmatprep.subr.bf16.mxu1 %v4720_v4  ;;  %v386_v53 = vmul.f32 %v3713_v45, %v4884_v13  ;;  %v5015_v8 = vshrl.u32 %v5002_v59, 16  ;;  %v465_v9 = vmax.f32 %v428_v60, 0.0  ;;  %v431_v10 = vadd.f32 %v4893_v20, %v387_v57  ;;  %v3768_v45 = vld [vmem:[%s4874_s26 + $0x48] sm:$0xff]  }
  0x2d   : > { %4232 = vmatprep.subr.bf16.mxu0 %v4721_v6  ;;  %v466_v12 = vmax.f32 %v429_v0, 0.0  ;;  %v390_v28 = vmul.f32 %v3721_v7, %v4884_v13  ;;  %v4728_v0 = vld [vmem:[%s5913_s2 + $0x168] sm:$0xff]  }
  0x2e   : > { %4009 = vmatmul.mubr.bf16.vlgmr.msra.gmra.mrb[0].mxu1 %v561_v29  ;;  %v430_v1 = vadd.f32 %v4893_v20, %v386_v53  ;;  %v1730_v18 = vrot.slane %v5015_v8, 1  ;;  %v5026_v23 = vpack.c.bf16 %v465_v9, %v464_v61 }
  0x2f   : > { %4041 = vmatpush3.bf16.msra.mxu1 %v4720_v4  ;;  %4012 = vmatprep.mubr.bf16.mxu1 %v569_v34  ;;  %v388_v4 = vmul.f32 %v3717_v56, %v4884_v13  ;;  %v434_v9 = vadd.f32 %v4893_v20, %v390_v28 }
  0x30   : > { %4042 = vmatprep.subr.bf16.mxu1 %v4723_v26  ;;  %4201 = vmatmul.mubr.bf16.vlgmr.msra.gmra.mrb[0].mxu0 %v1729_v48  ;;  %v467_v14 = vmax.f32 %v430_v1, 0.0  ;;  %v5036_v31 = vshll.u32 %v5026_v23, 16  ;;  %v5039_v32 = vshrl.u32 %v5026_v23, 16  ;;  %v433_v1 = vadd.f32 %v4893_v20, %v389_v17 }
  0x31   : > { %4233 = vmatpush3.bf16.msra.mxu0 %v4721_v6  ;;  %v5012_v6 = vshll.u32 %v5002_v59, 16  ;;  %v432_v15 = vadd.f32 %v4893_v20, %v388_v4  ;;  %v471_v17 = vmax.f32 %v434_v9, 0.0 }
  0x32   : > { %4234 = vmatprep.subr.bf16.mxu0 %v4722_v38  ;;  %v5031_v25 = vpack.c.bf16 %v467_v14, %v466_v12  ;;  %v1734_v41 = vrot.slane %v5039_v32, 1  ;;  %v1735_v42 = vrot.slane %v5036_v31, 2  ;;  %v584_v44 = vrot.slane %v5036_v31, 1 }
  0x33   : > { %4043 = vmatpush3.bf16.msra.mxu1 %v4723_v26  ;;  %v1731_v19 = vrot.slane %v5012_v6, 2  ;;  %v576_v22 = vrot.slane %v5012_v6, 1  ;;  %v468_v26 = vmax.f32 %v431_v10, 0.0  ;;  %v469_v27 = vmax.f32 %v432_v15, 0.0 }
  0x34   : > { %4044 = vmatprep.subr.bf16.mxu1 %v4726_v43  ;;  %v5043_v34 = vshll.u32 %v5031_v25, 16  ;;  %v5046_v35 = vshrl.u32 %v5031_v25, 16  ;;  %v588_v51 = vor.u32 %v5039_v32, %v584_v44  ;;  %v3724_v10 = vunpack.c.l.bf16 %v3768_v45 }
  0x35   : > { %4235 = vmatpush3.bf16.msra.mxu0 %v4722_v38  ;;  %v1732_v29 = vor.u32 %v1731_v19, %v1730_v18  ;;  %v577_v30 = vsel %vm541_vm0, %v572_v36, %v576_v22  ;;  %v580_v33 = vor.u32 %v5015_v8, %v576_v22  ;;  %v5048_v38 = vpack.c.bf16 %v469_v27, %v468_v26  ;;  %v4727_v36 = vld [vmem:[%s5913_s2 + $0x160] sm:$0xff]   ;;  %v3770_v19 = vld [vmem:[%s4874_s26 + $0x58] sm:$0xff]   ;;  %v4736_v22 = vld [vmem:[%s5913_s2 + $0x30] sm:$0xff]  }
  0x36   : > { %4236 = vmatprep.subr.bf16.mxu0 %v4724_v63  ;;  %4013 = vmatmul.mubr.bf16.gmra.mrb[4].mxu1 %v577_v30  ;;  %v1738_v46 = vrot.slane %v5046_v35, 1  ;;  %v1739_v47 = vrot.slane %v5043_v34, 2  ;;  %v592_v48 = vrot.slane %v5043_v34, 1  ;;  %v470_v14 = vmax.f32 %v433_v1, 0.0 }
  0x37   : > { %4045 = vmatpush3.bf16.msra.mxu1 %v4726_v43  ;;  %v1733_v40 = vsel %vm1718_vm1, %v4983_v37, %v1732_v29  ;;  %v5066_v49 = vshll.u32 %v5048_v38, 16  ;;  %v1736_v37 = vor.u32 %v1735_v42, %v1734_v41  ;;  %v585_v50 = vsel %vm541_vm0, %v580_v33, %v584_v44 }
  0x38   : > { %4046 = vmatprep.subr.bf16.mxu1 %v4729_v11  ;;  %4204 = vmatprep.mubr.bf16.mxu0 %v1733_v40  ;;  %v5071_v43 = vshrl.u32 %v5048_v38, 16  ;;  %v1740_v53 = vor.u32 %v1739_v47, %v1738_v46  ;;  %v596_v57 = vor.u32 %v5046_v35, %v592_v48  ;;  %v593_v62 = vsel %vm541_vm0, %v588_v51, %v592_v48  ;;  %v4731_v51 = vld [vmem:[%s5913_s2 + $0x178] sm:$0xff]  }
  0x39   : > { %4237 = vmatpush3.bf16.msra.mxu0 %v4724_v63  ;;  %4016 = vmatprep.mubr.bf16.mxu1 %v585_v50  ;;  %v1743_v56 = vrot.slane %v5066_v49, 2  ;;  %v600_v60 = vrot.slane %v5066_v49, 1  ;;  %v1737_v61 = vsel %vm1718_vm1, %v1732_v29, %v1736_v37  ;;  %v3725_v15 = vunpack.c.h.bf16 %v3768_v45  ;;  %v4738_v45 = vld [vmem:[%s5913_s2 + $0x38] sm:$0xff]  }
  0x3a   : > { %4238 = vmatprep.subr.bf16.mxu0 %v4725_v24  ;;  %v1742_v63 = vrot.slane %v5071_v43, 1  ;;  %4205 = vmatmul.mubr.bf16.gmra.mrb[4].mxu0 %v1737_v61  ;;  %v1741_v4 = vsel %vm1718_vm1, %v1736_v37, %v1740_v53  ;;  %v391_v18 = vmul.f32 %v3724_v10, %v4884_v13  ;;  %v5102_v30 = vpack.c.bf16 %v471_v17, %v470_v14 }
  0x3b   : > { %4047 = vmatpush3.bf16.msra.mxu1 %v4729_v11  ;;  %v601_v7 = vsel %vm541_vm0, %v596_v57, %v600_v60  ;;  %v3769_v11 = vld [vmem:[%s4874_s26 + $0x50] sm:$0xff]   ;;  %4208 = vmatprep.mubr.bf16.mxu0 %v1741_v4  ;;  %v392_v26 = vmul.f32 %v3725_v15, %v4884_v13  ;;  %v3732_v44 = vunpack.c.l.bf16 %v3770_v19  ;;  %v2072_v37 = vrot.slane %v4936_v58, 2  ;;  %v5147_v15 = vld [vmem:[%s5913_s2 + $0x80] sm:$0xff]  }
  0x3c   : > { %4048 = vmatprep.subr.bf16.mxu1 %v4732_v39  ;;  %v5090_v12 = vor.u32 %v1743_v56, %v1742_v63  ;;  %v3728_v27 = vunpack.c.l.bf16 %v3769_v11  ;;  %v3729_v28 = vunpack.c.h.bf16 %v3769_v11  ;;  %v435_v33 = vadd.f32 %v4893_v20, %v391_v18  ;;  %v3771_v63 = vld [vmem:[%s4874_s26 + $0x60] sm:$0xff]  }
  0x3d   : > { %4239 = vmatpush3.bf16.msra.mxu0 %v4725_v24  ;;  %v604_v24 = vor.u32 %v5071_v43, %v600_v60  ;;  %v436_v40 = vadd.f32 %v4893_v20, %v392_v26  ;;  %v5122_v46 = vshll.u32 %v5102_v30, 16  ;;  %v5125_v47 = vshrl.u32 %v5102_v30, 16  ;;  %v5163_v26 = vld [vmem:[%s5913_s2 + $0x180] sm:$0xff]  }
  0x3e   : > { %4240 = vmatprep.subr.bf16.mxu0 %v4727_v36  ;;  %4017 = vmatmul.mubr.bf16.gmra.mrb[8].mxu1 %v593_v62  ;;  %v1745_v29 = vsel %vm1718_vm1, %v1740_v53, %v5090_v12  ;;  %v393_v41 = vmul.f32 %v3728_v27, %v4884_v13  ;;  %v394_v42 = vmul.f32 %v3729_v28, %v4884_v13  ;;  %v472_v48 = vmax.f32 %v435_v33, 0.0 }
  0x3f   : > { %4049 = vmatpush3.bf16.msra.mxu1 %v4732_v39  ;;  %4020 = vmatprep.mubr.bf16.mxu1 %v601_v7  ;;  %v2071_v39 = vrot.slane %v4932_v55, 2  ;;  %v473_v50 = vmax.f32 %v436_v40, 0.0  ;;  %v3733_v56 = vunpack.c.h.bf16 %v3770_v19  ;;  %v1746_v57 = vrot.slane %v5125_v47, 1 }
  0x40   : > { %4050 = vmatprep.subr.bf16.mxu1 %v4734_v52  ;;  %v438_v53 = vadd.f32 %v4893_v20, %v394_v42  ;;  %v1747_v60 = vrot.slane %v5122_v46, 2  ;;  %v608_v61 = vrot.slane %v5122_v46, 1  ;;  %v395_v62 = vmul.f32 %v3732_v44, %v4884_v13 }
  0x41   : > { %4241 = vmatpush3.bf16.msra.mxu0 %v4727_v36  ;;  %v4730_v36 = vld [vmem:[%s5913_s2 + $0x170] sm:$0xff]   ;;  %v396_v7 = vmul.f32 %v3733_v56, %v4884_v13  ;;  %v3736_v28 = vunpack.c.l.bf16 %v3771_v63 }
  0x42   : > { %4242 = vmatprep.subr.bf16.mxu0 %v4728_v0  ;;  %4209 = vmatmul.mubr.bf16.gmra.mrb[8].mxu0 %v1745_v29  ;;  %v475_v4 = vmax.f32 %v438_v53, 0.0  ;;  %v1748_v9 = vor.u32 %v1747_v60, %v1746_v57  ;;  %v609_v10 = vsel %vm541_vm0, %v604_v24, %v608_v61  ;;  %v612_v11 = vor.u32 %v5125_v47, %v608_v61  ;;  %v3772_v29 = vld [vmem:[%s4874_s26 + $0x68] sm:$0xff]  }
  0x43   : > { %4051 = vmatpush3.bf16.msra.mxu1 %v4734_v52  ;;  %v437_v52 = vadd.f32 %v4893_v20, %v393_v41  ;;  %v439_v14 = vadd.f32 %v4893_v20, %v395_v62  ;;  %v2073_v41 = vsel %vm2070_vm2, %v2071_v39, %v2072_v37  ;;  %v2074_v39 = vrot.slane %v4952_v5, 2 }
  0x44   : > { %4052 = vmatprep.subr.bf16.mxu1 %v4736_v22  ;;  %v1749_v24 = vsel %vm1718_vm1, %v5090_v12, %v1748_v9  ;;  %v397_v57 = vmul.f32 %v3736_v28, %v4884_v13  ;;  %v2076_v62 = vrot.slane %v5002_v59, 2 }
  0x45   : > { %4243 = vmatpush3.bf16.msra.mxu0 %v4728_v0  ;;  %v5138_v0 = vpack.c.bf16 %v473_v50, %v472_v48  ;;  %v474_v1 = vmax.f32 %v437_v52, 0.0  ;;  %v476_v27 = vmax.f32 %v439_v14, 0.0  ;;  %4212 = vmatprep.mubr.bf16.mxu0 %v1749_v24  ;;  %v3737_v48 = vunpack.c.h.bf16 %v3771_v63 }
  0x46   : > { %4244 = vmatprep.subr.bf16.mxu0 %v4730_v36  ;;  %4021 = vmatmul.mubr.bf16.gmra.mrb[12].mxu1 %v609_v10  ;;  %v3740_v63 = vunpack.c.l.bf16 %v3772_v29  ;;  %v441_v10 = vadd.f32 %v4893_v20, %v397_v57  ;;  %v3741_v14 = vunpack.c.h.bf16 %v3772_v29 }
  0x47   : > { %4053 = vmatpush3.bf16.msra.mxu1 %v4736_v22  ;;  %v5150_v17 = vshll.u32 %v5138_v0, 16  ;;  %v5153_v18 = vshrl.u32 %v5138_v0, 16  ;;  %v5155_v19 = vpack.c.bf16 %v475_v4, %v474_v1  ;;  %v440_v22 = vadd.f32 %v4893_v20, %v396_v7  ;;  %v3773_v1 = vld [vmem:[%s4874_s26 + $0x70] sm:$0xff]  }
  0x48   : > { %4054 = vmatprep.subr.bf16.mxu1 %v4738_v45  ;;  %v398_v60 = vmul.f32 %v3737_v48, %v4884_v13  ;;  %v3774_v48 = vld [vmem:[%s4874_s26 + $0x78] sm:$0xff]  }
  0x49   : > { %4245 = vmatpush3.bf16.msra.mxu0 %v4730_v36  ;;  %v1750_v33 = vrot.slane %v5153_v18, 1  ;;  %v1751_v36 = vrot.slane %v5150_v17, 2  ;;  %v616_v12 = vrot.slane %v5150_v17, 1  ;;  %v5176_v40 = vshll.u32 %v5155_v19, 16 }
  0x4a   : > { %4246 = vmatprep.subr.bf16.mxu0 %v4731_v51  ;;  %v477_v42 = vmax.f32 %v440_v22, 0.0  ;;  %v5182_v44 = vshrl.u32 %v5155_v19, 16  ;;  %v399_v22 = vmul.f32 %v3740_v63, %v4884_v13 }
  0x4b   : > { %4055 = vmatpush3.bf16.msra.mxu1 %v4738_v45  ;;  %v5185_v50 = vor.u32 %v1751_v36, %v1750_v33  ;;  %v617_v52 = vsel %vm541_vm0, %v612_v11, %v616_v12  ;;  %v620_v53 = vor.u32 %v5153_v18, %v616_v12  ;;  %v624_v45 = vrot.slane %v5176_v40, 1 }
  0x4c   : > { %4088 = vmatprep.subr.bf16.mxu1 %v5147_v15  ;;  %4024 = vmatprep.mubr.bf16.mxu1 %v617_v52  ;;  %v5192_v56 = vpack.c.bf16 %v477_v42, %v476_v27  ;;  %v442_v11 = vadd.f32 %v4893_v20, %v398_v60  ;;  %v478_v27 = vmax.f32 %v441_v10, 0.0  ;;  %v3744_v33 = vunpack.c.l.bf16 %v3773_v1  ;;  %v3751_v10 = vld [vmem:[%s5224_s18] sm:$0xff]  }
  0x4d   : > { %5939 = vst [vmem:[#allocation2_spill] sm:$0xff] %v5185_v50  ;;  %4247 = vmatpush3.bf16.msra.mxu0 %v4731_v51  ;;  %v1753_v51 = vsel %vm1718_vm1, %v1748_v9, %v5185_v50  ;;  %v625_v61 = vsel %vm541_vm0, %v620_v53, %v624_v45  ;;  %v628_v4 = vor.u32 %v5182_v44, %v624_v45  ;;  %v3745_v42 = vunpack.c.h.bf16 %v3773_v1  ;;  %v3775_v50 = vld [vmem:[%s5224_s18 + $0x8] sm:$0xff]  }
  0x4e   : > { %4280 = vmatprep.subr.bf16.mxu0 %v5163_v26  ;;  %4213 = vmatmul.mubr.bf16.gmra.mrb[12].mxu0 %v1753_v51  ;;  %v5203_v7 = vshll.u32 %v5192_v56, 16  ;;  %v5209_v9 = vshrl.u32 %v5192_v56, 16  ;;  %v479_v28 = vmax.f32 %v442_v11, 0.0  ;;  %v5216_v36 = vsel %vm2070_vm2, %v2072_v37, %v2074_v39 }
  0x4f   : > { %4248 = vmatprep.mubr.bf16.mxu0 %v2073_v41  ;;  %4025 = vmatmul.mubr.bf16.gmra.mrb[16].mxu1 %v625_v61  ;;  %v400_v12 = vmul.f32 %v3741_v14, %v4884_v13  ;;  %v443_v41 = vadd.f32 %v4893_v20, %v399_v22  ;;  %v5230_v52 = vsel %vm2070_vm2, %v2074_v39, %v2076_v62  ;;  %v4735_v39 = vld [vmem:[%s5913_s2 + $0x188] sm:$0xff]   ;;  %v2078_v11 = vrot.slane %v5026_v23, 2 }
  0x50   : > { %v632_v24 = vrot.slane %v5203_v7, 1  ;;  %v5232_v37 = vpack.c.bf16 %v479_v28, %v478_v27  ;;  %v401_v53 = vmul.f32 %v3744_v33, %v4884_v13  ;;  %v402_v51 = vmul.f32 %v3745_v42, %v4884_v13 }
  0x51   : > { %v444_v57 = vadd.f32 %v4893_v20, %v400_v12  ;;  %v480_v60 = vmax.f32 %v443_v41, 0.0  ;;  %v2080_v28 = vrot.slane %v5031_v25, 2 }
  0x52   : > { %v633_v29 = vsel %vm541_vm0, %v628_v4, %v632_v24  ;;  %v636_v45 = vor.u32 %v5209_v9, %v632_v24  ;;  %v5239_v61 = vshll.u32 %v5232_v37, 16  ;;  %v5245_v63 = vshrl.u32 %v5232_v37, 16 }
  0x53   : > { %4028 = vmatprep.mubr.bf16.mxu1 %v633_v29  ;;  %v445_v1 = vadd.f32 %v4893_v20, %v401_v53  ;;  %v3748_v4 = vunpack.c.l.bf16 %v3774_v48  ;;  %v481_v14 = vmax.f32 %v444_v57, 0.0  ;;  %v446_v22 = vadd.f32 %v4893_v20, %v402_v51 }
  0x54   : > { %5940 = vst [vmem:[#allocation3_spill] sm:$0xff] %v5239_v61  ;;  %5941 = vst [vmem:[#allocation4_spill] sm:$0xff] %v5245_v63  ;;  %v3749_v24 = vunpack.c.h.bf16 %v3774_v48  ;;  %v640_v27 = vrot.slane %v5239_v61, 1  ;;  %v4737_v48 = vld [vmem:[%s5913_s2 + $0x190] sm:$0xff]   ;;  %v3752_v53 = vunpack.c.l.bf16 %v3751_v10 }
  0x55   : > { %v482_v33 = vmax.f32 %v445_v1, 0.0  ;;  %v403_v12 = vmul.f32 %v3748_v4, %v4884_v13  ;;  %v5257_v41 = vpack.c.bf16 %v481_v14, %v480_v60  ;;  %v483_v42 = vmax.f32 %v446_v22, 0.0 }
  0x56   : > { %4249 = vmatmul.mubr.bf16.vlgmr.msra.gmra.mrb[0].mxu0 %v5216_v36  ;;  %v404_v29 = vmul.f32 %v3749_v24, %v4884_v13  ;;  %v641_v57 = vsel %vm541_vm0, %v636_v45, %v640_v27  ;;  %v644_v51 = vor.u32 %v5245_v63, %v640_v27  ;;  %v5278_v45 = vsel %vm2070_vm2, %v2076_v62, %v2078_v11 }
  0x57   : > { %4281 = vmatpush3.bf16.msra.mxu0 %v5163_v26  ;;  %4252 = vmatprep.mubr.bf16.mxu0 %v5230_v52  ;;  %v447_v1 = vadd.f32 %v4893_v20, %v403_v12  ;;  %v5267_v26 = vshll.u32 %v5257_v41, 16  ;;  %v5269_v60 = vpack.c.bf16 %v483_v42, %v482_v33  ;;  %v5272_v4 = vshrl.u32 %v5257_v41, 16 }
  0x58   : > { %4282 = vmatprep.subr.bf16.mxu0 %v4735_v39  ;;  %4029 = vmatmul.mubr.bf16.gmra.mrb[20].mxu1 %v641_v57  ;;  %v448_v14 = vadd.f32 %v4893_v20, %v404_v29  ;;  %v405_v24 = vmul.f32 %v3752_v53, %v4884_v13  ;;  %v5289_v29 = vsel %vm2070_vm2, %v2078_v11, %v2080_v28  ;;  %v4739_v13 = vld [vmem:[%s5913_s2 + $0x198] sm:$0xff]   ;;  %v2082_v11 = vrot.slane %v5048_v38, 2 }
  0x59   : > { %5942 = vst [vmem:[#allocation5_spill] sm:$0xff] %v5267_v26  ;;  %5943 = vst [vmem:[#allocation6_spill] sm:$0xff] %v5272_v4  ;;  %v484_v22 = vmax.f32 %v447_v1, 0.0  ;;  %v648_v27 = vrot.slane %v5267_v26, 1  ;;  %v5283_v33 = vshll.u32 %v5269_v60, 16  ;;  %v5286_v42 = vshrl.u32 %v5269_v60, 16 }
  0x5a   : > { %v485_v12 = vmax.f32 %v448_v14, 0.0  ;;  %v449_v62 = vadd.f32 %v4893_v20, %v405_v24  ;;  %v3753_v14 = vunpack.c.h.bf16 %v3751_v10  ;;  %v4741_v10 = vld [vmem:[%s5913_s2 + $0x1a0] sm:$0xff]  }
  0x5b   : > { %4283 = vmatpush3.bf16.msra.mxu0 %v4735_v39  ;;  %5944 = vst [vmem:[#allocation7_spill] sm:$0xff] %v5283_v33  ;;  %5945 = vst [vmem:[#allocation8_spill] sm:$0xff] %v5286_v42  ;;  %v649_v39 = vsel %vm541_vm0, %v644_v51, %v648_v27  ;;  %v652_v53 = vor.u32 %v5272_v4, %v648_v27  ;;  %v656_v57 = vrot.slane %v5283_v33, 1 }
  0x5c   : > { %4284 = vmatprep.subr.bf16.mxu0 %v4737_v48  ;;  %v5298_v1 = vpack.c.bf16 %v485_v12, %v484_v22  ;;  %4032 = vmatprep.mubr.bf16.mxu1 %v649_v39  ;;  %v486_v20 = vmax.f32 %v449_v62, 0.0  ;;  %v2084_v12 = vrot.slane %v5102_v30, 2  ;;  %v5322_v62 = vld [vmem:[%s5915_s4] ss:$0 sm:$0xff]  ;;  %v5327_v33 = vsel %vm2070_vm2, %v2080_v28, %v2082_v11 }
  0x5d   : > { %v657_v24 = vsel %vm541_vm0, %v652_v53, %v656_v57  ;;  %v660_v51 = vor.u32 %v5286_v42, %v656_v57  ;;  %v406_v53 = vmul.f32 %v5322_v62, %v3753_v14  ;;  %v4743_v14 = vld [vmem:[%s5913_s2 + $0x1a8] sm:$0xff]   ;;  %v5341_v28 = vld [vmem:[%s5916_s5] ss:$0 sm:$0xff] }
  0x5e   : > { %4253 = vmatmul.mubr.bf16.gmra.mrb[4].mxu0 %v5278_v45  ;;  %v5307_v27 = vshll.u32 %v5298_v1, 16  ;;  %v5310_v22 = vshrl.u32 %v5298_v1, 16  ;;  %v5313_v39 = vpack.c.bf16 %v486_v20, %v486_v20 }
  0x5f   : > { %4256 = vmatprep.mubr.bf16.mxu0 %v5289_v29  ;;  %4285 = vmatpush3.bf16.msra.mxu0 %v4737_v48 }
  0x60   : > { %5946 = vst [vmem:[#allocation9_spill] sm:$0xff] %v5307_v27  ;;  %5947 = vst [vmem:[#allocation10_spill] sm:$0xff] %v5310_v22  ;;  %4286 = vmatprep.subr.bf16.mxu0 %v4739_v13  ;;  %4033 = vmatmul.mubr.bf16.gmra.mrb[24].mxu1 %v657_v24  ;;  %v664_v48 = vrot.slane %v5307_v27, 1  ;;  %v670_v57 = vshll.u32 %v5313_v39, 16  ;;  %v3756_v24 = vunpack.c.l.bf16 %v3775_v50  ;;  %v5332_v27 = vsel %vm2070_vm2, %v2082_v11, %v2084_v12 }
  0x61   : > { %v2086_v11 = vrot.slane %v5138_v0, 2 }
  0x62   : > { %v665_v42 = vsel %vm541_vm0, %v660_v51, %v664_v48  ;;  %v668_v26 = vor.u32 %v5310_v22, %v664_v48  ;;  %v672_v4 = vrot.slane %v670_v57, 1  ;;  %v407_v51 = vmul.f32 %v5322_v62, %v3756_v24  ;;  %v4745_v57 = vld [vmem:[%s5913_s2 + $0x1b0] sm:$0xff]   ;;  %v4747_v24 = vld [vmem:[%s5913_s2 + $0x1b8] sm:$0xff]  }
  0x63   : > { %4287 = vmatpush3.bf16.msra.mxu0 %v4739_v13  ;;  %4036 = vmatprep.mubr.bf16.mxu1 %v665_v42  ;;  %v450_v13 = vadd.f32 %v5341_v28, %v406_v53  ;;  %v2088_v48 = vrot.slane %v5155_v19, 2  ;;  %v3757_v22 = vunpack.c.h.bf16 %v3775_v50 }
  0x64   : > { %4288 = vmatprep.subr.bf16.mxu0 %v4741_v10  ;;  %v673_v42 = vsel %vm541_vm0, %v668_v26, %v672_v4  ;;  %v5354_v26 = vsel %vm2070_vm2, %v2084_v12, %v2086_v11  ;;  %v451_v4 = vadd.f32 %v5341_v28, %v407_v51  ;;  %v2090_v12 = vrot.slane %v5192_v56, 2 }
  0x65   : > { %v487_v61 = vmax.f32 %v450_v13, 0.0  ;;  %v5359_v53 = vsel %vm2070_vm2, %v2086_v11, %v2088_v48  ;;  %v2654_v11 = vrot.slane %v5015_v8, 2  ;;  %v2655_v51 = vrot.slane %v5012_v6, 3 }
  0x66   : > { %4257 = vmatmul.mubr.bf16.gmra.mrb[8].mxu0 %v5327_v33  ;;  %v2659_v8 = vrot.slane %v5036_v31, 3  ;;  %v5392_v6 = vsel %vm2070_vm2, %v2088_v48, %v2090_v12  ;;  %v2663_v48 = vrot.slane %v5043_v34, 3  ;;  %v2667_v34 = vrot.slane %v5066_v49, 3 }
  0x67   : > { %4260 = vmatprep.mubr.bf16.mxu0 %v5332_v27  ;;  %4289 = vmatpush3.bf16.msra.mxu0 %v4741_v10  ;;  %v408_v10 = vmul.f32 %v5322_v62, %v3757_v22  ;;  %v5365_v13 = vpack.c.bf16 %v487_v61, %v486_v20  ;;  %v4742_v22 = vld [vmem:[%s5913_s2 + $0x88] sm:$0xff]   ;;  %v2092_v61 = vrot.slane %v5232_v37, 2  ;;  %v5381_v20 = vld [vmem:[%s5913_s2 + $0x1c0] sm:$0xff]   ;;  %v2671_v49 = vrot.slane %v5122_v46, 3 }
  0x68   : > { %4290 = vmatprep.subr.bf16.mxu0 %v4743_v14  ;;  %4037 = vmatmul.mubr.bf16.gmra.mrb[28].mxu1 %v673_v42  ;;  %v4748_v46 = vld [vmem:[%s5913_s2 + $0xa0] sm:$0xff]  }
  0x69   : > { %4056 = vmatprep.mubr.bf16.mxu1 %v4930_v54  ;;  %v452_v50 = vadd.f32 %v5341_v28, %v408_v10  ;;  %5948 = vst [vmem:[#allocation11_spill] sm:$0xff] %v5365_v13  ;;  %v2658_v10 = vrot.slane %v5039_v32, 2  ;;  %v4744_v32 = vld [vmem:[%s5913_s2 + $0x90] sm:$0xff]  }
  0x6b   : > { %4291 = vmatpush3.bf16.msra.mxu0 %v4743_v14  ;;  %v5373_v14 = vmax.f32 %v451_v4, 0.0  ;;  %v489_v42 = vmax.f32 %v452_v50, 0.0  ;;  %v5388_v4 = vor.u32 %v2655_v51, %v2654_v11  ;;  %v2662_v50 = vrot.slane %v5046_v35, 2 }
  0x6c   : > { %4292 = vmatprep.subr.bf16.mxu0 %v4745_v57  ;;  %v2660_v31 = vor.u32 %v2659_v8, %v2658_v10  ;;  %v5404_v51 = vsel %vm2070_vm2, %v2090_v12, %v2092_v61  ;;  %v2666_v35 = vrot.slane %v5071_v43, 2  ;;  %v2670_v12 = vrot.slane %v5125_v47, 2  ;;  %v4746_v8 = vld [vmem:[%s5913_s2 + $0x98] sm:$0xff]  }
  0x6d   : > { %v2664_v10 = vor.u32 %v2663_v48, %v2662_v50  ;;  %v2094_v43 = vrot.slane %v5257_v41, 2  ;;  %v2096_v48 = vrot.slane %v5269_v60, 2  ;;  %v2675_v47 = vrot.slane %v5150_v17, 3 }
  0x6e   : > { %4261 = vmatmul.mubr.bf16.gmra.mrb[12].mxu0 %v5354_v26  ;;  %v2668_v50 = vor.u32 %v2667_v34, %v2666_v35  ;;  %v2672_v63 = vor.u32 %v2671_v49, %v2670_v12  ;;  %v5468_v34 = vpack.c.bf16 %v5373_v14, %v5373_v14  ;;  %v4752_v12 = vld [vmem:[%s5913_s2 + $0xb0] sm:$0xff]   ;;  %v4756_v49 = vld [vmem:[%s5913_s2 + $0xc0] sm:$0xff]  }
  0x6f   : > { %4264 = vmatprep.mubr.bf16.mxu0 %v5359_v53  ;;  %4293 = vmatpush3.bf16.msra.mxu0 %v4745_v57  ;;  %v5386_v57 = vpack.c.bf16 %v489_v42, %v5373_v14  ;;  %v2100_v42 = vrot.slane %v5365_v13, 2  ;;  %v5440_v35 = vsel %vm2070_vm2, %v2092_v61, %v2094_v43  ;;  %v2098_v61 = vrot.slane %v5298_v1, 2  ;;  %v4754_v14 = vld [vmem:[%s5913_s2 + $0xb8] sm:$0xff]  }
  0x70   : > { %4294 = vmatprep.subr.bf16.mxu0 %v4747_v24  ;;  %4057 = vmatmul.mubr.bf16.vlgmr.msra.gmra.mrb[0].mxu1 %v4932_v55  ;;  %v5434_v13 = vsel %vm2646_vm3, %v2664_v10, %v2668_v50  ;;  %v5446_v17 = vsel %vm2646_vm3, %v2668_v50, %v2672_v63 }
  0x71   : > { %4089 = vmatpush3.bf16.msra.mxu1 %v5147_v15  ;;  %4060 = vmatprep.mubr.bf16.mxu1 %v4936_v58  ;;  %v5933_v11 = vrot.slane %v5386_v57, 2 }
  0x72   : > { %4090 = vmatprep.subr.bf16.mxu1 %v4742_v22 }
  0x73   : > { %4295 = vmatpush3.bf16.msra.mxu0 %v4747_v24  ;;  %v5411_v15 = vsel %vm2070_vm2, %v2100_v42, %v5933_v11  ;;  %v5415_v24 = vsel %vm2646_vm3, %v5388_v4, %v2660_v31  ;;  %v5426_v11 = vsel %vm2646_vm3, %v2660_v31, %v2664_v10 }
  0x74   : > { %4328 = vmatprep.subr.bf16.mxu0 %v5381_v20 }
  0x75   : > { %4091 = vmatpush3.bf16.msra.mxu1 %v4742_v22  ;;  %v2674_v22 = vrot.slane %v5153_v18, 2  ;;  %v5449_v18 = vsel %vm2070_vm2, %v2094_v43, %v2096_v48  ;;  %v5474_v43 = vsel %vm2070_vm2, %v2098_v61, %v2100_v42 }
  0x76   : > { %4265 = vmatmul.mubr.bf16.gmra.mrb[16].mxu0 %v5392_v6  ;;  %4092 = vmatprep.subr.bf16.mxu1 %v4744_v32 }
  0x77   : > { %4268 = vmatprep.mubr.bf16.mxu0 %v5404_v51  ;;  %v5437_v31 = vor.u32 %v2675_v47, %v2674_v22  ;;  %v1148_v22 = vrot.slane %v4952_v5, 1 }
  0x78   : > { %4061 = vmatmul.mubr.bf16.gmra.mrb[4].mxu1 %v4952_v5 }
  0x79   : > { %4064 = vmatprep.mubr.bf16.mxu1 %v5002_v59  ;;  %4093 = vmatpush3.bf16.msra.mxu1 %v4744_v32  ;;  %v5453_v10 = vsel %vm2646_vm3, %v2672_v63, %v5437_v31  ;;  %v4750_v32 = vld [vmem:[%s5913_s2 + $0xa8] sm:$0xff]   ;;  %v5464_v63 = vsel %vm2070_vm2, %v2096_v48, %v2098_v61  ;;  %v360_v61 = vld [vmem:[%s5224_s18 + $0x10] sm:$0xf] }
  0x7a   : > { %4094 = vmatprep.subr.bf16.mxu1 %v4746_v8  ;;  %v4751_v48 = vld [vmem:[%s5913_s2 + $0x1c8] sm:$0xff]  }
  0x7d   : > { %4095 = vmatpush3.bf16.msra.mxu1 %v4746_v8  ;;  %v2102_v8 = vrot.slane %v5468_v34, 2 }
  0x7e   : > { %4269 = vmatmul.mubr.bf16.gmra.mrb[20].mxu0 %v5440_v35  ;;  %4096 = vmatprep.subr.bf16.mxu1 %v4748_v46 }
  0x7f   : > { %4272 = vmatprep.mubr.bf16.mxu0 %v5449_v18  ;;  %v2103_v50 = vsel %vm2070_vm2, %v2100_v42, %v2102_v8  ;;  %v4755_v42 = vld [vmem:[%s5913_s2 + $0x1d8] sm:$0xff]   ;;  %v365_v8 = vunpack.c.l.bf16 %v360_v61 }
  0x80   : > { %4065 = vmatmul.mubr.bf16.gmra.mrb[8].mxu1 %v5026_v23 }
  0x81   : > { %4068 = vmatprep.mubr.bf16.mxu1 %v5031_v25  ;;  %4097 = vmatpush3.bf16.msra.mxu1 %v4748_v46  ;;  %v4758_v46 = vld [vmem:[%s5913_s2 + $0xc8] sm:$0xff]  }
  0x82   : > { %4098 = vmatprep.subr.bf16.mxu1 %v4750_v32 }
  0x85   : > { %4099 = vmatpush3.bf16.msra.mxu1 %v4750_v32  ;;  %v5544_v32 = vld [vmem:[%s5913_s2 + $0x200] sm:$0xff]  }
  0x86   : > { %4273 = vmatmul.mubr.bf16.gmra.mrb[24].mxu0 %v5464_v63  ;;  %4100 = vmatprep.subr.bf16.mxu1 %v4752_v12 }
  0x87   : > { %4276 = vmatprep.mubr.bf16.mxu0 %v5474_v43 }
  0x88   : > { %4069 = vmatmul.mubr.bf16.gmra.mrb[12].mxu1 %v5048_v38 }
  0x89   : > { %4072 = vmatprep.mubr.bf16.mxu1 %v5102_v30  ;;  %4101 = vmatpush3.bf16.msra.mxu1 %v4752_v12  ;;  %v4760_v12 = vld [vmem:[%s5913_s2 + $0xd0] sm:$0xff]  }
  0x8a   : > { %4102 = vmatprep.subr.bf16.mxu1 %v4754_v14 }
  0x8d   : > { %4103 = vmatpush3.bf16.msra.mxu1 %v4754_v14 }
  0x8e   : > { %4277 = vmatmul.mubr.bf16.gmra.mrb[28].mxu0 %v2103_v50  ;;  %4136 = vmatprep.subr.bf16.mxu1 %v4756_v49 }
  0x8f   : > { %4296 = vmatprep.mubr.bf16.mxu0 %v5216_v36  ;;  %v4753_v36 = vld [vmem:[%s5913_s2 + $0x1d0] sm:$0xff]  }
  0x90   : > { %4073 = vmatmul.mubr.bf16.gmra.mrb[16].mxu1 %v5138_v0 }
  0x91   : > { %4076 = vmatprep.mubr.bf16.mxu1 %v5155_v19 }
  0x96   : > { %4297 = vmatmul.mubr.bf16.vlgmr.msra.gmra.mrb[0].mxu0 %v5230_v52  ;;  %v4757_v52 = vld [vmem:[%s5913_s2 + $0x1e0] sm:$0xff]  }
  0x97   : > { %4329 = vmatpush3.bf16.msra.mxu0 %v5381_v20  ;;  %4300 = vmatprep.mubr.bf16.mxu0 %v5278_v45  ;;  %v1143_v45 = vrot.slane %v4930_v54, 1  ;;  %v1144_v20 = vrot.slane %v4932_v55, 1  ;;  %v4761_v54 = vld [vmem:[%s5913_s2 + $0x1f0] sm:$0xff]   ;;  %v1146_v55 = vrot.slane %v4936_v58, 1 }
  0x98   : > { %4330 = vmatprep.subr.bf16.mxu0 %v4751_v48  ;;  %4077 = vmatmul.mubr.bf16.gmra.mrb[20].mxu1 %v5192_v56 }
  0x99   : > { %4080 = vmatprep.mubr.bf16.mxu1 %v5232_v37  ;;  %v5535_v47 = vsel %vm1142_vm4, %v1146_v55, %v1148_v22 }
  0x9b   : > { %4331 = vmatpush3.bf16.msra.mxu0 %v4751_v48  ;;  %v409_v48 = vmul.f32 %v5322_v62, %v365_v8 }
  0x9c   : > { %4332 = vmatprep.subr.bf16.mxu0 %v4753_v36 }
  0x9e   : > { %4301 = vmatmul.mubr.bf16.gmra.mrb[4].mxu0 %v5289_v29  ;;  %v1145_v29 = vsel %vm1142_vm4, %v1143_v45, %v1144_v20 }
  0x9f   : > { %4304 = vmatprep.mubr.bf16.mxu0 %v5327_v33  ;;  %4333 = vmatpush3.bf16.msra.mxu0 %v4753_v36  ;;  %v4759_v33 = vld [vmem:[%s5913_s2 + $0x1e8] sm:$0xff]   ;;  %v1156_v36 = vrot.slane %v5048_v38, 1 }
  0xa0   : > { %4334 = vmatprep.subr.bf16.mxu0 %v4755_v42  ;;  %4081 = vmatmul.mubr.bf16.gmra.mrb[24].mxu1 %v5257_v41 }
  0xa1   : > { %4084 = vmatprep.mubr.bf16.mxu1 %v5269_v60 }
  0xa3   : > { %4335 = vmatpush3.bf16.msra.mxu0 %v4755_v42  ;;  %v4764_v42 = vld [vmem:[%s5913_s2 + $0xe0] sm:$0xff]  }
  0xa4   : > { %4336 = vmatprep.subr.bf16.mxu0 %v4757_v52 }
  0xa6   : > { %4305 = vmatmul.mubr.bf16.gmra.mrb[8].mxu0 %v5332_v27  ;;  %v4763_v27 = vld [vmem:[%s5913_s2 + $0x1f8] sm:$0xff]  }
  0xa7   : > { %4308 = vmatprep.mubr.bf16.mxu0 %v5354_v26  ;;  %4337 = vmatpush3.bf16.msra.mxu0 %v4757_v52  ;;  %v5531_v26 = vsel %vm1142_vm4, %v1144_v20, %v1146_v55  ;;  %v2650_v55 = vrot.slane %v4965_v21, 2  ;;  %v1162_v21 = vrot.slane %v5155_v19, 1 }
  0xa8   : > { %4338 = vmatprep.subr.bf16.mxu0 %v4759_v33  ;;  %4085 = vmatmul.mubr.bf16.gmra.mrb[28].mxu1 %v5298_v1 }
  0xa9   : > { %4104 = vmatprep.mubr.bf16.mxu1 %v1145_v29  ;;  %v2647_v29 = vrot.slane %v4947_v3, 2 }
  0xab   : > { %4339 = vmatpush3.bf16.msra.mxu0 %v4759_v33  ;;  %v4768_v33 = vld [vmem:[%s5913_s2 + $0xf0] sm:$0xff]  }
  0xac   : > { %4340 = vmatprep.subr.bf16.mxu0 %v4761_v54 }
  0xae   : > { %4309 = vmatmul.mubr.bf16.gmra.mrb[12].mxu0 %v5359_v53  ;;  %v1150_v53 = vrot.slane %v5002_v59, 1 }
  0xaf   : > { %4312 = vmatprep.mubr.bf16.mxu0 %v5392_v6  ;;  %4341 = vmatpush3.bf16.msra.mxu0 %v4761_v54  ;;  %v1152_v6 = vrot.slane %v5026_v23, 1  ;;  %v2648_v54 = vrot.slane %v4944_v2, 3  ;;  %v4770_v2 = vld [vmem:[%s5913_s2 + $0xf8] sm:$0xff]  }
  0xb0   : > { %4342 = vmatprep.subr.bf16.mxu0 %v4763_v27  ;;  %4105 = vmatmul.mubr.bf16.vlgmr.msra.gmra.mrb[0].mxu1 %v5531_v26  ;;  %v5556_v14 = vsel %vm1142_vm4, %v1148_v22, %v1150_v53  ;;  %v2651_v22 = vrot.slane %v4962_v16, 3 }
  0xb1   : > { %4137 = vmatpush3.bf16.msra.mxu1 %v4756_v49  ;;  %4108 = vmatprep.mubr.bf16.mxu1 %v5535_v47  ;;  %v5560_v50 = vsel %vm1142_vm4, %v1150_v53, %v1152_v6  ;;  %v4762_v49 = vld [vmem:[%s5913_s2 + $0xd8] sm:$0xff]   ;;  %v2649_v3 = vor.u32 %v2648_v54, %v2647_v29  ;;  %v1164_v53 = vrot.slane %v5192_v56, 1  ;;  %v2678_v29 = vrot.slane %v5182_v44, 2 }
  0xb2   : > { %4138 = vmatprep.subr.bf16.mxu1 %v4758_v46  ;;  %v2652_v16 = vor.u32 %v2651_v22, %v2650_v55  ;;  %v2682_v54 = vrot.slane %v5209_v9, 2  ;;  %v2683_v55 = vrot.slane %v5203_v7, 3  ;;  %v4773_v22 = vld [vmem:[%s5913_s2 + $0x228] sm:$0xff]  }
  0xb3   : > { %4343 = vmatpush3.bf16.msra.mxu0 %v4763_v27  ;;  %v5622_v8 = vsel %vm1142_vm4, %v1162_v21, %v1164_v53 }
  0xb4   : > { %4376 = vmatprep.subr.bf16.mxu0 %v5544_v32 }
  0xb5   : > { %4139 = vmatpush3.bf16.msra.mxu1 %v4758_v46 }
  0xb6   : > { %4313 = vmatmul.mubr.bf16.gmra.mrb[16].mxu0 %v5404_v51  ;;  %4140 = vmatprep.subr.bf16.mxu1 %v4760_v12  ;;  %v1154_v51 = vrot.slane %v5031_v25, 1 }
  0xb7   : > { %4316 = vmatprep.mubr.bf16.mxu0 %v5440_v35  ;;  %v453_v35 = vadd.f32 %v5341_v28, %v409_v48  ;;  %v4766_v28 = vld [vmem:[%s5913_s2 + $0xe8] sm:$0xff]   ;;  %v1166_v48 = vrot.slane %v5232_v37, 1 }
  0xb8   : > { %4109 = vmatmul.mubr.bf16.gmra.mrb[4].mxu1 %v5556_v14  ;;  %v5576_v62 = vsel %vm1142_vm4, %v1152_v6, %v1154_v51  ;;  %v5580_v52 = vsel %vm1142_vm4, %v1154_v51, %v1156_v36  ;;  %v2653_v6 = vsel %vm2646_vm3, %v2649_v3, %v2652_v16  ;;  %v2657_v51 = vsel %vm2646_vm3, %v2652_v16, %v5388_v4  ;;  %v4769_v4 = vld [vmem:[%s5913_s2 + $0x210] sm:$0xff]  }
  0xb9   : > { %4112 = vmatprep.mubr.bf16.mxu1 %v5560_v50  ;;  %4141 = vmatpush3.bf16.msra.mxu1 %v4760_v12  ;;  %v490_v45 = vmax.f32 %v453_v35, 0.0  ;;  %v4767_v35 = vld [vmem:[%s5913_s2 + $0x208] sm:$0xff]   ;;  %v4774_v3 = vld [vmem:[%s5913_s2 + $0x230] sm:$0xff]  }
  0xba   : > { %4142 = vmatprep.subr.bf16.mxu1 %v4762_v49 }
  0xbb   : > { %v5588_v20 = vpack.c.bf16 %v490_v45, %v490_v45 }
  0xbd   : > { %4143 = vmatpush3.bf16.msra.mxu1 %v4762_v49  ;;  %v2384_v46 = vrot.slane %v5588_v20, 2  ;;  %v5627_v49 = vld [vmem:[%s5913_s2 + $0x100] sm:$0xff]  }
  0xbe   : > { %4317 = vmatmul.mubr.bf16.gmra.mrb[20].mxu0 %v5449_v18  ;;  %4144 = vmatprep.subr.bf16.mxu1 %v4764_v42  ;;  %v1158_v18 = vrot.slane %v5102_v30, 1 }
  0xbf   : > { %4320 = vmatprep.mubr.bf16.mxu0 %v5464_v63  ;;  %v1160_v63 = vrot.slane %v5138_v0, 1 }
  0xc0   : > { %4113 = vmatmul.mubr.bf16.gmra.mrb[8].mxu1 %v5576_v62  ;;  %v5600_v27 = vsel %vm1142_vm4, %v1156_v36, %v1158_v18  ;;  %v1168_v36 = vrot.slane %v5257_v41, 1 }
  0xc1   : > { %4116 = vmatprep.mubr.bf16.mxu1 %v5580_v52  ;;  %4145 = vmatpush3.bf16.msra.mxu1 %v4764_v42  ;;  %v5605_v61 = vsel %vm1142_vm4, %v1158_v18, %v1160_v63  ;;  %v5619_v12 = vsel %vm1142_vm4, %v1160_v63, %v1162_v21  ;;  %v5640_v42 = vsel %vm1142_vm4, %v1164_v53, %v1166_v48  ;;  %v5654_v18 = vrot.slane %v5298_v1, 1  ;;  %v5952_v53 = vld [vmem:[#allocation6_spill] sm:$0xff] }
  0xc2   : > { %4146 = vmatprep.subr.bf16.mxu1 %v4766_v28  ;;  %v5645_v45 = vsel %vm1142_vm4, %v1166_v48, %v1168_v36  ;;  %v5953_v48 = vld [vmem:[#allocation5_spill] sm:$0xff] }
  0xc5   : > { %4147 = vmatpush3.bf16.msra.mxu1 %v4766_v28  ;;  %v1170_v28 = vrot.slane %v5269_v60, 1 }
  0xc6   : > { %4321 = vmatmul.mubr.bf16.gmra.mrb[24].mxu0 %v5474_v43  ;;  %4148 = vmatprep.subr.bf16.mxu1 %v4768_v33 }
  0xc7   : > { %4324 = vmatprep.mubr.bf16.mxu0 %v5411_v15  ;;  %v5949_v15 = vrot.slane %v5386_v57, 2  ;;  %v5666_v63 = vsel %vm1142_vm4, %v1170_v28, %v5654_v18 }
  0xc8   : > { %4117 = vmatmul.mubr.bf16.gmra.mrb[12].mxu1 %v5600_v27 }
  0xc9   : > { %4120 = vmatprep.mubr.bf16.mxu1 %v5605_v61  ;;  %4149 = vmatpush3.bf16.msra.mxu1 %v4768_v33  ;;  %v2385_v43 = vsel %vm2070_vm2, %v5949_v15, %v2384_v46  ;;  %v4772_v33 = vld [vmem:[%s5913_s2 + $0x220] sm:$0xff]   ;;  %v5951_v15 = vld [vmem:[#allocation3_spill] sm:$0xff] }
  0xca   : > { %4150 = vmatprep.subr.bf16.mxu1 %v4770_v2 }
  0xcd   : > { %4151 = vmatpush3.bf16.msra.mxu1 %v4770_v2  ;;  %v2684_v2 = vor.u32 %v2683_v55, %v2682_v54  ;;  %v5957_v54 = vld [vmem:[#allocation9_spill] sm:$0xff]  ;;  %v4780_v55 = vld [vmem:[%s5913_s2 + $0x110] sm:$0xff]  }
  0xce   : > { %4325 = vmatmul.mubr.bf16.gmra.mrb[28].mxu0 %v2385_v43  ;;  %4424 = vmatprep.subr.bf16.mxu1 %v5627_v49  ;;  %v2687_v43 = vrot.slane %v5951_v15, 3 }
  0xcf   : > { %4344 = vmatprep.mubr.bf16.mxu0 %v2653_v6  ;;  %v2690_v6 = vrot.slane %v5952_v53, 2 }
  0xd0   : > { %4121 = vmatmul.mubr.bf16.gmra.mrb[16].mxu1 %v5619_v12 }
  0xd1   : > { %4124 = vmatprep.mubr.bf16.mxu1 %v5622_v8 }
  0xd6   : > { %4345 = vmatmul.mubr.bf16.vlgmr.msra.gmra.mrb[0].mxu0 %v2657_v51  ;;  %v2691_v51 = vrot.slane %v5953_v48, 3 }
  0xd7   : > { %4377 = vmatpush3.bf16.msra.mxu0 %v5544_v32  ;;  %4348 = vmatprep.mubr.bf16.mxu0 %v5415_v24  ;;  %v4771_v24 = vld [vmem:[%s5913_s2 + $0x218] sm:$0xff]   ;;  %v5661_v32 = vsel %vm1142_vm4, %v1168_v36, %v1170_v28  ;;  %v5954_v28 = vld [vmem:[#allocation8_spill] sm:$0xff] }
  0xd8   : > { %4378 = vmatprep.subr.bf16.mxu0 %v4767_v35  ;;  %4125 = vmatmul.mubr.bf16.gmra.mrb[20].mxu1 %v5640_v42  ;;  %v4775_v36 = vld [vmem:[%s5913_s2 + $0x238] sm:$0xff]  }
  0xd9   : > { %4128 = vmatprep.mubr.bf16.mxu1 %v5645_v45 }
  0xdb   : > { %4379 = vmatpush3.bf16.msra.mxu0 %v4767_v35 }
  0xdc   : > { %4380 = vmatprep.subr.bf16.mxu0 %v4769_v4 }
  0xde   : > { %4349 = vmatmul.mubr.bf16.gmra.mrb[4].mxu0 %v5426_v11  ;;  %v1174_v11 = vrot.slane %v5313_v39, 1 }
  0xdf   : > { %4352 = vmatprep.mubr.bf16.mxu0 %v5434_v13  ;;  %4381 = vmatpush3.bf16.msra.mxu0 %v4769_v4  ;;  %v2679_v13 = vrot.slane %v5176_v40, 3  ;;  %v4779_v4 = vld [vmem:[%s5913_s2 + $0x108] sm:$0xff]  }
  0xe0   : > { %4382 = vmatprep.subr.bf16.mxu0 %v4771_v24  ;;  %4129 = vmatmul.mubr.bf16.gmra.mrb[24].mxu1 %v5661_v32  ;;  %v1175_v46 = vsel %vm1142_vm4, %v5654_v18, %v1174_v11 }
  0xe1   : > { %4132 = vmatprep.mubr.bf16.mxu1 %v5666_v63  ;;  %v2680_v39 = vor.u32 %v2679_v13, %v2678_v29  ;;  %v5956_v13 = vld [vmem:[#allocation10_spill] sm:$0xff] }
  0xe3   : > { %4383 = vmatpush3.bf16.msra.mxu0 %v4771_v24  ;;  %v2681_v16 = vsel %vm2646_vm3, %v5437_v31, %v2680_v39  ;;  %v2692_v31 = vor.u32 %v2691_v51, %v2690_v6  ;;  %v2694_v24 = vrot.slane %v5954_v28, 2  ;;  %v4781_v6 = vld [vmem:[%s5913_s2 + $0x118] sm:$0xff]  }
  0xe4   : > { %4384 = vmatprep.subr.bf16.mxu0 %v4772_v33 }
  0xe6   : > { %4353 = vmatmul.mubr.bf16.gmra.mrb[8].mxu0 %v5446_v17  ;;  %v5950_v17 = vld [vmem:[#allocation4_spill] sm:$0xff] }
  0xe7   : > { %4356 = vmatprep.mubr.bf16.mxu0 %v5453_v10  ;;  %4385 = vmatpush3.bf16.msra.mxu0 %v4772_v33  ;;  %v2686_v21 = vrot.slane %v5950_v17, 2  ;;  %v2685_v10 = vsel %vm2646_vm3, %v2680_v39, %v2684_v2  ;;  %v5955_v33 = vld [vmem:[#allocation7_spill] sm:$0xff] }
  0xe8   : > { %4386 = vmatprep.subr.bf16.mxu0 %v4773_v22  ;;  %4133 = vmatmul.mubr.bf16.gmra.mrb[28].mxu1 %v1175_v46  ;;  %v2695_v11 = vrot.slane %v5955_v33, 3 }
  0xe9   : > { %4152 = vmatprep.mubr.bf16.mxu1 %v5531_v26  ;;  %v2688_v26 = vor.u32 %v2687_v43, %v2686_v21 }
  0xeb   : > { %4387 = vmatpush3.bf16.msra.mxu0 %v4773_v22  ;;  %v2689_v35 = vsel %vm2646_vm3, %v2684_v2, %v2688_v26  ;;  %v2693_v29 = vsel %vm2646_vm3, %v2688_v26, %v2692_v31  ;;  %v5958_v22 = vld [vmem:[#allocation11_spill] sm:$0xff]  ;;  %v2716_v26 = vshrl.u32 %v5588_v20, 16 }
  0xec   : > { %4388 = vmatprep.subr.bf16.mxu0 %v4774_v3  ;;  %v1779_v46 = vshrl.u32 %v5958_v22, 16  ;;  %v1782_v39 = vshll.u32 %v5958_v22, 16 }
  0xee   : > { %4357 = vmatmul.mubr.bf16.gmra.mrb[12].mxu0 %v2681_v16  ;;  %v2710_v16 = vshll.u32 %v5386_v57, 16  ;;  %v2702_v43 = vrot.slane %v1779_v46, 2 }
  0xef   : > { %4360 = vmatprep.mubr.bf16.mxu0 %v2685_v10  ;;  %4389 = vmatpush3.bf16.msra.mxu0 %v4774_v3  ;;  %v2707_v3 = vshrl.u32 %v5386_v57, 16  ;;  %v2703_v10 = vrot.slane %v1782_v39, 3 }
  0xf0   : > { %4390 = vmatprep.subr.bf16.mxu0 %v4775_v36  ;;  %4153 = vmatmul.mubr.bf16.vlgmr.msra.gmra.mrb[0].mxu1 %v5535_v47  ;;  %v2698_v47 = vrot.slane %v5956_v13, 2 }
  0xf1   : > { %4432 = vmatpush3.bf16.msra.mxu1 %v5627_v49  ;;  %4156 = vmatprep.mubr.bf16.mxu1 %v5556_v14  ;;  %v2699_v49 = vrot.slane %v5957_v54, 3  ;;  %v2696_v14 = vor.u32 %v2695_v11, %v2694_v24  ;;  %v2718_v11 = vrot.slane %v2716_v26, 2  ;;  %v3016_v26 = vrot.slane %v5192_v56, 3 }
  0xf2   : > { %4425 = vmatprep.subr.bf16.mxu1 %v4779_v4 }
  0xf3   : > { %4391 = vmatpush3.bf16.msra.mxu0 %v4775_v36  ;;  %v2700_v2 = vor.u32 %v2699_v49, %v2698_v47  ;;  %v2697_v21 = vsel %vm2646_vm3, %v2692_v31, %v2696_v14  ;;  %v2709_v36 = vrot.slane %v2707_v3, 2  ;;  %v2719_v31 = vshll.u32 %v5588_v20, 16  ;;  %v4783_v47 = vld [vmem:[%s5913_s2 + $0x128] sm:$0xff]   ;;  %v4785_v3 = vld [vmem:[%s5913_s2 + $0x138] sm:$0xff]  }
  0xf5   : > { %4433 = vmatpush3.bf16.msra.mxu1 %v4779_v4  ;;  %v2701_v51 = vsel %vm2646_vm3, %v2696_v14, %v2700_v2 }
  0xf6   : > { %4361 = vmatmul.mubr.bf16.gmra.mrb[16].mxu0 %v2689_v35  ;;  %4426 = vmatprep.subr.bf16.mxu1 %v4780_v55  ;;  %v4782_v35 = vld [vmem:[%s5913_s2 + $0x120] sm:$0xff]  }
  0xf7   : > { %4364 = vmatprep.mubr.bf16.mxu0 %v2693_v29  ;;  %v2721_v29 = vrot.slane %v2719_v31, 3 }
  0xf8   : > { %4157 = vmatmul.mubr.bf16.gmra.mrb[4].mxu1 %v5560_v50  ;;  %v2712_v50 = vrot.slane %v2710_v16, 3 }
  0xf9   : > { %4160 = vmatprep.mubr.bf16.mxu1 %v5576_v62  ;;  %4434 = vmatpush3.bf16.msra.mxu1 %v4780_v55  ;;  %v2704_v62 = vor.u32 %v2703_v10, %v2702_v43  ;;  %v2722_v14 = vor.u32 %v2721_v29, %v2718_v11  ;;  %v3000_v55 = vrot.slane %v4952_v5, 3  ;;  %v3004_v5 = vrot.slane %v5026_v23, 3 }
  0xfa   : > { %4427 = vmatprep.subr.bf16.mxu1 %v4781_v6  ;;  %v2713_v4 = vor.u32 %v2712_v50, %v2709_v36  ;;  %v3008_v43 = vrot.slane %v5048_v38, 3  ;;  %v1454_v23 = vrot.slane %v5958_v22, 1  ;;  %v1755_v38 = vrot.slane %v5176_v40, 2  ;;  %v5959_v40 = vld [vmem:[#allocation2_spill] sm:$0xff] }
  0xfb   : > { %v2705_v24 = vsel %vm2646_vm3, %v2700_v2, %v2704_v62  ;;  %v1762_v50 = vrot.slane %v5950_v17, 1  ;;  %v3018_v17 = vrot.slane %v5232_v37, 3  ;;  %v1771_v11 = vrot.slane %v5955_v33, 2 }
  0xfc   : > { %v2714_v49 = vsel %vm2646_vm3, %v2704_v62, %v2713_v4  ;;  %v2723_v2 = vsel %vm2646_vm3, %v2713_v4, %v2722_v14  ;;  %v1455_v10 = vsel %vm1142_vm4, %v5654_v18, %v1454_v23  ;;  %v1758_v18 = vrot.slane %v5209_v9, 1 }
  0xfd   : > { %4435 = vmatpush3.bf16.msra.mxu1 %v4781_v6  ;;  %v1763_v62 = vrot.slane %v5951_v15, 2  ;;  %v1766_v4 = vrot.slane %v5952_v53, 1  ;;  %v1770_v15 = vrot.slane %v5954_v28, 1  ;;  %v3020_v29 = vrot.slane %v5257_v41, 3 }
  0xfe   : > { %4365 = vmatmul.mubr.bf16.gmra.mrb[20].mxu0 %v2697_v21  ;;  %4428 = vmatprep.subr.bf16.mxu1 %v4782_v35  ;;  %v3006_v21 = vrot.slane %v5031_v25, 3  ;;  %v1754_v25 = vrot.slane %v5182_v44, 1  ;;  %v1759_v44 = vrot.slane %v5203_v7, 2  ;;  %v1774_v37 = vrot.slane %v5956_v13, 1 }
  0xff   : > { %4368 = vmatprep.mubr.bf16.mxu0 %v2701_v51  ;;  %v1764_v9 = vor.u32 %v1763_v62, %v1762_v50  ;;  %v1772_v14 = vor.u32 %v1771_v11, %v1770_v15  ;;  %v3021_v53 = vsel %vm2998_vm5, %v3018_v17, %v3020_v29  ;;  %v3022_v28 = vrot.slane %v5269_v60, 3 }
 0x100   : > { %4161 = vmatmul.mubr.bf16.gmra.mrb[8].mxu1 %v5580_v52  ;;  %v4784_v52 = vld [vmem:[%s5913_s2 + $0x130] sm:$0xff]   ;;  %v1756_v51 = vor.u32 %v1755_v38, %v1754_v25  ;;  %v1760_v31 = vor.u32 %v1759_v44, %v1758_v18  ;;  %v1781_v33 = vrot.slane %v1779_v46, 1  ;;  %v1788_v13 = vshrl.u32 %v5468_v34, 16 }
 0x101   : > { %4164 = vmatprep.mubr.bf16.mxu1 %v5600_v27  ;;  %4436 = vmatpush3.bf16.msra.mxu1 %v4782_v35  ;;  %v2999_v27 = vrot.slane %v4936_v58, 3  ;;  %v3002_v58 = vrot.slane %v5002_v59, 3  ;;  %v3007_v59 = vsel %vm2998_vm5, %v3004_v5, %v3006_v21 }
 0x102   : > { %4429 = vmatprep.subr.bf16.mxu1 %v4783_v47  ;;  %v1765_v56 = vsel %vm1718_vm1, %v1760_v31, %v1764_v9 }
 0x103   : > { %v3001_v16 = vsel %vm2998_vm5, %v2999_v27, %v3000_v55  ;;  %v1784_v27 = vrot.slane %v1782_v39, 2 }
 0x105   : > { %4437 = vmatpush3.bf16.msra.mxu1 %v4783_v47  ;;  %v1785_v60 = vor.u32 %v1784_v27, %v1781_v33 }
 0x106   : > { %4369 = vmatmul.mubr.bf16.gmra.mrb[24].mxu0 %v2705_v24  ;;  %4430 = vmatprep.subr.bf16.mxu1 %v4784_v52  ;;  %v1767_v24 = vrot.slane %v5953_v48, 2 }
 0x107   : > { %4372 = vmatprep.mubr.bf16.mxu0 %v2714_v49  ;;  %v3019_v49 = vsel %vm2998_vm5, %v3016_v26, %v3018_v17 }
 0x108   : > { %4165 = vmatmul.mubr.bf16.gmra.mrb[12].mxu1 %v5605_v61  ;;  %v3003_v61 = vsel %vm2998_vm5, %v3000_v55, %v3002_v58  ;;  %v1768_v47 = vor.u32 %v1767_v24, %v1766_v4  ;;  %v3024_v55 = vrot.slane %v5298_v1, 3  ;;  %v3026_v1 = vrot.slane %v5958_v22, 3 }
 0x109   : > { %4168 = vmatprep.mubr.bf16.mxu1 %v5619_v12  ;;  %4438 = vmatpush3.bf16.msra.mxu1 %v4784_v52  ;;  %v3005_v12 = vsel %vm2998_vm5, %v3002_v58, %v3004_v5  ;;  %v1775_v52 = vrot.slane %v5957_v54, 2  ;;  %v1791_v54 = vshll.u32 %v5468_v34, 16  ;;  %v1790_v58 = vrot.slane %v1788_v13, 1 }
 0x10a   : > { %4431 = vmatprep.subr.bf16.mxu1 %v4785_v3  ;;  %v1769_v48 = vsel %vm1718_vm1, %v1764_v9, %v1768_v47  ;;  %v1773_v41 = vsel %vm1718_vm1, %v1768_v47, %v1772_v14 }
 0x10b   : > { %v1793_v5 = vrot.slane %v1791_v54, 2 }
 0x10d   : > { %4439 = vmatpush3.bf16.msra.mxu1 %v4785_v3  ;;  %v3023_v3 = vsel %vm2998_vm5, %v3020_v29, %v3022_v28 }
 0x10e   : > { %4373 = vmatmul.mubr.bf16.gmra.mrb[28].mxu0 %v2723_v2  ;;  %v1776_v2 = vor.u32 %v1775_v52, %v1774_v37 }
 0x10f   : > { %4392 = vmatprep.mubr.bf16.mxu0 %v3001_v16  ;;  %v3025_v16 = vsel %vm2998_vm5, %v3022_v28, %v3024_v55 }
 0x110   : > { %4169 = vmatmul.mubr.bf16.gmra.mrb[16].mxu1 %v5622_v8  ;;  %v3009_v8 = vsel %vm2998_vm5, %v3006_v21, %v3008_v43  ;;  %v1777_v46 = vsel %vm1718_vm1, %v1772_v14, %v1776_v2  ;;  %v1786_v39 = vsel %vm1718_vm1, %v1776_v2, %v1785_v60 }
 0x111   : > { %4172 = vmatprep.mubr.bf16.mxu1 %v5640_v42  ;;  %v3010_v42 = vrot.slane %v5102_v30, 3 }
 0x113   : > { %v3011_v6 = vsel %vm2998_vm5, %v3008_v43, %v3010_v42 }
 0x116   : > { %4393 = vmatmul.mubr.bf16.vlgmr.msra.gmra.mrb[0].mxu0 %v3003_v61  ;;  %v3028_v61 = vrot.slane %v5386_v57, 3 }
 0x117   : > { %4396 = vmatprep.mubr.bf16.mxu0 %v3005_v12  ;;  %v3027_v12 = vsel %vm2998_vm5, %v3024_v55, %v3026_v1 }
 0x118   : > { %4173 = vmatmul.mubr.bf16.gmra.mrb[20].mxu1 %v5645_v45  ;;  %v3012_v45 = vrot.slane %v5138_v0, 3  ;;  %v3014_v0 = vrot.slane %v5155_v19, 3  ;;  %v1761_v19 = vsel %vm1718_vm1, %v1756_v51, %v1760_v31  ;;  %v3029_v21 = vsel %vm2998_vm5, %v3026_v1, %v3028_v61 }
 0x119   : > { %4176 = vmatprep.mubr.bf16.mxu1 %v5661_v32  ;;  %v1456_v32 = vrot.slane %v5468_v34, 1  ;;  %v1794_v34 = vor.u32 %v1793_v5, %v1790_v58 }
 0x11a   : > { %v3013_v36 = vsel %vm2998_vm5, %v3010_v42, %v3012_v45  ;;  %v3015_v35 = vsel %vm2998_vm5, %v3012_v45, %v3014_v0  ;;  %v3017_v7 = vsel %vm2998_vm5, %v3014_v0, %v3016_v26 }
 0x11b   : > { %v1457_v30 = vsel %vm1142_vm4, %v1454_v23, %v1456_v32  ;;  %v1795_v43 = vsel %vm1718_vm1, %v1785_v60, %v1794_v34 }
 0x11e   : > { %4397 = vmatmul.mubr.bf16.gmra.mrb[4].mxu0 %v3007_v59  ;;  %v3030_v59 = vrot.slane %v5588_v20, 3 }
 0x11f   : > { %4400 = vmatprep.mubr.bf16.mxu0 %v3009_v8 }
 0x120   : > { %4177 = vmatmul.mubr.bf16.gmra.mrb[24].mxu1 %v5666_v63  ;;  %v1757_v63 = vsel %vm1718_vm1, %v5959_v40, %v1756_v51  ;;  %v3031_v22 = vsel %vm2998_vm5, %v3028_v61, %v3030_v59  ;;  %v5833_v40 = vld [vmem:[%s5914_s3] ss:$0 sm:$0xff] }
 0x121   : > { %4180 = vmatprep.mubr.bf16.mxu1 %v1455_v10 }
 0x126   : > { %4401 = vmatmul.mubr.bf16.gmra.mrb[8].mxu0 %v3011_v6 }
 0x127   : > { %4404 = vmatprep.mubr.bf16.mxu0 %v3013_v36 }
 0x128   : > { %4181 = vmatmul.mubr.bf16.gmra.mrb[28].mxu1 %v1457_v30 }
 0x129   : > { %4216 = vmatprep.mubr.bf16.mxu1 %v1757_v63 }
 0x12e   : > { %4405 = vmatmul.mubr.bf16.gmra.mrb[12].mxu0 %v3015_v35 }
 0x12f   : > { %4408 = vmatprep.mubr.bf16.mxu0 %v3017_v7 }
 0x130   : > { %4217 = vmatmul.mubr.bf16.vlgmr.msra.gmra.mrb[16].mxu1 %v1761_v19 }
 0x131   : > { %4220 = vmatprep.mubr.bf16.mxu1 %v1765_v56 }
 0x136   : > { %4409 = vmatmul.mubr.bf16.gmra.mrb[16].mxu0 %v3019_v49 }
 0x137   : > { %4412 = vmatprep.mubr.bf16.mxu0 %v3021_v53 }
 0x138   : > { %4221 = vmatmul.mubr.bf16.gmra.mrb[20].mxu1 %v1769_v48 }
 0x139   : > { %4224 = vmatprep.mubr.bf16.mxu1 %v1773_v41 }
 0x13e   : > { %4413 = vmatmul.mubr.bf16.gmra.mrb[20].mxu0 %v3023_v3 }
 0x13f   : > { %4416 = vmatprep.mubr.bf16.mxu0 %v3025_v16 }
 0x140   : > { %4225 = vmatmul.mubr.bf16.gmra.mrb[24].mxu1 %v1777_v46 }
 0x141   : > { %4228 = vmatprep.mubr.bf16.mxu1 %v1786_v39 }
 0x146   : > { %4417 = vmatmul.mubr.bf16.gmra.mrb[24].mxu0 %v3027_v12 }
 0x147   : > { %4420 = vmatprep.mubr.bf16.mxu0 %v3029_v21 }
 0x148   : > { %4229 = vmatmul.mubr.bf16.gmra.mrb[28].mxu1 %v1795_v43 }
 0x14e   : > { %4421 = vmatmul.mubr.bf16.gmra.mrb[28].mxu0 %v3031_v22 }
 0x1c3   : > { %v4154_v23 = vpop.f32.mrb[0].mxu1 }
 0x1c4   : > { %v1542_v57 = vpop.f32.mrb[1].mxu1 }
 0x1c5   : > { %v4155_v8 = vpop.f32.mrb[2].mxu1 }
 0x1c6   : > { %v1545_v42 = vpop.f32.mrb[3].mxu1 }
 0x1cb   : > { %v4158_v10 = vpop.f32.mrb[4].mxu1 }
 0x1cc   : > { %v1558_v25 = vpop.f32.mrb[5].mxu1 }
 0x1cd   : > { %v4159_v38 = vpop.f32.mrb[6].mxu1 }
 0x1ce   : > { %v1561_v45 = vpop.f32.mrb[7].mxu1 }
 0x1d3   : > { %v4162_v32 = vpop.f32.mrb[8].mxu1 }
 0x1d4   : > { %v1574_v6 = vpop.f32.mrb[9].mxu1 }
 0x1d5   : > { %v4163_v51 = vpop.f32.mrb[10].mxu1 }
 0x1d6   : > { %v1577_v36 = vpop.f32.mrb[11].mxu1 }
 0x1db   : > { %v5820_v30 = vpop.f32.mrb[12].mxu1 }
 0x1dc   : > { %v5822_v20 = vpop.f32.mrb[13].mxu1 }
 0x1dd   : > { %v5824_v18 = vpop.f32.mrb[14].mxu1 }
 0x1de   : > { %v5826_v44 = vpop.f32.mrb[15].mxu1 }
 0x1e9   : > { %v4394_v0 = vpop.f32.mrb[0].mxu0 }
 0x1ea   : > { %v4440_v63 = vadd.f32 %v4394_v0, %v4154_v23  ;;  %v3130_v50 = vpop.f32.mrb[1].mxu0 }
 0x1eb   : > { %v4441_v62 = vadd.f32 %v3130_v50, %v1542_v57  ;;  %v4395_v26 = vpop.f32.mrb[2].mxu0 }
 0x1ec   : > { %v3298_v31 = vadd.f32 %v4440_v63, %v5833_v40  ;;  %v4442_v35 = vadd.f32 %v4395_v26, %v4155_v8  ;;  %v3133_v9 = vpop.f32.mrb[3].mxu0 }
 0x1ed   : > { %v3296_v7 = vadd.f32 %v4441_v62, %v5833_v40  ;;  %v4443_v19 = vadd.f32 %v3133_v9, %v1545_v42 }
 0x1ee   : > { %v3330_v4 = vmax.f32 %v3298_v31, 0.0  ;;  %v3299_v24 = vadd.f32 %v4442_v35, %v5833_v40 }
 0x1ef   : > { %v3328_v17 = vmax.f32 %v3296_v7, 0.0  ;;  %v3297_v56 = vadd.f32 %v4443_v19, %v5833_v40 }
 0x1f0   : > { %3362 = vst [vmem:[%s5839_s11 + $0x10] sm:$0xff] %v3330_v4  ;;  %v3331_v15 = vmax.f32 %v3299_v24, 0.0 }
 0x1f1   : > { %3360 = vst [vmem:[%s5839_s11] sm:$0xff] %v3328_v17  ;;  %v3329_v11 = vmax.f32 %v3297_v56, 0.0  ;;  %v4398_v29 = vpop.f32.mrb[4].mxu0 }
 0x1f2   : > { %3363 = vst [vmem:[%s5839_s11 + $0x18] sm:$0xff] %v3331_v15  ;;  %v4444_v47 = vadd.f32 %v4398_v29, %v4158_v10  ;;  %v3146_v49 = vpop.f32.mrb[5].mxu0 }
 0x1f3   : > { %3361 = vst [vmem:[%s5839_s11 + $0x8] sm:$0xff] %v3329_v11  ;;  %v4445_v14 = vadd.f32 %v3146_v49, %v1558_v25  ;;  %v4399_v53 = vpop.f32.mrb[6].mxu0 }
 0x1f4   : > { %v3302_v48 = vadd.f32 %v4444_v47, %v5833_v40  ;;  %v4446_v37 = vadd.f32 %v4399_v53, %v4159_v38  ;;  %v3149_v52 = vpop.f32.mrb[7].mxu0 }
 0x1f5   : > { %v3300_v28 = vadd.f32 %v4445_v14, %v5833_v40  ;;  %v4447_v41 = vadd.f32 %v3149_v52, %v1561_v45 }
 0x1f6   : > { %v3334_v33 = vmax.f32 %v3302_v48, 0.0  ;;  %v3303_v27 = vadd.f32 %v4446_v37, %v5833_v40 }
 0x1f7   : > { %v3332_v55 = vmax.f32 %v3300_v28, 0.0  ;;  %v3301_v2 = vadd.f32 %v4447_v41, %v5833_v40 }
 0x1f8   : > { %3366 = vst [vmem:[%s5839_s11 + $0x30] sm:$0xff] %v3334_v33  ;;  %v3335_v13 = vmax.f32 %v3303_v27, 0.0 }
 0x1f9   : > { %3364 = vst [vmem:[%s5839_s11 + $0x20] sm:$0xff] %v3332_v55  ;;  %v3333_v54 = vmax.f32 %v3301_v2, 0.0  ;;  %v4402_v3 = vpop.f32.mrb[8].mxu0 }
 0x1fa   : > { %3367 = vst [vmem:[%s5839_s11 + $0x38] sm:$0xff] %v3335_v13  ;;  %v4448_v60 = vadd.f32 %v4402_v3, %v4162_v32  ;;  %v3162_v16 = vpop.f32.mrb[9].mxu0 }
 0x1fb   : > { %3365 = vst [vmem:[%s5839_s11 + $0x28] sm:$0xff] %v3333_v54  ;;  %v4449_v46 = vadd.f32 %v3162_v16, %v1574_v6  ;;  %v4403_v58 = vpop.f32.mrb[10].mxu0 }
 0x1fc   : > { %v3306_v5 = vadd.f32 %v4448_v60, %v5833_v40  ;;  %v4450_v1 = vadd.f32 %v4403_v58, %v4163_v51  ;;  %v3165_v39 = vpop.f32.mrb[11].mxu0 }
 0x1fd   : > { %v3304_v61 = vadd.f32 %v4449_v46, %v5833_v40  ;;  %v4451_v34 = vadd.f32 %v3165_v39, %v1577_v36 }
 0x1fe   : > { %v3338_v12 = vmax.f32 %v3306_v5, 0.0  ;;  %v3307_v21 = vadd.f32 %v4450_v1, %v5833_v40 }
 0x1ff   : > { %v3336_v43 = vmax.f32 %v3304_v61, 0.0  ;;  %v3305_v59 = vadd.f32 %v4451_v34, %v5833_v40 }
 0x200   : > { %3370 = vst [vmem:[%s5839_s11 + $0x50] sm:$0xff] %v3338_v12  ;;  %v3339_v22 = vmax.f32 %v3307_v21, 0.0 }
 0x201   : > { %3368 = vst [vmem:[%s5839_s11 + $0x40] sm:$0xff] %v3336_v43  ;;  %v3337_v23 = vmax.f32 %v3305_v59, 0.0  ;;  %v4406_v57 = vpop.f32.mrb[12].mxu0 }
 0x202   : > { %3371 = vst [vmem:[%s5839_s11 + $0x58] sm:$0xff] %v3339_v22  ;;  %v4452_v8 = vadd.f32 %v4406_v57, %v5820_v30  ;;  %v3178_v42 = vpop.f32.mrb[13].mxu0 }
 0x203   : > { %3369 = vst [vmem:[%s5839_s11 + $0x48] sm:$0xff] %v3337_v23  ;;  %v4453_v10 = vadd.f32 %v3178_v42, %v5822_v20  ;;  %v4407_v25 = vpop.f32.mrb[14].mxu0  ;;  %v4218_v6 = vpop.f32.mrb[16].mxu1 }
 0x204   : > { %v3310_v38 = vadd.f32 %v4452_v8, %v5833_v40  ;;  %v4454_v45 = vadd.f32 %v4407_v25, %v5824_v18  ;;  %v3181_v32 = vpop.f32.mrb[15].mxu0  ;;  %v1958_v30 = vpop.f32.mrb[17].mxu1 }
 0x205   : > { %v3308_v51 = vadd.f32 %v4453_v10, %v5833_v40  ;;  %v4455_v36 = vadd.f32 %v3181_v32, %v5826_v44  ;;  %v4219_v50 = vpop.f32.mrb[18].mxu1 }
 0x206   : > { %v3342_v0 = vmax.f32 %v3310_v38, 0.0  ;;  %v3311_v63 = vadd.f32 %v4454_v45, %v5833_v40  ;;  %v1961_v26 = vpop.f32.mrb[19].mxu1 }
 0x207   : > { %v3340_v20 = vmax.f32 %v3308_v51, 0.0  ;;  %v3309_v62 = vadd.f32 %v4455_v36, %v5833_v40 }
 0x208   : > { %3374 = vst [vmem:[%s5839_s11 + $0x70] sm:$0xff] %v3342_v0  ;;  %v3343_v31 = vmax.f32 %v3311_v63, 0.0 }
 0x209   : > { %3372 = vst [vmem:[%s5839_s11 + $0x60] sm:$0xff] %v3340_v20  ;;  %v3341_v18 = vmax.f32 %v3309_v62, 0.0  ;;  %v4410_v35 = vpop.f32.mrb[16].mxu0 }
 0x20a   : > { %3375 = vst [vmem:[%s5839_s11 + $0x78] sm:$0xff] %v3343_v31  ;;  %v4456_v9 = vadd.f32 %v4410_v35, %v4218_v6  ;;  %v3194_v7 = vpop.f32.mrb[17].mxu0 }
 0x20b   : > { %3373 = vst [vmem:[%s5839_s11 + $0x68] sm:$0xff] %v3341_v18  ;;  %v4457_v44 = vadd.f32 %v3194_v7, %v1958_v30  ;;  %v4411_v19 = vpop.f32.mrb[18].mxu0  ;;  %v4222_v56 = vpop.f32.mrb[20].mxu1 }
 0x20c   : > { %v3314_v4 = vadd.f32 %v4456_v9, %v5833_v40  ;;  %v4458_v24 = vadd.f32 %v4411_v19, %v4219_v50  ;;  %v3197_v17 = vpop.f32.mrb[19].mxu0  ;;  %v1974_v29 = vpop.f32.mrb[21].mxu1 }
 0x20d   : > { %v3312_v15 = vadd.f32 %v4457_v44, %v5833_v40  ;;  %v4459_v11 = vadd.f32 %v3197_v17, %v1961_v26  ;;  %v4223_v14 = vpop.f32.mrb[22].mxu1 }
 0x20e   : > { %v3346_v47 = vmax.f32 %v3314_v4, 0.0  ;;  %v3315_v49 = vadd.f32 %v4458_v24, %v5833_v40  ;;  %v1977_v37 = vpop.f32.mrb[23].mxu1 }
 0x20f   : > { %v3344_v53 = vmax.f32 %v3312_v15, 0.0  ;;  %v3313_v48 = vadd.f32 %v4459_v11, %v5833_v40 }
 0x210   : > { %3378 = vst [vmem:[%s5839_s11 + $0x90] sm:$0xff] %v3346_v47  ;;  %v3347_v52 = vmax.f32 %v3315_v49, 0.0 }
 0x211   : > { %3376 = vst [vmem:[%s5839_s11 + $0x80] sm:$0xff] %v3344_v53  ;;  %v3345_v28 = vmax.f32 %v3313_v48, 0.0  ;;  %v4414_v41 = vpop.f32.mrb[20].mxu0 }
 0x212   : > { %3379 = vst [vmem:[%s5839_s11 + $0x98] sm:$0xff] %v3347_v52  ;;  %v4460_v33 = vadd.f32 %v4414_v41, %v4222_v56  ;;  %v3210_v27 = vpop.f32.mrb[21].mxu0 }
 0x213   : > { %3377 = vst [vmem:[%s5839_s11 + $0x88] sm:$0xff] %v3345_v28  ;;  %v4461_v55 = vadd.f32 %v3210_v27, %v1974_v29  ;;  %v4415_v2 = vpop.f32.mrb[22].mxu0  ;;  %v4226_v60 = vpop.f32.mrb[24].mxu1 }
 0x214   : > { %v3318_v13 = vadd.f32 %v4460_v33, %v5833_v40  ;;  %v4462_v54 = vadd.f32 %v4415_v2, %v4223_v14  ;;  %v3213_v3 = vpop.f32.mrb[23].mxu0  ;;  %v1990_v58 = vpop.f32.mrb[25].mxu1 }
 0x215   : > { %v3316_v16 = vadd.f32 %v4461_v55, %v5833_v40  ;;  %v4463_v46 = vadd.f32 %v3213_v3, %v1977_v37  ;;  %v4227_v39 = vpop.f32.mrb[26].mxu1 }
 0x216   : > { %v3350_v5 = vmax.f32 %v3318_v13, 0.0  ;;  %v3319_v1 = vadd.f32 %v4462_v54, %v5833_v40  ;;  %v1993_v12 = vpop.f32.mrb[27].mxu1 }
 0x217   : > { %v3348_v61 = vmax.f32 %v3316_v16, 0.0  ;;  %v3317_v34 = vadd.f32 %v4463_v46, %v5833_v40 }
 0x218   : > { %3382 = vst [vmem:[%s5839_s11 + $0xb0] sm:$0xff] %v3350_v5  ;;  %v3351_v21 = vmax.f32 %v3319_v1, 0.0 }
 0x219   : > { %3380 = vst [vmem:[%s5839_s11 + $0xa0] sm:$0xff] %v3348_v61  ;;  %v3349_v43 = vmax.f32 %v3317_v34, 0.0  ;;  %v4418_v59 = vpop.f32.mrb[24].mxu0 }
 0x21a   : > { %3383 = vst [vmem:[%s5839_s11 + $0xb8] sm:$0xff] %v3351_v21  ;;  %v4464_v22 = vadd.f32 %v4418_v59, %v4226_v60  ;;  %v3226_v23 = vpop.f32.mrb[25].mxu0 }
 0x21b   : > { %3381 = vst [vmem:[%s5839_s11 + $0xa8] sm:$0xff] %v3349_v43  ;;  %v4465_v57 = vadd.f32 %v3226_v23, %v1990_v58  ;;  %v4419_v8 = vpop.f32.mrb[26].mxu0  ;;  %v4230_v38 = vpop.f32.mrb[28].mxu1 }
 0x21c   : > { %v3322_v42 = vadd.f32 %v4464_v22, %v5833_v40  ;;  %v4466_v10 = vadd.f32 %v4419_v8, %v4227_v39  ;;  %v3229_v25 = vpop.f32.mrb[27].mxu0  ;;  %v2006_v6 = vpop.f32.mrb[29].mxu1 }
 0x21d   : > { %v3320_v45 = vadd.f32 %v4465_v57, %v5833_v40  ;;  %v4467_v32 = vadd.f32 %v3229_v25, %v1993_v12  ;;  %v4231_v30 = vpop.f32.mrb[30].mxu1 }
 0x21e   : > { %v3354_v51 = vmax.f32 %v3322_v42, 0.0  ;;  %v3323_v36 = vadd.f32 %v4466_v10, %v5833_v40  ;;  %v2009_v50 = vpop.f32.mrb[31].mxu1 }
 0x21f   : > { %v3352_v0 = vmax.f32 %v3320_v45, 0.0  ;;  %v3321_v63 = vadd.f32 %v4467_v32, %v5833_v40 }
 0x220   : > { %3386 = vst [vmem:[%s5839_s11 + $0xd0] sm:$0xff] %v3354_v51  ;;  %v3355_v20 = vmax.f32 %v3323_v36, 0.0 }
 0x221   : > { %3384 = vst [vmem:[%s5839_s11 + $0xc0] sm:$0xff] %v3352_v0  ;;  %v3353_v62 = vmax.f32 %v3321_v63, 0.0  ;;  %v4422_v26 = vpop.f32.mrb[28].mxu0 }
 0x222   : > { %3387 = vst [vmem:[%s5839_s11 + $0xd8] sm:$0xff] %v3355_v20  ;;  %v4468_v31 = vadd.f32 %v4422_v26, %v4230_v38  ;;  %v3242_v18 = vpop.f32.mrb[29].mxu0 }
 0x223   : > { %3385 = vst [vmem:[%s5839_s11 + $0xc8] sm:$0xff] %v3353_v62  ;;  %v4469_v35 = vadd.f32 %v3242_v18, %v2006_v6  ;;  %v4423_v9 = vpop.f32.mrb[30].mxu0 }
 0x224   : > { %v3326_v7 = vadd.f32 %v4468_v31, %v5833_v40  ;;  %v4470_v44 = vadd.f32 %v4423_v9, %v4231_v30  ;;  %v3245_v19 = vpop.f32.mrb[31].mxu0 }
 0x225   : > { %v3324_v4 = vadd.f32 %v4469_v35, %v5833_v40  ;;  %v4471_v24 = vadd.f32 %v3245_v19, %v2009_v50 }
 0x226   : > { %v3358_v17 = vmax.f32 %v3326_v7, 0.0  ;;  %v3327_v56 = vadd.f32 %v4470_v44, %v5833_v40 }
 0x227   : > { %v3356_v15 = vmax.f32 %v3324_v4, 0.0  ;;  %v3325_v11 = vadd.f32 %v4471_v24, %v5833_v40 }
 0x228   : > { %3390 = vst [vmem:[%s5839_s11 + $0xf0] sm:$0xff] %v3358_v17  ;;  %v3359_v29 = vmax.f32 %v3327_v56, 0.0 }
 0x229   : > { %3388 = vst [vmem:[%s5839_s11 + $0xe0] sm:$0xff] %v3356_v15  ;;  %v3357_v47 = vmax.f32 %v3325_v11, 0.0 }
 0x22a   : > { %3391 = vst [vmem:[%s5839_s11 + $0xf8] sm:$0xff] %v3359_v29 }
 0x22b   : > { %3389 = vst [vmem:[%s5839_s11 + $0xe8] sm:$0xff] %v3357_v47 }
 0x22c PF: > { %s16_s21 = sadd.s32 1, %s4792_s21  }
 0x22d   : > { %p13_p6 = scmp.ge.s32.totalorder %s16_s21, 5  }
 0x22f   :  { %15 = sbr.rel (!%p13_p6) target bundleno = 1 (0x1), region = 85 }

</bundles_post_ra>
